<compile_context>
chip_gen: v7x
topology: tpu7x:2x2x1
jax: 0.10.0
libtpu: 0.0.40
codegen_flags: <defaults>
</compile_context>

<pallas_src>
import jax
import jax.numpy as jnp
from jax.experimental import pallas as pl
from jax.experimental.pallas import tpu as pltpu  # noqa: F401  (TPU backend)

# ----------------- synthetic CLIP-vision config (small) -----------------
BATCH = 2
CHANNELS = 3
IMAGE_SIZE = 16
PATCH_SIZE = 8
HIDDEN = 128
HEADS = 4
HEAD_DIM = HIDDEN // HEADS
INTERMEDIATE = 256
NUM_LAYERS = 3
SELECT_LAYER = -2          # args.mm_vision_select_layer
SELECT_FEATURE = "patch"   # drops CLS token
EPS = 1e-5

GRID_HW = IMAGE_SIZE // PATCH_SIZE
NUM_PATCHES = GRID_HW * GRID_HW
SEQ = NUM_PATCHES + 1          # 5
SEQ_PAD = 8                    # pad per-image sequence to a sublane multiple
ROWS = BATCH * SEQ_PAD         # 16 rows -> two full (8,128) tiles
PATCH_DIM = CHANNELS * PATCH_SIZE * PATCH_SIZE   # 192, multiple of 16 (bf16 tile)

# hidden_states[SELECT_LAYER]: only this many encoder layers are ever consumed
NUM_USED_LAYERS = SELECT_LAYER % (NUM_LAYERS + 1)   # -2 -> 2 (last layer skipped)


# =========================== fused Pallas kernel ===========================

def _layernorm(x, g, b):
    mean = jnp.mean(x, axis=-1, keepdims=True)
    var = jnp.mean((x - mean) ** 2, axis=-1, keepdims=True)
    return (x - mean) * jax.lax.rsqrt(var + EPS) * g + b


def clip_tower_kernel(patches_ref, wpatch_ref, add_ref, plg_ref, plb_ref,
                      mask_ref,
                      wq_ref, bq_ref, wk_ref, bk_ref, wv_ref, bv_ref,
                      wo_ref, bo_ref,
                      ln1g_ref, ln1b_ref, ln2g_ref, ln2b_ref,
                      w1_ref, b1_ref, w2_ref, b2_ref,
                      o_ref):
    bf = jnp.bfloat16

    # Patch embedding (conv-as-matmul, K=192) + fused CLS/pos additive slab.
    emb = jnp.dot(patches_ref[...], wpatch_ref[...],
                  preferred_element_type=jnp.float32) + add_ref[...]
    # pre_layrnorm  -> hidden_states[0]
    h = _layernorm(emb, plg_ref[...], plb_ref[...])

    # Precomputed additive mask (1, ROWS, ROWS): block-diagonal across the
    # images folded into the row dim, padded key columns disabled.  Padded
    # query rows produce garbage attention outputs; this is benign ONLY
    # because the wrapper drops them and LN/MLP/residual are strictly
    # per-row (nothing mixes across rows outside masked attention).
    # The -1e30 additive mask is safe only while scores stay f32.
    neg = mask_ref[...]

    for l in range(NUM_USED_LAYERS):            # static unroll; unused layers skipped
        # --- self-attention (pre-LN); 1/sqrt(hd) pre-folded into Wq/bq ---
        x = _layernorm(h, ln1g_ref[l], ln1b_ref[l]).astype(bf)

        # Full-width 128-lane projections (heads packed along lanes).
        q = jnp.dot(x, wq_ref[l], preferred_element_type=jnp.float32) + bq_ref[l]
        k = jnp.dot(x, wk_ref[l], preferred_element_type=jnp.float32) + bk_ref[l]
        v = jnp.dot(x, wv_ref[l], preferred_element_type=jnp.float32) + bv_ref[l]
        qb, kb, vb = q.astype(bf), k.astype(bf), v.astype(bf)

        # Split heads (lane slices stacked on a leading batch dim) only for the
        # score/context dot_generals; all heads share one softmax.
        q3 = jnp.stack([qb[:, hh * HEAD_DIM:(hh + 1) * HEAD_DIM]
                        for hh in range(HEADS)], axis=0)      # (H, ROWS, HD)
        k3 = jnp.stack([kb[:, hh * HEAD_DIM:(hh + 1) * HEAD_DIM]
                        for hh in range(HEADS)], axis=0)
        v3 = jnp.stack([vb[:, hh * HEAD_DIM:(hh + 1) * HEAD_DIM]
                        for hh in range(HEADS)], axis=0)

        s = jnp.einsum('hqd,hkd->hqk', q3, k3,
                       preferred_element_type=jnp.float32) + neg   # (H,ROWS,ROWS)
        m = jnp.max(s, axis=-1, keepdims=True)
        p = jnp.exp(s - m)
        p = p * pl.reciprocal(jnp.sum(p, axis=-1, keepdims=True), approx=True)

        ctx = jnp.einsum('hqk,hkd->hqd', p.astype(bf), v3,
                         preferred_element_type=jnp.float32)       # (H,ROWS,HD)
        # Re-pack heads along lanes and run ONE full-width output projection.
        ctx2 = jnp.concatenate([ctx[hh] for hh in range(HEADS)],
                               axis=-1).astype(bf)                 # (ROWS, HIDDEN)
        h = h + jnp.dot(ctx2, wo_ref[l],
                        preferred_element_type=jnp.float32) + bo_ref[l]

        # --- MLP (pre-LN, quick_gelu); elementwise math stays f32 ---
        x = _layernorm(h, ln2g_ref[l], ln2b_ref[l]).astype(bf)
        f = jnp.dot(x, w1_ref[l], preferred_element_type=jnp.float32) + b1_ref[l]
        f = f * jax.nn.sigmoid(1.702 * f)       # quick_gelu
        h = h + jnp.dot(f.astype(bf), w2_ref[l],
                        preferred_element_type=jnp.float32) + b2_ref[l]

    o_ref[...] = h

# TODO(synk): at production CLIP sizes (ViT-L/14), stream layer weights over an
# 'arbitrary' layer grid axis with pl.Buffered(2) sized against v7x's 64 MiB
# VMEM (raise vmem_limit_bytes / use deeper buffering on v6e's 128 MiB), pack
# >=128 rows (more images) per call, and add a 'parallel' image-group grid axis
# or core_map over pltpu.create_tensorcore_mesh so v7x's second TC is used.


# =========================== parameters ===========================

def init_params(key):
    """PyTorch-layout parameters (same as the reference module)."""
    ks = jax.random.split(key, 8 + NUM_LAYERS)
    s = 0.02
    params = {
        # conv patch-embedding weight, PyTorch layout (D, C, ph, pw), no bias
        "patch_w": s * jax.random.normal(
            ks[0], (HIDDEN, CHANNELS, PATCH_SIZE, PATCH_SIZE), jnp.float32),
        "class_embed": s * jax.random.normal(ks[1], (1, HIDDEN), jnp.float32),
        "pos_embed": s * jax.random.normal(ks[2], (SEQ, HIDDEN), jnp.float32),
        "pre_ln_g": jnp.ones((1, HIDDEN), jnp.float32),
        "pre_ln_b": jnp.zeros((1, HIDDEN), jnp.float32),
        "layers": [],
    }
    for li in range(NUM_LAYERS):
        lk = jax.random.split(ks[8 + li], 8)
        layer = (
            s * jax.random.normal(lk[0], (HIDDEN, HIDDEN), jnp.float32),   # Wq (in,out)
            jnp.zeros((1, HIDDEN), jnp.float32),                           # bq
            s * jax.random.normal(lk[1], (HIDDEN, HIDDEN), jnp.float32),   # Wk
            jnp.zeros((1, HIDDEN), jnp.float32),                           # bk
            s * jax.random.normal(lk[2], (HIDDEN, HIDDEN), jnp.float32),   # Wv
            jnp.zeros((1, HIDDEN), jnp.float32),                           # bv
            s * jax.random.normal(lk[3], (HIDDEN, HIDDEN), jnp.float32),   # Wo
            jnp.zeros((1, HIDDEN), jnp.float32),                           # bo
            jnp.ones((1, HIDDEN), jnp.float32),                            # ln1 g
            jnp.zeros((1, HIDDEN), jnp.float32),                           # ln1 b
            jnp.ones((1, HIDDEN), jnp.float32),                            # ln2 g
            jnp.zeros((1, HIDDEN), jnp.float32),                           # ln2 b
            s * jax.random.normal(lk[4], (HIDDEN, INTERMEDIATE), jnp.float32),  # fc1
            jnp.zeros((1, INTERMEDIATE), jnp.float32),
            s * jax.random.normal(lk[5], (INTERMEDIATE, HIDDEN), jnp.float32),  # fc2
            jnp.zeros((1, HIDDEN), jnp.float32),
        )
        params["layers"].append(layer)
    return params


def prepare_params(params):
    """One-time folding/stacking of weights for the fused kernel."""
    bf = jnp.bfloat16

    # conv weight -> (K, D) with K = C*ph*pw = 192 (no zero pad)
    w_kd = params["patch_w"].reshape(HIDDEN, PATCH_DIM).T

    # additive slab: CLS embed + position embeddings routed into padded rows
    add_one = jnp.zeros((SEQ_PAD, HIDDEN), jnp.float32)
    add_one = add_one.at[0].set(params["class_embed"][0] + params["pos_embed"][0])
    add_one = add_one.at[1:SEQ].set(params["pos_embed"][1:])
    add_slab = jnp.tile(add_one, (BATCH, 1))                  # (ROWS, HIDDEN)

    # compile-time additive attention mask for the padded/folded row layout
    rows = jnp.arange(ROWS)[:, None]
    cols = jnp.arange(ROWS)[None, :]
    valid = ((rows // SEQ_PAD) == (cols // SEQ_PAD)) & ((cols % SEQ_PAD) < SEQ)
    mask = jnp.where(valid, 0.0, -1e30).astype(jnp.float32)[None]   # (1, ROWS, ROWS)

    scale = HEAD_DIM ** -0.5

    def stack(idx):
        return jnp.stack([params["layers"][l][idx] for l in range(NUM_USED_LAYERS)])

    wq, bq = stack(0) * scale, stack(1) * scale               # fold q-scale
    wk, bk, wv, bv = stack(2), stack(3), stack(4), stack(5)
    wo, bo = stack(6), stack(7)
    ln1g, ln1b, ln2g, ln2b = stack(8), stack(9), stack(10), stack(11)
    w1, b1, w2, b2 = stack(12), stack(13), stack(14), stack(15)

    # All attention weights stay full-width (L, 128, 128) / (L, 1, 128):
    # heads are packed along lanes (out column j -> head j//HEAD_DIM), so no
    # 32-lane-trailing refs and no per-head weight slabs.
    return dict(
        wpatch=w_kd.astype(bf), add_slab=add_slab, mask=mask,
        pre_ln_g=params["pre_ln_g"], pre_ln_b=params["pre_ln_b"],
        wq=wq.astype(bf), bq=bq, wk=wk.astype(bf), bk=bk,
        wv=wv.astype(bf), bv=bv, wo=wo.astype(bf), bo=bo,
        ln1g=ln1g, ln1b=ln1b, ln2g=ln2g, ln2b=ln2b,
        w1=w1.astype(bf), b1=b1, w2=w2.astype(bf), b2=b2,
    )


# =========================== forward ===========================

def clip_vision_tower_forward(images, prepped):
    """images: (B, C, H, W) NCHW, like the PyTorch module's pixel_values."""
    B = images.shape[0]
    assert B == BATCH
    bf = jnp.bfloat16

    # unfold NCHW image into conv-equivalent patches and write them directly
    # into the bf16 (ROWS, PATCH_DIM) row layout (no f32 padded intermediate):
    # row b*SEQ_PAD is the (zero) CLS row, rows 1..NUM_PATCHES hold patches.
    x = images.reshape(B, CHANNELS, GRID_HW, PATCH_SIZE, GRID_HW, PATCH_SIZE)
    x = x.transpose(0, 2, 4, 1, 3, 5).reshape(B, NUM_PATCHES, PATCH_DIM).astype(bf)
    slab = jnp.zeros((B, SEQ_PAD, PATCH_DIM), bf).at[:, 1:SEQ].set(x)
    slab = slab.reshape(B * SEQ_PAD, PATCH_DIM)

    out = pl.pallas_call(
        clip_tower_kernel,
        out_shape=jax.ShapeDtypeStruct((ROWS, HIDDEN), jnp.float32),
    )(slab, prepped["wpatch"], prepped["add_slab"],
      prepped["pre_ln_g"], prepped["pre_ln_b"], prepped["mask"],
      prepped["wq"], prepped["bq"], prepped["wk"], prepped["bk"],
      prepped["wv"], prepped["bv"], prepped["wo"], prepped["bo"],
      prepped["ln1g"], prepped["ln1b"], prepped["ln2g"], prepped["ln2b"],
      prepped["w1"], prepped["b1"], prepped["w2"], prepped["b2"])

    feats = out.reshape(B, SEQ_PAD, HIDDEN)
    if SELECT_FEATURE == "patch":
        feats = feats[:, 1:SEQ]        # drop CLS and padded rows
    else:  # 'cls_patch'
        feats = feats[:, :SEQ]
    return feats.astype(images.dtype)

# TODO(synk): checkpoint loading / CLIPImageProcessor / deepstack_vit crop path
# (bicubic pos-embed interpolation) are config- and IO-dependent and are not
# exercised by the default forward; only the standard vision-tower path is kernelized.


if __name__ == "__main__":
    key = jax.random.PRNGKey(0)
    pkey, ikey = jax.random.split(key)
    params = init_params(pkey)
    prepped = prepare_params(params)
    images = jax.random.normal(
        ikey, (BATCH, CHANNELS, IMAGE_SIZE, IMAGE_SIZE), jnp.float32)

    out = clip_vision_tower_forward(images, prepped)
    out = jax.block_until_ready(out)
    assert out.shape == (BATCH, NUM_PATCHES, HIDDEN), out.shape
    assert bool(jnp.all(jnp.isfinite(out)))
    print("KERNEL_OK")
</pallas_src>

<mosaic_0001>
module attributes {stable_mosaic.version = 11 : i64} {
  func.func @clip_tower_kernel(%arg0: memref<16x192xbf16, #tpu.memory_space<vmem>>, %arg1: memref<192x128xbf16, #tpu.memory_space<vmem>>, %arg2: memref<16x128xf32, #tpu.memory_space<vmem>>, %arg3: memref<1x128xf32, #tpu.memory_space<vmem>>, %arg4: memref<1x128xf32, #tpu.memory_space<vmem>>, %arg5: memref<1x16x16xf32, #tpu.memory_space<vmem>>, %arg6: memref<2x128x128xbf16, #tpu.memory_space<vmem>>, %arg7: memref<2x1x128xf32, #tpu.memory_space<vmem>>, %arg8: memref<2x128x128xbf16, #tpu.memory_space<vmem>>, %arg9: memref<2x1x128xf32, #tpu.memory_space<vmem>>, %arg10: memref<2x128x128xbf16, #tpu.memory_space<vmem>>, %arg11: memref<2x1x128xf32, #tpu.memory_space<vmem>>, %arg12: memref<2x128x128xbf16, #tpu.memory_space<vmem>>, %arg13: memref<2x1x128xf32, #tpu.memory_space<vmem>>, %arg14: memref<2x1x128xf32, #tpu.memory_space<vmem>>, %arg15: memref<2x1x128xf32, #tpu.memory_space<vmem>>, %arg16: memref<2x1x128xf32, #tpu.memory_space<vmem>>, %arg17: memref<2x1x128xf32, #tpu.memory_space<vmem>>, %arg18: memref<2x128x256xbf16, #tpu.memory_space<vmem>>, %arg19: memref<2x1x256xf32, #tpu.memory_space<vmem>>, %arg20: memref<2x256x128xbf16, #tpu.memory_space<vmem>>, %arg21: memref<2x1x128xf32, #tpu.memory_space<vmem>>, %arg22: memref<16x128xf32, #tpu.memory_space<vmem>>) attributes {dimension_semantics = [], scalar_prefetch = 0 : i64, scratch_operands = 0 : i64, tpu.core_type = #tpu.core_type<tc>} {
    %c0 = arith.constant 0 : index
    %c0_0 = arith.constant 0 : index
    %0 = vector.load %arg0[%c0, %c0_0] : memref<16x192xbf16, #tpu.memory_space<vmem>>, vector<16x192xbf16>
    %c0_1 = arith.constant 0 : index
    %c0_2 = arith.constant 0 : index
    %1 = vector.load %arg1[%c0_1, %c0_2] : memref<192x128xbf16, #tpu.memory_space<vmem>>, vector<192x128xbf16>
    %cst = arith.constant dense<0.000000e+00> : vector<16x128xf32>
    %2 = tpu.matmul %0, %1, %cst {dimension_numbers = #tpu.dot_dimension_numbers<[1], [0], [0], [1], [0, 0, 1, 1], [], []>} : vector<16x192xbf16>, vector<192x128xbf16>, vector<16x128xf32> -> vector<16x128xf32>
    %c0_3 = arith.constant 0 : index
    %c0_4 = arith.constant 0 : index
    %3 = vector.load %arg2[%c0_3, %c0_4] : memref<16x128xf32, #tpu.memory_space<vmem>>, vector<16x128xf32>
    %4 = arith.addf %2, %3 : vector<16x128xf32>
    %c0_5 = arith.constant 0 : index
    %c0_6 = arith.constant 0 : index
    %5 = vector.load %arg3[%c0_5, %c0_6] : memref<1x128xf32, #tpu.memory_space<vmem>>, vector<1x128xf32>
    %c0_7 = arith.constant 0 : index
    %c0_8 = arith.constant 0 : index
    %6 = vector.load %arg4[%c0_7, %c0_8] : memref<1x128xf32, #tpu.memory_space<vmem>>, vector<1x128xf32>
    %cst_9 = arith.constant dense<0.000000e+00> : vector<16xf32>
    %7 = vector.multi_reduction <add>, %4, %cst_9 [1] : vector<16x128xf32> to vector<16xf32>
    %8 = vector.shape_cast %7 : vector<16xf32> to vector<16x1xf32>
    %cst_10 = arith.constant 1.280000e+02 : f32
    %9 = vector.broadcast %cst_10 : f32 to vector<16x1xf32>
    %10 = arith.divf %8, %9 : vector<16x1xf32>
    %11 = vector.broadcast %10 : vector<16x1xf32> to vector<16x128xf32>
    %12 = arith.subf %4, %11 : vector<16x128xf32>
    %13 = arith.mulf %12, %12 : vector<16x128xf32>
    %cst_11 = arith.constant dense<0.000000e+00> : vector<16xf32>
    %14 = vector.multi_reduction <add>, %13, %cst_11 [1] : vector<16x128xf32> to vector<16xf32>
    %15 = vector.shape_cast %14 : vector<16xf32> to vector<16x1xf32>
    %cst_12 = arith.constant 1.280000e+02 : f32
    %16 = vector.broadcast %cst_12 : f32 to vector<16x1xf32>
    %17 = arith.divf %15, %16 : vector<16x1xf32>
    %18 = vector.broadcast %10 : vector<16x1xf32> to vector<16x128xf32>
    %19 = arith.subf %4, %18 : vector<16x128xf32>
    %cst_13 = arith.constant 9.99999974E-6 : f32
    %20 = vector.broadcast %cst_13 : f32 to vector<16x1xf32>
    %21 = arith.addf %17, %20 : vector<16x1xf32>
    %22 = math.rsqrt %21 : vector<16x1xf32>
    %23 = vector.broadcast %22 : vector<16x1xf32> to vector<16x128xf32>
    %24 = arith.mulf %19, %23 : vector<16x128xf32>
    %25 = vector.broadcast %5 : vector<1x128xf32> to vector<16x128xf32>
    %26 = arith.mulf %24, %25 : vector<16x128xf32>
    %27 = vector.broadcast %6 : vector<1x128xf32> to vector<16x128xf32>
    %28 = arith.addf %26, %27 : vector<16x128xf32>
    %c0_14 = arith.constant 0 : index
    %c0_15 = arith.constant 0 : index
    %c0_16 = arith.constant 0 : index
    %29 = vector.load %arg5[%c0_14, %c0_15, %c0_16] : memref<1x16x16xf32, #tpu.memory_space<vmem>>, vector<1x16x16xf32>
    %c0_17 = arith.constant 0 : index
    %c0_18 = arith.constant 0 : index
    %c0_19 = arith.constant 0 : index
    %30 = vector.load %arg14[%c0_17, %c0_18, %c0_19] : memref<2x1x128xf32, #tpu.memory_space<vmem>>, vector<1x1x128xf32>
    %31 = vector.shape_cast %30 : vector<1x1x128xf32> to vector<1x128xf32>
    %c0_20 = arith.constant 0 : index
    %c0_21 = arith.constant 0 : index
    %c0_22 = arith.constant 0 : index
    %32 = vector.load %arg15[%c0_20, %c0_21, %c0_22] : memref<2x1x128xf32, #tpu.memory_space<vmem>>, vector<1x1x128xf32>
    %33 = vector.shape_cast %32 : vector<1x1x128xf32> to vector<1x128xf32>
    %cst_23 = arith.constant dense<0.000000e+00> : vector<16xf32>
    %34 = vector.multi_reduction <add>, %28, %cst_23 [1] : vector<16x128xf32> to vector<16xf32>
    %35 = vector.shape_cast %34 : vector<16xf32> to vector<16x1xf32>
    %cst_24 = arith.constant 1.280000e+02 : f32
    %36 = vector.broadcast %cst_24 : f32 to vector<16x1xf32>
    %37 = arith.divf %35, %36 : vector<16x1xf32>
    %38 = vector.broadcast %37 : vector<16x1xf32> to vector<16x128xf32>
    %39 = arith.subf %28, %38 : vector<16x128xf32>
    %40 = arith.mulf %39, %39 : vector<16x128xf32>
    %cst_25 = arith.constant dense<0.000000e+00> : vector<16xf32>
    %41 = vector.multi_reduction <add>, %40, %cst_25 [1] : vector<16x128xf32> to vector<16xf32>
    %42 = vector.shape_cast %41 : vector<16xf32> to vector<16x1xf32>
    %cst_26 = arith.constant 1.280000e+02 : f32
    %43 = vector.broadcast %cst_26 : f32 to vector<16x1xf32>
    %44 = arith.divf %42, %43 : vector<16x1xf32>
    %45 = vector.broadcast %37 : vector<16x1xf32> to vector<16x128xf32>
    %46 = arith.subf %28, %45 : vector<16x128xf32>
    %cst_27 = arith.constant 9.99999974E-6 : f32
    %47 = vector.broadcast %cst_27 : f32 to vector<16x1xf32>
    %48 = arith.addf %44, %47 : vector<16x1xf32>
    %49 = math.rsqrt %48 : vector<16x1xf32>
    %50 = vector.broadcast %49 : vector<16x1xf32> to vector<16x128xf32>
    %51 = arith.mulf %46, %50 : vector<16x128xf32>
    %52 = vector.broadcast %31 : vector<1x128xf32> to vector<16x128xf32>
    %53 = arith.mulf %51, %52 : vector<16x128xf32>
    %54 = vector.broadcast %33 : vector<1x128xf32> to vector<16x128xf32>
    %55 = arith.addf %53, %54 : vector<16x128xf32>
    %56 = arith.truncf %55 : vector<16x128xf32> to vector<16x128xbf16>
    %c0_28 = arith.constant 0 : index
    %c0_29 = arith.constant 0 : index
    %c0_30 = arith.constant 0 : index
    %57 = vector.load %arg6[%c0_28, %c0_29, %c0_30] : memref<2x128x128xbf16, #tpu.memory_space<vmem>>, vector<1x128x128xbf16>
    %58 = vector.shape_cast %57 : vector<1x128x128xbf16> to vector<128x128xbf16>
    %cst_31 = arith.constant dense<0.000000e+00> : vector<16x128xf32>
    %59 = tpu.matmul %56, %58, %cst_31 {dimension_numbers = #tpu.dot_dimension_numbers<[1], [0], [0], [1], [0, 0, 1, 1], [], []>} : vector<16x128xbf16>, vector<128x128xbf16>, vector<16x128xf32> -> vector<16x128xf32>
    %c0_32 = arith.constant 0 : index
    %c0_33 = arith.constant 0 : index
    %c0_34 = arith.constant 0 : index
    %60 = vector.load %arg7[%c0_32, %c0_33, %c0_34] : memref<2x1x128xf32, #tpu.memory_space<vmem>>, vector<1x1x128xf32>
    %61 = vector.shape_cast %60 : vector<1x1x128xf32> to vector<1x128xf32>
    %62 = vector.broadcast %61 : vector<1x128xf32> to vector<16x128xf32>
    %63 = arith.addf %59, %62 : vector<16x128xf32>
    %c0_35 = arith.constant 0 : index
    %c0_36 = arith.constant 0 : index
    %c0_37 = arith.constant 0 : index
    %64 = vector.load %arg8[%c0_35, %c0_36, %c0_37] : memref<2x128x128xbf16, #tpu.memory_space<vmem>>, vector<1x128x128xbf16>
    %65 = vector.shape_cast %64 : vector<1x128x128xbf16> to vector<128x128xbf16>
    %cst_38 = arith.constant dense<0.000000e+00> : vector<16x128xf32>
    %66 = tpu.matmul %56, %65, %cst_38 {dimension_numbers = #tpu.dot_dimension_numbers<[1], [0], [0], [1], [0, 0, 1, 1], [], []>} : vector<16x128xbf16>, vector<128x128xbf16>, vector<16x128xf32> -> vector<16x128xf32>
    %c0_39 = arith.constant 0 : index
    %c0_40 = arith.constant 0 : index
    %c0_41 = arith.constant 0 : index
    %67 = vector.load %arg9[%c0_39, %c0_40, %c0_41] : memref<2x1x128xf32, #tpu.memory_space<vmem>>, vector<1x1x128xf32>
    %68 = vector.shape_cast %67 : vector<1x1x128xf32> to vector<1x128xf32>
    %69 = vector.broadcast %68 : vector<1x128xf32> to vector<16x128xf32>
    %70 = arith.addf %66, %69 : vector<16x128xf32>
    %c0_42 = arith.constant 0 : index
    %c0_43 = arith.constant 0 : index
    %c0_44 = arith.constant 0 : index
    %71 = vector.load %arg10[%c0_42, %c0_43, %c0_44] : memref<2x128x128xbf16, #tpu.memory_space<vmem>>, vector<1x128x128xbf16>
    %72 = vector.shape_cast %71 : vector<1x128x128xbf16> to vector<128x128xbf16>
    %cst_45 = arith.constant dense<0.000000e+00> : vector<16x128xf32>
    %73 = tpu.matmul %56, %72, %cst_45 {dimension_numbers = #tpu.dot_dimension_numbers<[1], [0], [0], [1], [0, 0, 1, 1], [], []>} : vector<16x128xbf16>, vector<128x128xbf16>, vector<16x128xf32> -> vector<16x128xf32>
    %c0_46 = arith.constant 0 : index
    %c0_47 = arith.constant 0 : index
    %c0_48 = arith.constant 0 : index
    %74 = vector.load %arg11[%c0_46, %c0_47, %c0_48] : memref<2x1x128xf32, #tpu.memory_space<vmem>>, vector<1x1x128xf32>
    %75 = vector.shape_cast %74 : vector<1x1x128xf32> to vector<1x128xf32>
    %76 = vector.broadcast %75 : vector<1x128xf32> to vector<16x128xf32>
    %77 = arith.addf %73, %76 : vector<16x128xf32>
    %78 = arith.truncf %63 : vector<16x128xf32> to vector<16x128xbf16>
    %79 = arith.truncf %70 : vector<16x128xf32> to vector<16x128xbf16>
    %80 = arith.truncf %77 : vector<16x128xf32> to vector<16x128xbf16>
    %81 = vector.extract_strided_slice %78 {offsets = [0, 0], sizes = [16, 32], strides = [1, 1]} : vector<16x128xbf16> to vector<16x32xbf16>
    %82 = vector.extract_strided_slice %78 {offsets = [0, 32], sizes = [16, 32], strides = [1, 1]} : vector<16x128xbf16> to vector<16x32xbf16>
    %83 = vector.extract_strided_slice %78 {offsets = [0, 64], sizes = [16, 32], strides = [1, 1]} : vector<16x128xbf16> to vector<16x32xbf16>
    %84 = vector.extract_strided_slice %78 {offsets = [0, 96], sizes = [16, 32], strides = [1, 1]} : vector<16x128xbf16> to vector<16x32xbf16>
    %85 = vector.shape_cast %81 : vector<16x32xbf16> to vector<1x16x32xbf16>
    %86 = vector.shape_cast %82 : vector<16x32xbf16> to vector<1x16x32xbf16>
    %87 = vector.shape_cast %83 : vector<16x32xbf16> to vector<1x16x32xbf16>
    %88 = vector.shape_cast %84 : vector<16x32xbf16> to vector<1x16x32xbf16>
    %89 = tpu.concatenate %85, %86, %87, %88 in 0 : vector<1x16x32xbf16>, vector<1x16x32xbf16>, vector<1x16x32xbf16>, vector<1x16x32xbf16> -> vector<4x16x32xbf16>
    %90 = vector.extract_strided_slice %79 {offsets = [0, 0], sizes = [16, 32], strides = [1, 1]} : vector<16x128xbf16> to vector<16x32xbf16>
    %91 = vector.extract_strided_slice %79 {offsets = [0, 32], sizes = [16, 32], strides = [1, 1]} : vector<16x128xbf16> to vector<16x32xbf16>
    %92 = vector.extract_strided_slice %79 {offsets = [0, 64], sizes = [16, 32], strides = [1, 1]} : vector<16x128xbf16> to vector<16x32xbf16>
    %93 = vector.extract_strided_slice %79 {offsets = [0, 96], sizes = [16, 32], strides = [1, 1]} : vector<16x128xbf16> to vector<16x32xbf16>
    %94 = vector.shape_cast %90 : vector<16x32xbf16> to vector<1x16x32xbf16>
    %95 = vector.shape_cast %91 : vector<16x32xbf16> to vector<1x16x32xbf16>
    %96 = vector.shape_cast %92 : vector<16x32xbf16> to vector<1x16x32xbf16>
    %97 = vector.shape_cast %93 : vector<16x32xbf16> to vector<1x16x32xbf16>
    %98 = tpu.concatenate %94, %95, %96, %97 in 0 : vector<1x16x32xbf16>, vector<1x16x32xbf16>, vector<1x16x32xbf16>, vector<1x16x32xbf16> -> vector<4x16x32xbf16>
    %99 = vector.extract_strided_slice %80 {offsets = [0, 0], sizes = [16, 32], strides = [1, 1]} : vector<16x128xbf16> to vector<16x32xbf16>
    %100 = vector.extract_strided_slice %80 {offsets = [0, 32], sizes = [16, 32], strides = [1, 1]} : vector<16x128xbf16> to vector<16x32xbf16>
    %101 = vector.extract_strided_slice %80 {offsets = [0, 64], sizes = [16, 32], strides = [1, 1]} : vector<16x128xbf16> to vector<16x32xbf16>
    %102 = vector.extract_strided_slice %80 {offsets = [0, 96], sizes = [16, 32], strides = [1, 1]} : vector<16x128xbf16> to vector<16x32xbf16>
    %103 = vector.shape_cast %99 : vector<16x32xbf16> to vector<1x16x32xbf16>
    %104 = vector.shape_cast %100 : vector<16x32xbf16> to vector<1x16x32xbf16>
    %105 = vector.shape_cast %101 : vector<16x32xbf16> to vector<1x16x32xbf16>
    %106 = vector.shape_cast %102 : vector<16x32xbf16> to vector<1x16x32xbf16>
    %107 = tpu.concatenate %103, %104, %105, %106 in 0 : vector<1x16x32xbf16>, vector<1x16x32xbf16>, vector<1x16x32xbf16>, vector<1x16x32xbf16> -> vector<4x16x32xbf16>
    "tpu.trace_start"() <{level = 10 : i32, message = "hqd,hkd->hqk"}> : () -> ()
    %cst_49 = arith.constant dense<0.000000e+00> : vector<4x16x16xf32>
    %108 = tpu.matmul %89, %98, %cst_49 {dimension_numbers = #tpu.dot_dimension_numbers<[2], [2], [1], [1], [0, 0, 0, 1, 1, 1], [0], [0]>} : vector<4x16x32xbf16>, vector<4x16x32xbf16>, vector<4x16x16xf32> -> vector<4x16x16xf32>
    "tpu.trace_stop"() : () -> ()
    %109 = vector.broadcast %29 : vector<1x16x16xf32> to vector<4x16x16xf32>
    %110 = arith.addf %108, %109 : vector<4x16x16xf32>
    %cst_50 = arith.constant dense<0xFF800000> : vector<4x16xf32>
    %111 = vector.multi_reduction <maximumf>, %110, %cst_50 [2] : vector<4x16x16xf32> to vector<4x16xf32>
    %112 = vector.shape_cast %111 : vector<4x16xf32> to vector<4x16x1xf32>
    %113 = vector.broadcast %112 : vector<4x16x1xf32> to vector<4x16x16xf32>
    %114 = arith.subf %110, %113 : vector<4x16x16xf32>
    %115 = math.exp %114 : vector<4x16x16xf32>
    %cst_51 = arith.constant dense<0.000000e+00> : vector<4x16xf32>
    %116 = vector.multi_reduction <add>, %115, %cst_51 [2] : vector<4x16x16xf32> to vector<4x16xf32>
    %117 = vector.shape_cast %116 : vector<4x16xf32> to vector<4x16x1xf32>
    %118 = tpu.reciprocal %117 {approx = true} : vector<4x16x1xf32> -> vector<4x16x1xf32>
    %119 = vector.broadcast %118 : vector<4x16x1xf32> to vector<4x16x16xf32>
    %120 = arith.mulf %115, %119 : vector<4x16x16xf32>
    %121 = arith.truncf %120 : vector<4x16x16xf32> to vector<4x16x16xbf16>
    "tpu.trace_start"() <{level = 10 : i32, message = "hqk,hkd->hqd"}> : () -> ()
    %cst_52 = arith.constant dense<0.000000e+00> : vector<4x16x32xf32>
    %122 = tpu.matmul %121, %107, %cst_52 {dimension_numbers = #tpu.dot_dimension_numbers<[2], [1], [1], [2], [0, 0, 0, 1, 1, 2], [0], [0]>} : vector<4x16x16xbf16>, vector<4x16x32xbf16>, vector<4x16x32xf32> -> vector<4x16x32xf32>
    "tpu.trace_stop"() : () -> ()
    %123 = vector.extract_strided_slice %122 {offsets = [0, 0, 0], sizes = [1, 16, 32], strides = [1, 1, 1]} : vector<4x16x32xf32> to vector<1x16x32xf32>
    %124 = vector.shape_cast %123 : vector<1x16x32xf32> to vector<16x32xf32>
    %125 = vector.extract_strided_slice %122 {offsets = [1, 0, 0], sizes = [1, 16, 32], strides = [1, 1, 1]} : vector<4x16x32xf32> to vector<1x16x32xf32>
    %126 = vector.shape_cast %125 : vector<1x16x32xf32> to vector<16x32xf32>
    %127 = vector.extract_strided_slice %122 {offsets = [2, 0, 0], sizes = [1, 16, 32], strides = [1, 1, 1]} : vector<4x16x32xf32> to vector<1x16x32xf32>
    %128 = vector.shape_cast %127 : vector<1x16x32xf32> to vector<16x32xf32>
    %129 = vector.extract_strided_slice %122 {offsets = [3, 0, 0], sizes = [1, 16, 32], strides = [1, 1, 1]} : vector<4x16x32xf32> to vector<1x16x32xf32>
    %130 = vector.shape_cast %129 : vector<1x16x32xf32> to vector<16x32xf32>
    %131 = tpu.concatenate %124, %126, %128, %130 in 1 : vector<16x32xf32>, vector<16x32xf32>, vector<16x32xf32>, vector<16x32xf32> -> vector<16x128xf32>
    %132 = arith.truncf %131 : vector<16x128xf32> to vector<16x128xbf16>
    %c0_53 = arith.constant 0 : index
    %c0_54 = arith.constant 0 : index
    %c0_55 = arith.constant 0 : index
    %133 = vector.load %arg12[%c0_53, %c0_54, %c0_55] : memref<2x128x128xbf16, #tpu.memory_space<vmem>>, vector<1x128x128xbf16>
    %134 = vector.shape_cast %133 : vector<1x128x128xbf16> to vector<128x128xbf16>
    %cst_56 = arith.constant dense<0.000000e+00> : vector<16x128xf32>
    %135 = tpu.matmul %132, %134, %cst_56 {dimension_numbers = #tpu.dot_dimension_numbers<[1], [0], [0], [1], [0, 0, 1, 1], [], []>} : vector<16x128xbf16>, vector<128x128xbf16>, vector<16x128xf32> -> vector<16x128xf32>
    %136 = arith.addf %28, %135 : vector<16x128xf32>
    %c0_57 = arith.constant 0 : index
    %c0_58 = arith.constant 0 : index
    %c0_59 = arith.constant 0 : index
    %137 = vector.load %arg13[%c0_57, %c0_58, %c0_59] : memref<2x1x128xf32, #tpu.memory_space<vmem>>, vector<1x1x128xf32>
    %138 = vector.shape_cast %137 : vector<1x1x128xf32> to vector<1x128xf32>
    %139 = vector.broadcast %138 : vector<1x128xf32> to vector<16x128xf32>
    %140 = arith.addf %136, %139 : vector<16x128xf32>
    %c0_60 = arith.constant 0 : index
    %c0_61 = arith.constant 0 : index
    %c0_62 = arith.constant 0 : index
    %141 = vector.load %arg16[%c0_60, %c0_61, %c0_62] : memref<2x1x128xf32, #tpu.memory_space<vmem>>, vector<1x1x128xf32>
    %142 = vector.shape_cast %141 : vector<1x1x128xf32> to vector<1x128xf32>
    %c0_63 = arith.constant 0 : index
    %c0_64 = arith.constant 0 : index
    %c0_65 = arith.constant 0 : index
    %143 = vector.load %arg17[%c0_63, %c0_64, %c0_65] : memref<2x1x128xf32, #tpu.memory_space<vmem>>, vector<1x1x128xf32>
    %144 = vector.shape_cast %143 : vector<1x1x128xf32> to vector<1x128xf32>
    %cst_66 = arith.constant dense<0.000000e+00> : vector<16xf32>
    %145 = vector.multi_reduction <add>, %140, %cst_66 [1] : vector<16x128xf32> to vector<16xf32>
    %146 = vector.shape_cast %145 : vector<16xf32> to vector<16x1xf32>
    %cst_67 = arith.constant 1.280000e+02 : f32
    %147 = vector.broadcast %cst_67 : f32 to vector<16x1xf32>
    %148 = arith.divf %146, %147 : vector<16x1xf32>
    %149 = vector.broadcast %148 : vector<16x1xf32> to vector<16x128xf32>
    %150 = arith.subf %140, %149 : vector<16x128xf32>
    %151 = arith.mulf %150, %150 : vector<16x128xf32>
    %cst_68 = arith.constant dense<0.000000e+00> : vector<16xf32>
    %152 = vector.multi_reduction <add>, %151, %cst_68 [1] : vector<16x128xf32> to vector<16xf32>
    %153 = vector.shape_cast %152 : vector<16xf32> to vector<16x1xf32>
    %cst_69 = arith.constant 1.280000e+02 : f32
    %154 = vector.broadcast %cst_69 : f32 to vector<16x1xf32>
    %155 = arith.divf %153, %154 : vector<16x1xf32>
    %156 = vector.broadcast %148 : vector<16x1xf32> to vector<16x128xf32>
    %157 = arith.subf %140, %156 : vector<16x128xf32>
    %cst_70 = arith.constant 9.99999974E-6 : f32
    %158 = vector.broadcast %cst_70 : f32 to vector<16x1xf32>
    %159 = arith.addf %155, %158 : vector<16x1xf32>
    %160 = math.rsqrt %159 : vector<16x1xf32>
    %161 = vector.broadcast %160 : vector<16x1xf32> to vector<16x128xf32>
    %162 = arith.mulf %157, %161 : vector<16x128xf32>
    %163 = vector.broadcast %142 : vector<1x128xf32> to vector<16x128xf32>
    %164 = arith.mulf %162, %163 : vector<16x128xf32>
    %165 = vector.broadcast %144 : vector<1x128xf32> to vector<16x128xf32>
    %166 = arith.addf %164, %165 : vector<16x128xf32>
    %167 = arith.truncf %166 : vector<16x128xf32> to vector<16x128xbf16>
    %c0_71 = arith.constant 0 : index
    %c0_72 = arith.constant 0 : index
    %c0_73 = arith.constant 0 : index
    %168 = vector.load %arg18[%c0_71, %c0_72, %c0_73] : memref<2x128x256xbf16, #tpu.memory_space<vmem>>, vector<1x128x256xbf16>
    %169 = vector.shape_cast %168 : vector<1x128x256xbf16> to vector<128x256xbf16>
    %cst_74 = arith.constant dense<0.000000e+00> : vector<16x256xf32>
    %170 = tpu.matmul %167, %169, %cst_74 {dimension_numbers = #tpu.dot_dimension_numbers<[1], [0], [0], [1], [0, 0, 1, 1], [], []>} : vector<16x128xbf16>, vector<128x256xbf16>, vector<16x256xf32> -> vector<16x256xf32>
    %c0_75 = arith.constant 0 : index
    %c0_76 = arith.constant 0 : index
    %c0_77 = arith.constant 0 : index
    %171 = vector.load %arg19[%c0_75, %c0_76, %c0_77] : memref<2x1x256xf32, #tpu.memory_space<vmem>>, vector<1x1x256xf32>
    %172 = vector.shape_cast %171 : vector<1x1x256xf32> to vector<1x256xf32>
    %173 = vector.broadcast %172 : vector<1x256xf32> to vector<16x256xf32>
    %174 = arith.addf %170, %173 : vector<16x256xf32>
    %cst_78 = arith.constant 1.702000e+00 : f32
    %175 = vector.broadcast %cst_78 : f32 to vector<16x256xf32>
    %176 = arith.mulf %175, %174 : vector<16x256xf32>
    %177 = arith.negf %176 : vector<16x256xf32>
    %178 = math.exp %177 : vector<16x256xf32>
    %cst_79 = arith.constant 1.000000e+00 : f32
    %179 = vector.broadcast %cst_79 : f32 to vector<16x256xf32>
    %180 = arith.addf %179, %178 : vector<16x256xf32>
    %181 = arith.divf %179, %180 : vector<16x256xf32>
    %182 = arith.mulf %174, %181 : vector<16x256xf32>
    %183 = arith.truncf %182 : vector<16x256xf32> to vector<16x256xbf16>
    %c0_80 = arith.constant 0 : index
    %c0_81 = arith.constant 0 : index
    %c0_82 = arith.constant 0 : index
    %184 = vector.load %arg20[%c0_80, %c0_81, %c0_82] : memref<2x256x128xbf16, #tpu.memory_space<vmem>>, vector<1x256x128xbf16>
    %185 = vector.shape_cast %184 : vector<1x256x128xbf16> to vector<256x128xbf16>
    %cst_83 = arith.constant dense<0.000000e+00> : vector<16x128xf32>
    %186 = tpu.matmul %183, %185, %cst_83 {dimension_numbers = #tpu.dot_dimension_numbers<[1], [0], [0], [1], [0, 0, 1, 1], [], []>} : vector<16x256xbf16>, vector<256x128xbf16>, vector<16x128xf32> -> vector<16x128xf32>
    %187 = arith.addf %140, %186 : vector<16x128xf32>
    %c0_84 = arith.constant 0 : index
    %c0_85 = arith.constant 0 : index
    %c0_86 = arith.constant 0 : index
    %188 = vector.load %arg21[%c0_84, %c0_85, %c0_86] : memref<2x1x128xf32, #tpu.memory_space<vmem>>, vector<1x1x128xf32>
    %189 = vector.shape_cast %188 : vector<1x1x128xf32> to vector<1x128xf32>
    %190 = vector.broadcast %189 : vector<1x128xf32> to vector<16x128xf32>
    %191 = arith.addf %187, %190 : vector<16x128xf32>
    %c1 = arith.constant 1 : index
    %c0_87 = arith.constant 0 : index
    %c0_88 = arith.constant 0 : index
    %192 = vector.load %arg14[%c1, %c0_87, %c0_88] : memref<2x1x128xf32, #tpu.memory_space<vmem>>, vector<1x1x128xf32>
    %193 = vector.shape_cast %192 : vector<1x1x128xf32> to vector<1x128xf32>
    %c1_89 = arith.constant 1 : index
    %c0_90 = arith.constant 0 : index
    %c0_91 = arith.constant 0 : index
    %194 = vector.load %arg15[%c1_89, %c0_90, %c0_91] : memref<2x1x128xf32, #tpu.memory_space<vmem>>, vector<1x1x128xf32>
    %195 = vector.shape_cast %194 : vector<1x1x128xf32> to vector<1x128xf32>
    %cst_92 = arith.constant dense<0.000000e+00> : vector<16xf32>
    %196 = vector.multi_reduction <add>, %191, %cst_92 [1] : vector<16x128xf32> to vector<16xf32>
    %197 = vector.shape_cast %196 : vector<16xf32> to vector<16x1xf32>
    %cst_93 = arith.constant 1.280000e+02 : f32
    %198 = vector.broadcast %cst_93 : f32 to vector<16x1xf32>
    %199 = arith.divf %197, %198 : vector<16x1xf32>
    %200 = vector.broadcast %199 : vector<16x1xf32> to vector<16x128xf32>
    %201 = arith.subf %191, %200 : vector<16x128xf32>
    %202 = arith.mulf %201, %201 : vector<16x128xf32>
    %cst_94 = arith.constant dense<0.000000e+00> : vector<16xf32>
    %203 = vector.multi_reduction <add>, %202, %cst_94 [1] : vector<16x128xf32> to vector<16xf32>
    %204 = vector.shape_cast %203 : vector<16xf32> to vector<16x1xf32>
    %cst_95 = arith.constant 1.280000e+02 : f32
    %205 = vector.broadcast %cst_95 : f32 to vector<16x1xf32>
    %206 = arith.divf %204, %205 : vector<16x1xf32>
    %207 = vector.broadcast %199 : vector<16x1xf32> to vector<16x128xf32>
    %208 = arith.subf %191, %207 : vector<16x128xf32>
    %cst_96 = arith.constant 9.99999974E-6 : f32
    %209 = vector.broadcast %cst_96 : f32 to vector<16x1xf32>
    %210 = arith.addf %206, %209 : vector<16x1xf32>
    %211 = math.rsqrt %210 : vector<16x1xf32>
    %212 = vector.broadcast %211 : vector<16x1xf32> to vector<16x128xf32>
    %213 = arith.mulf %208, %212 : vector<16x128xf32>
    %214 = vector.broadcast %193 : vector<1x128xf32> to vector<16x128xf32>
    %215 = arith.mulf %213, %214 : vector<16x128xf32>
    %216 = vector.broadcast %195 : vector<1x128xf32> to vector<16x128xf32>
    %217 = arith.addf %215, %216 : vector<16x128xf32>
    %218 = arith.truncf %217 : vector<16x128xf32> to vector<16x128xbf16>
    %c1_97 = arith.constant 1 : index
    %c0_98 = arith.constant 0 : index
    %c0_99 = arith.constant 0 : index
    %219 = vector.load %arg6[%c1_97, %c0_98, %c0_99] : memref<2x128x128xbf16, #tpu.memory_space<vmem>>, vector<1x128x128xbf16>
    %220 = vector.shape_cast %219 : vector<1x128x128xbf16> to vector<128x128xbf16>
    %cst_100 = arith.constant dense<0.000000e+00> : vector<16x128xf32>
    %221 = tpu.matmul %218, %220, %cst_100 {dimension_numbers = #tpu.dot_dimension_numbers<[1], [0], [0], [1], [0, 0, 1, 1], [], []>} : vector<16x128xbf16>, vector<128x128xbf16>, vector<16x128xf32> -> vector<16x128xf32>
    %c1_101 = arith.constant 1 : index
    %c0_102 = arith.constant 0 : index
    %c0_103 = arith.constant 0 : index
    %222 = vector.load %arg7[%c1_101, %c0_102, %c0_103] : memref<2x1x128xf32, #tpu.memory_space<vmem>>, vector<1x1x128xf32>
    %223 = vector.shape_cast %222 : vector<1x1x128xf32> to vector<1x128xf32>
    %224 = vector.broadcast %223 : vector<1x128xf32> to vector<16x128xf32>
    %225 = arith.addf %221, %224 : vector<16x128xf32>
    %c1_104 = arith.constant 1 : index
    %c0_105 = arith.constant 0 : index
    %c0_106 = arith.constant 0 : index
    %226 = vector.load %arg8[%c1_104, %c0_105, %c0_106] : memref<2x128x128xbf16, #tpu.memory_space<vmem>>, vector<1x128x128xbf16>
    %227 = vector.shape_cast %226 : vector<1x128x128xbf16> to vector<128x128xbf16>
    %cst_107 = arith.constant dense<0.000000e+00> : vector<16x128xf32>
    %228 = tpu.matmul %218, %227, %cst_107 {dimension_numbers = #tpu.dot_dimension_numbers<[1], [0], [0], [1], [0, 0, 1, 1], [], []>} : vector<16x128xbf16>, vector<128x128xbf16>, vector<16x128xf32> -> vector<16x128xf32>
    %c1_108 = arith.constant 1 : index
    %c0_109 = arith.constant 0 : index
    %c0_110 = arith.constant 0 : index
    %229 = vector.load %arg9[%c1_108, %c0_109, %c0_110] : memref<2x1x128xf32, #tpu.memory_space<vmem>>, vector<1x1x128xf32>
    %230 = vector.shape_cast %229 : vector<1x1x128xf32> to vector<1x128xf32>
    %231 = vector.broadcast %230 : vector<1x128xf32> to vector<16x128xf32>
    %232 = arith.addf %228, %231 : vector<16x128xf32>
    %c1_111 = arith.constant 1 : index
    %c0_112 = arith.constant 0 : index
    %c0_113 = arith.constant 0 : index
    %233 = vector.load %arg10[%c1_111, %c0_112, %c0_113] : memref<2x128x128xbf16, #tpu.memory_space<vmem>>, vector<1x128x128xbf16>
    %234 = vector.shape_cast %233 : vector<1x128x128xbf16> to vector<128x128xbf16>
    %cst_114 = arith.constant dense<0.000000e+00> : vector<16x128xf32>
    %235 = tpu.matmul %218, %234, %cst_114 {dimension_numbers = #tpu.dot_dimension_numbers<[1], [0], [0], [1], [0, 0, 1, 1], [], []>} : vector<16x128xbf16>, vector<128x128xbf16>, vector<16x128xf32> -> vector<16x128xf32>
    %c1_115 = arith.constant 1 : index
    %c0_116 = arith.constant 0 : index
    %c0_117 = arith.constant 0 : index
    %236 = vector.load %arg11[%c1_115, %c0_116, %c0_117] : memref<2x1x128xf32, #tpu.memory_space<vmem>>, vector<1x1x128xf32>
    %237 = vector.shape_cast %236 : vector<1x1x128xf32> to vector<1x128xf32>
    %238 = vector.broadcast %237 : vector<1x128xf32> to vector<16x128xf32>
    %239 = arith.addf %235, %238 : vector<16x128xf32>
    %240 = arith.truncf %225 : vector<16x128xf32> to vector<16x128xbf16>
    %241 = arith.truncf %232 : vector<16x128xf32> to vector<16x128xbf16>
    %242 = arith.truncf %239 : vector<16x128xf32> to vector<16x128xbf16>
    %243 = vector.extract_strided_slice %240 {offsets = [0, 0], sizes = [16, 32], strides = [1, 1]} : vector<16x128xbf16> to vector<16x32xbf16>
    %244 = vector.extract_strided_slice %240 {offsets = [0, 32], sizes = [16, 32], strides = [1, 1]} : vector<16x128xbf16> to vector<16x32xbf16>
    %245 = vector.extract_strided_slice %240 {offsets = [0, 64], sizes = [16, 32], strides = [1, 1]} : vector<16x128xbf16> to vector<16x32xbf16>
    %246 = vector.extract_strided_slice %240 {offsets = [0, 96], sizes = [16, 32], strides = [1, 1]} : vector<16x128xbf16> to vector<16x32xbf16>
    %247 = vector.shape_cast %243 : vector<16x32xbf16> to vector<1x16x32xbf16>
    %248 = vector.shape_cast %244 : vector<16x32xbf16> to vector<1x16x32xbf16>
    %249 = vector.shape_cast %245 : vector<16x32xbf16> to vector<1x16x32xbf16>
    %250 = vector.shape_cast %246 : vector<16x32xbf16> to vector<1x16x32xbf16>
    %251 = tpu.concatenate %247, %248, %249, %250 in 0 : vector<1x16x32xbf16>, vector<1x16x32xbf16>, vector<1x16x32xbf16>, vector<1x16x32xbf16> -> vector<4x16x32xbf16>
    %252 = vector.extract_strided_slice %241 {offsets = [0, 0], sizes = [16, 32], strides = [1, 1]} : vector<16x128xbf16> to vector<16x32xbf16>
    %253 = vector.extract_strided_slice %241 {offsets = [0, 32], sizes = [16, 32], strides = [1, 1]} : vector<16x128xbf16> to vector<16x32xbf16>
    %254 = vector.extract_strided_slice %241 {offsets = [0, 64], sizes = [16, 32], strides = [1, 1]} : vector<16x128xbf16> to vector<16x32xbf16>
    %255 = vector.extract_strided_slice %241 {offsets = [0, 96], sizes = [16, 32], strides = [1, 1]} : vector<16x128xbf16> to vector<16x32xbf16>
    %256 = vector.shape_cast %252 : vector<16x32xbf16> to vector<1x16x32xbf16>
    %257 = vector.shape_cast %253 : vector<16x32xbf16> to vector<1x16x32xbf16>
    %258 = vector.shape_cast %254 : vector<16x32xbf16> to vector<1x16x32xbf16>
    %259 = vector.shape_cast %255 : vector<16x32xbf16> to vector<1x16x32xbf16>
    %260 = tpu.concatenate %256, %257, %258, %259 in 0 : vector<1x16x32xbf16>, vector<1x16x32xbf16>, vector<1x16x32xbf16>, vector<1x16x32xbf16> -> vector<4x16x32xbf16>
    %261 = vector.extract_strided_slice %242 {offsets = [0, 0], sizes = [16, 32], strides = [1, 1]} : vector<16x128xbf16> to vector<16x32xbf16>
    %262 = vector.extract_strided_slice %242 {offsets = [0, 32], sizes = [16, 32], strides = [1, 1]} : vector<16x128xbf16> to vector<16x32xbf16>
    %263 = vector.extract_strided_slice %242 {offsets = [0, 64], sizes = [16, 32], strides = [1, 1]} : vector<16x128xbf16> to vector<16x32xbf16>
    %264 = vector.extract_strided_slice %242 {offsets = [0, 96], sizes = [16, 32], strides = [1, 1]} : vector<16x128xbf16> to vector<16x32xbf16>
    %265 = vector.shape_cast %261 : vector<16x32xbf16> to vector<1x16x32xbf16>
    %266 = vector.shape_cast %262 : vector<16x32xbf16> to vector<1x16x32xbf16>
    %267 = vector.shape_cast %263 : vector<16x32xbf16> to vector<1x16x32xbf16>
    %268 = vector.shape_cast %264 : vector<16x32xbf16> to vector<1x16x32xbf16>
    %269 = tpu.concatenate %265, %266, %267, %268 in 0 : vector<1x16x32xbf16>, vector<1x16x32xbf16>, vector<1x16x32xbf16>, vector<1x16x32xbf16> -> vector<4x16x32xbf16>
    "tpu.trace_start"() <{level = 10 : i32, message = "hqd,hkd->hqk"}> : () -> ()
    %cst_118 = arith.constant dense<0.000000e+00> : vector<4x16x16xf32>
    %270 = tpu.matmul %251, %260, %cst_118 {dimension_numbers = #tpu.dot_dimension_numbers<[2], [2], [1], [1], [0, 0, 0, 1, 1, 1], [0], [0]>} : vector<4x16x32xbf16>, vector<4x16x32xbf16>, vector<4x16x16xf32> -> vector<4x16x16xf32>
    "tpu.trace_stop"() : () -> ()
    %271 = vector.broadcast %29 : vector<1x16x16xf32> to vector<4x16x16xf32>
    %272 = arith.addf %270, %271 : vector<4x16x16xf32>
    %cst_119 = arith.constant dense<0xFF800000> : vector<4x16xf32>
    %273 = vector.multi_reduction <maximumf>, %272, %cst_119 [2] : vector<4x16x16xf32> to vector<4x16xf32>
    %274 = vector.shape_cast %273 : vector<4x16xf32> to vector<4x16x1xf32>
    %275 = vector.broadcast %274 : vector<4x16x1xf32> to vector<4x16x16xf32>
    %276 = arith.subf %272, %275 : vector<4x16x16xf32>
    %277 = math.exp %276 : vector<4x16x16xf32>
    %cst_120 = arith.constant dense<0.000000e+00> : vector<4x16xf32>
    %278 = vector.multi_reduction <add>, %277, %cst_120 [2] : vector<4x16x16xf32> to vector<4x16xf32>
    %279 = vector.shape_cast %278 : vector<4x16xf32> to vector<4x16x1xf32>
    %280 = tpu.reciprocal %279 {approx = true} : vector<4x16x1xf32> -> vector<4x16x1xf32>
    %281 = vector.broadcast %280 : vector<4x16x1xf32> to vector<4x16x16xf32>
    %282 = arith.mulf %277, %281 : vector<4x16x16xf32>
    %283 = arith.truncf %282 : vector<4x16x16xf32> to vector<4x16x16xbf16>
    "tpu.trace_start"() <{level = 10 : i32, message = "hqk,hkd->hqd"}> : () -> ()
    %cst_121 = arith.constant dense<0.000000e+00> : vector<4x16x32xf32>
    %284 = tpu.matmul %283, %269, %cst_121 {dimension_numbers = #tpu.dot_dimension_numbers<[2], [1], [1], [2], [0, 0, 0, 1, 1, 2], [0], [0]>} : vector<4x16x16xbf16>, vector<4x16x32xbf16>, vector<4x16x32xf32> -> vector<4x16x32xf32>
    "tpu.trace_stop"() : () -> ()
    %285 = vector.extract_strided_slice %284 {offsets = [0, 0, 0], sizes = [1, 16, 32], strides = [1, 1, 1]} : vector<4x16x32xf32> to vector<1x16x32xf32>
    %286 = vector.shape_cast %285 : vector<1x16x32xf32> to vector<16x32xf32>
    %287 = vector.extract_strided_slice %284 {offsets = [1, 0, 0], sizes = [1, 16, 32], strides = [1, 1, 1]} : vector<4x16x32xf32> to vector<1x16x32xf32>
    %288 = vector.shape_cast %287 : vector<1x16x32xf32> to vector<16x32xf32>
    %289 = vector.extract_strided_slice %284 {offsets = [2, 0, 0], sizes = [1, 16, 32], strides = [1, 1, 1]} : vector<4x16x32xf32> to vector<1x16x32xf32>
    %290 = vector.shape_cast %289 : vector<1x16x32xf32> to vector<16x32xf32>
    %291 = vector.extract_strided_slice %284 {offsets = [3, 0, 0], sizes = [1, 16, 32], strides = [1, 1, 1]} : vector<4x16x32xf32> to vector<1x16x32xf32>
    %292 = vector.shape_cast %291 : vector<1x16x32xf32> to vector<16x32xf32>
    %293 = tpu.concatenate %286, %288, %290, %292 in 1 : vector<16x32xf32>, vector<16x32xf32>, vector<16x32xf32>, vector<16x32xf32> -> vector<16x128xf32>
    %294 = arith.truncf %293 : vector<16x128xf32> to vector<16x128xbf16>
    %c1_122 = arith.constant 1 : index
    %c0_123 = arith.constant 0 : index
    %c0_124 = arith.constant 0 : index
    %295 = vector.load %arg12[%c1_122, %c0_123, %c0_124] : memref<2x128x128xbf16, #tpu.memory_space<vmem>>, vector<1x128x128xbf16>
    %296 = vector.shape_cast %295 : vector<1x128x128xbf16> to vector<128x128xbf16>
    %cst_125 = arith.constant dense<0.000000e+00> : vector<16x128xf32>
    %297 = tpu.matmul %294, %296, %cst_125 {dimension_numbers = #tpu.dot_dimension_numbers<[1], [0], [0], [1], [0, 0, 1, 1], [], []>} : vector<16x128xbf16>, vector<128x128xbf16>, vector<16x128xf32> -> vector<16x128xf32>
    %298 = arith.addf %191, %297 : vector<16x128xf32>
    %c1_126 = arith.constant 1 : index
    %c0_127 = arith.constant 0 : index
    %c0_128 = arith.constant 0 : index
    %299 = vector.load %arg13[%c1_126, %c0_127, %c0_128] : memref<2x1x128xf32, #tpu.memory_space<vmem>>, vector<1x1x128xf32>
    %300 = vector.shape_cast %299 : vector<1x1x128xf32> to vector<1x128xf32>
    %301 = vector.broadcast %300 : vector<1x128xf32> to vector<16x128xf32>
    %302 = arith.addf %298, %301 : vector<16x128xf32>
    %c1_129 = arith.constant 1 : index
    %c0_130 = arith.constant 0 : index
    %c0_131 = arith.constant 0 : index
    %303 = vector.load %arg16[%c1_129, %c0_130, %c0_131] : memref<2x1x128xf32, #tpu.memory_space<vmem>>, vector<1x1x128xf32>
    %304 = vector.shape_cast %303 : vector<1x1x128xf32> to vector<1x128xf32>
    %c1_132 = arith.constant 1 : index
    %c0_133 = arith.constant 0 : index
    %c0_134 = arith.constant 0 : index
    %305 = vector.load %arg17[%c1_132, %c0_133, %c0_134] : memref<2x1x128xf32, #tpu.memory_space<vmem>>, vector<1x1x128xf32>
    %306 = vector.shape_cast %305 : vector<1x1x128xf32> to vector<1x128xf32>
    %cst_135 = arith.constant dense<0.000000e+00> : vector<16xf32>
    %307 = vector.multi_reduction <add>, %302, %cst_135 [1] : vector<16x128xf32> to vector<16xf32>
    %308 = vector.shape_cast %307 : vector<16xf32> to vector<16x1xf32>
    %cst_136 = arith.constant 1.280000e+02 : f32
    %309 = vector.broadcast %cst_136 : f32 to vector<16x1xf32>
    %310 = arith.divf %308, %309 : vector<16x1xf32>
    %311 = vector.broadcast %310 : vector<16x1xf32> to vector<16x128xf32>
    %312 = arith.subf %302, %311 : vector<16x128xf32>
    %313 = arith.mulf %312, %312 : vector<16x128xf32>
    %cst_137 = arith.constant dense<0.000000e+00> : vector<16xf32>
    %314 = vector.multi_reduction <add>, %313, %cst_137 [1] : vector<16x128xf32> to vector<16xf32>
    %315 = vector.shape_cast %314 : vector<16xf32> to vector<16x1xf32>
    %cst_138 = arith.constant 1.280000e+02 : f32
    %316 = vector.broadcast %cst_138 : f32 to vector<16x1xf32>
    %317 = arith.divf %315, %316 : vector<16x1xf32>
    %318 = vector.broadcast %310 : vector<16x1xf32> to vector<16x128xf32>
    %319 = arith.subf %302, %318 : vector<16x128xf32>
    %cst_139 = arith.constant 9.99999974E-6 : f32
    %320 = vector.broadcast %cst_139 : f32 to vector<16x1xf32>
    %321 = arith.addf %317, %320 : vector<16x1xf32>
    %322 = math.rsqrt %321 : vector<16x1xf32>
    %323 = vector.broadcast %322 : vector<16x1xf32> to vector<16x128xf32>
    %324 = arith.mulf %319, %323 : vector<16x128xf32>
    %325 = vector.broadcast %304 : vector<1x128xf32> to vector<16x128xf32>
    %326 = arith.mulf %324, %325 : vector<16x128xf32>
    %327 = vector.broadcast %306 : vector<1x128xf32> to vector<16x128xf32>
    %328 = arith.addf %326, %327 : vector<16x128xf32>
    %329 = arith.truncf %328 : vector<16x128xf32> to vector<16x128xbf16>
    %c1_140 = arith.constant 1 : index
    %c0_141 = arith.constant 0 : index
    %c0_142 = arith.constant 0 : index
    %330 = vector.load %arg18[%c1_140, %c0_141, %c0_142] : memref<2x128x256xbf16, #tpu.memory_space<vmem>>, vector<1x128x256xbf16>
    %331 = vector.shape_cast %330 : vector<1x128x256xbf16> to vector<128x256xbf16>
    %cst_143 = arith.constant dense<0.000000e+00> : vector<16x256xf32>
    %332 = tpu.matmul %329, %331, %cst_143 {dimension_numbers = #tpu.dot_dimension_numbers<[1], [0], [0], [1], [0, 0, 1, 1], [], []>} : vector<16x128xbf16>, vector<128x256xbf16>, vector<16x256xf32> -> vector<16x256xf32>
    %c1_144 = arith.constant 1 : index
    %c0_145 = arith.constant 0 : index
    %c0_146 = arith.constant 0 : index
    %333 = vector.load %arg19[%c1_144, %c0_145, %c0_146] : memref<2x1x256xf32, #tpu.memory_space<vmem>>, vector<1x1x256xf32>
    %334 = vector.shape_cast %333 : vector<1x1x256xf32> to vector<1x256xf32>
    %335 = vector.broadcast %334 : vector<1x256xf32> to vector<16x256xf32>
    %336 = arith.addf %332, %335 : vector<16x256xf32>
    %cst_147 = arith.constant 1.702000e+00 : f32
    %337 = vector.broadcast %cst_147 : f32 to vector<16x256xf32>
    %338 = arith.mulf %337, %336 : vector<16x256xf32>
    %339 = arith.negf %338 : vector<16x256xf32>
    %340 = math.exp %339 : vector<16x256xf32>
    %cst_148 = arith.constant 1.000000e+00 : f32
    %341 = vector.broadcast %cst_148 : f32 to vector<16x256xf32>
    %342 = arith.addf %341, %340 : vector<16x256xf32>
    %343 = arith.divf %341, %342 : vector<16x256xf32>
    %344 = arith.mulf %336, %343 : vector<16x256xf32>
    %345 = arith.truncf %344 : vector<16x256xf32> to vector<16x256xbf16>
    %c1_149 = arith.constant 1 : index
    %c0_150 = arith.constant 0 : index
    %c0_151 = arith.constant 0 : index
    %346 = vector.load %arg20[%c1_149, %c0_150, %c0_151] : memref<2x256x128xbf16, #tpu.memory_space<vmem>>, vector<1x256x128xbf16>
    %347 = vector.shape_cast %346 : vector<1x256x128xbf16> to vector<256x128xbf16>
    %cst_152 = arith.constant dense<0.000000e+00> : vector<16x128xf32>
    %348 = tpu.matmul %345, %347, %cst_152 {dimension_numbers = #tpu.dot_dimension_numbers<[1], [0], [0], [1], [0, 0, 1, 1], [], []>} : vector<16x256xbf16>, vector<256x128xbf16>, vector<16x128xf32> -> vector<16x128xf32>
    %349 = arith.addf %302, %348 : vector<16x128xf32>
    %c1_153 = arith.constant 1 : index
    %c0_154 = arith.constant 0 : index
    %c0_155 = arith.constant 0 : index
    %350 = vector.load %arg21[%c1_153, %c0_154, %c0_155] : memref<2x1x128xf32, #tpu.memory_space<vmem>>, vector<1x1x128xf32>
    %351 = vector.shape_cast %350 : vector<1x1x128xf32> to vector<1x128xf32>
    %352 = vector.broadcast %351 : vector<1x128xf32> to vector<16x128xf32>
    %353 = arith.addf %349, %352 : vector<16x128xf32>
    %c0_156 = arith.constant 0 : index
    %c0_157 = arith.constant 0 : index
    %354 = vector.load %arg22[%c0_156, %c0_157] : memref<16x128xf32, #tpu.memory_space<vmem>>, vector<16x128xf32>
    tpu.vector_store %arg22[%c0_156, %c0_157], %353 {strides = array<i32>} : memref<16x128xf32, #tpu.memory_space<vmem>>, vector<16x128xf32>,
    return
  }
}

</mosaic_0001>

<bundles_post_ra>
// kernel: tpu_custom_call.1
= control target key start
LH: loop header
LB: loop body
LE: loop exit
PB: predicated region body
PF: predicated region fallthrough
CT: control target
= control target key end

     0   :  { %s5194_s0 = inlined_call_operand.hbm [shape: bf16[16,192], index: 0, kind: input, shape index: {}]   ;;  %s5195_s1 = inlined_call_operand.hbm [shape: bf16[192,128], index: 1, kind: input, shape index: {}]   ;;  %s5196_s2 = inlined_call_operand.hbm [shape: f32[16,128], index: 2, kind: input, shape index: {}]   ;;  %s5197_s3 = inlined_call_operand.hbm [shape: f32[1,128], index: 3, kind: input, shape index: {}]   ;;  %s5198_s4 = inlined_call_operand.hbm [shape: f32[1,128], index: 4, kind: input, shape index: {}]   ;;  %s5199_s5 = inlined_call_operand.vmem [shape: f32[1,16,16], index: 5, kind: input, shape index: {}]   ;;  %s5200_s6 = inlined_call_operand.hbm [shape: bf16[2,128,128], index: 6, kind: input, shape index: {}]   ;;  %s5201_s7 = inlined_call_operand.vmem [shape: f32[2,1,128], index: 7, kind: input, shape index: {}]   ;;  %s5202_s8 = inlined_call_operand.hbm [shape: bf16[2,128,128], index: 8, kind: input, shape index: {}]   ;;  %s5203_s9 = inlined_call_operand.vmem [shape: f32[2,1,128], index: 9, kind: input, shape index: {}]   ;;  %s5204_s10 = inlined_call_operand.hbm [shape: bf16[2,128,128], index: 10, kind: input, shape index: {}]   ;;  %s5205_s11 = inlined_call_operand.vmem [shape: f32[2,1,128], index: 11, kind: input, shape index: {}]   ;;  %s5206_s12 = inlined_call_operand.hbm [shape: bf16[2,128,128], index: 12, kind: input, shape index: {}]   ;;  %s5207_s13 = inlined_call_operand.vmem [shape: f32[2,1,128], index: 13, kind: input, shape index: {}]   ;;  %s5208_s14 = inlined_call_operand.vmem [shape: f32[2,1,128], index: 14, kind: input, shape index: {}]   ;;  %s5209_s15 = inlined_call_operand.vmem [shape: f32[2,1,128], index: 15, kind: input, shape index: {}]   ;;  %s5210_s16 = inlined_call_operand.vmem [shape: f32[2,1,128], index: 16, kind: input, shape index: {}]   ;;  %s5211_s17 = inlined_call_operand.vmem [shape: f32[2,1,128], index: 17, kind: input, shape index: {}]   ;;  %s5212_s18 = inlined_call_operand.hbm [shape: bf16[2,128,256], index: 18, kind: input, shape index: {}]   ;;  %s5213_s19 = inlined_call_operand.vmem [shape: f32[2,1,256], index: 19, kind: input, shape index: {}]   ;;  %s5214_s20 = inlined_call_operand.hbm [shape: bf16[2,256,128], index: 20, kind: input, shape index: {}]   ;;  %s5215_s21 = inlined_call_operand.vmem [shape: f32[2,1,128], index: 21, kind: input, shape index: {}]   ;;  %s5216_s22 = inlined_call_operand.hbm [shape: f32[16,128], index: 22, kind: output, shape index: {}]  }
   0x1   :  { %5227 = sst [smem:[#allocation28_spill]] %s5194_s0 }
   0x2   :  { %5228 = sst [smem:[#allocation29_spill]] %s5195_s1 }
   0x3   :  { %5229 = sst [smem:[#allocation30_spill]] %s5196_s2 }
   0x4   :  { %5230 = sst [smem:[#allocation31_spill]] %s5197_s3 }
   0x5   :  { %5231 = sst [smem:[#allocation32_spill]] %s5198_s4 }
   0x6   :  { %5232 = sst [smem:[#allocation33_spill]] %s5199_s5 }
   0x7   :  { %5233 = sst [smem:[#allocation34_spill]] %s5200_s6 }
   0x8   :  { %5234 = sst [smem:[#allocation35_spill]] %s5213_s19 }
   0x9   :  { %5235 = sst [smem:[#allocation36_spill]] %s5215_s21 }
   0xa   :  { %5236 = sst [smem:[#allocation37_spill]] %s5216_s22 }
   0xb   :  { %27 = vsyncpa [#allocation3], 0 }
   0xc   :  { %28 = vsyncpa [#allocation6], 0 }
   0xd   :  { %29 = vsyncpa [#allocation9], 0 }
   0xe   :  { %30 = vsyncpa [#allocation12], 0 }
   0xf   :  { %31 = vsyncpa [#allocation15], 0 }
  0x10   :  { %32 = vsyncpa [#allocation18], 0 }
  0x11   :  { %33 = vsyncpa [#allocation4], 0  ;;  %s4491_s3 = smov [#allocation5]   ;;  %s5237_s4 = sld [smem:[#allocation29_spill]] }
  0x12   :  { %s51_s28 = sshll.u32 %s4491_s3, 4  ;;  %s52_s28 = int_to_ptr.vmem [resolvable:$true] %s51_s28 }
  0x17   :  { %s4213_s0 = scalar_lea.hbm %s5237_s4, 1536 }
  0x18   :  { %p4214_p0 = scmp.ne.s32.totalorder %s5237_s4, %s4213_s0  ;;  %p4217_p1 = scmp.lt.u32.totalorder %s4213_s0, %s5237_s4 }
  0x1a   :  { %p4219_p2 = pnand %p4217_p1, %p4214_p0 }
  0x1c   :  { %4222 = shalt.err (!%p4219_p2)
}
  0x1d   :  { %s4223_s6 = scalar_lea.vmem %s52_s28, 1536  ;;  %p4228_p4 = scmp.lt.s32.totalorder %s52_s28, %s52_s28 }
  0x1e   :  { %p4224_p3 = scmp.ne.s32.totalorder %s52_s28, %s4223_s6  ;;  %p4229_p5 = scmp.lt.s32.totalorder %s4223_s6, %s4223_s6 }
  0x20   :  { %p4230_p6 = por %p4229_p5, %p4228_p4 }
  0x22   :  { %p4231_p7 = pnand %p4230_p6, %p4224_p3 }
  0x24   :  { %4234 = shalt.err (!%p4231_p7)
}
  0x25   :  { %s4492_s25 = smov 64   ;;  %s4493_s26 = smov 4  }
  0x26   :  { %57 = dma.hbm_to_vmem [thread:$0]  %s5237_s4, 1536, %s52_s28, [#allocation6], %s4492_s25, %s4492_s25, %s4493_s26  }
  0x27   :  { %s4494_s3 = smov [#allocation8]   ;;  %s4495_s30 = smov [#allocation11]  }
  0x28   :  { %s76_s29 = sshll.u32 %s4494_s3, 4  ;;  %s97_s0 = sshll.u32 %s4495_s30, 4  ;;  %s77_s29 = int_to_ptr.vmem [resolvable:$true] %s76_s29  ;;  %s98_s0 = int_to_ptr.vmem [resolvable:$true] %s97_s0 }
  0x29   :  { %s5238_s5 = sld [smem:[#allocation31_spill]] }
  0x2f   :  { %s4235_s24 = scalar_lea.hbm %s5238_s5, 16 }
  0x30   :  { %p4236_p8 = scmp.ne.s32.totalorder %s5238_s5, %s4235_s24  ;;  %p4239_p9 = scmp.lt.u32.totalorder %s4235_s24, %s5238_s5 }
  0x32   :  { %p4241_p10 = pnand %p4239_p9, %p4236_p8 }
  0x34   :  { %4244 = shalt.err (!%p4241_p10)
}
  0x35   :  { %s4245_s28 = scalar_lea.vmem %s77_s29, 16  ;;  %s4249_s4 = scalar_lea.vmem %s77_s29, 32 }
  0x36   :  { %p4246_p11 = scmp.ne.s32.totalorder %s77_s29, %s4245_s28  ;;  %p4250_p12 = scmp.lt.s32.totalorder %s77_s29, %s77_s29 }
  0x37   :  { %p4251_p13 = scmp.lt.s32.totalorder %s4249_s4, %s4245_s28 }
  0x39   :  { %p4252_p0 = por %p4251_p13, %p4250_p12 }
  0x3b   :  { %p4253_p1 = pnand %p4252_p0, %p4246_p11 }
  0x3d   :  { %4256 = shalt.err (!%p4253_p1)
}
  0x3e   :  { %79 = dma.hbm_to_vmem [thread:$0]  %s5238_s5, 16, %s77_s29, [#allocation9]  }
  0x3f   :  { %s5239_s30 = sld [smem:[#allocation34_spill]] }
  0x45   :  { %s4257_s19 = scalar_lea.hbm %s5239_s30, 2048 }
  0x46   :  { %p4258_p2 = scmp.ne.s32.totalorder %s5239_s30, %s4257_s19  ;;  %p4261_p3 = scmp.lt.u32.totalorder %s4257_s19, %s5239_s30 }
  0x48   :  { %p4263_p4 = pnand %p4261_p3, %p4258_p2 }
  0x4a   :  { %4266 = shalt.err (!%p4263_p4)
}
  0x4b   :  { %s4267_s6 = scalar_lea.vmem %s98_s0, 2048  ;;  %p4272_p6 = scmp.lt.s32.totalorder %s98_s0, %s98_s0 }
  0x4c   :  { %p4268_p5 = scmp.ne.s32.totalorder %s98_s0, %s4267_s6  ;;  %p4273_p7 = scmp.lt.s32.totalorder %s4267_s6, %s4267_s6 }
  0x4e   :  { %p4274_p8 = por %p4273_p7, %p4272_p6 }
  0x50   :  { %p4275_p9 = pnand %p4274_p8, %p4268_p5 }
  0x52   :  { %4278 = shalt.err (!%p4275_p9)
}
  0x53   :  { %103 = dma.hbm_to_vmem [thread:$0]  %s5239_s30, 2048, %s98_s0, [#allocation12], %s4492_s25, %s4492_s25, %s4493_s26  }
  0x54   :  { %s4496_s28 = smov [#allocation14]   ;;  %s4279_s22 = scalar_lea.hbm %s5204_s10, 2048 }
  0x55   :  { %s125_s4 = sshll.u32 %s4496_s28, 4  ;;  %p4280_p10 = scmp.ne.s32.totalorder %s5204_s10, %s4279_s22  ;;  %s126_s4 = int_to_ptr.vmem [resolvable:$true] %s125_s4 }
  0x56   :  { %p4283_p11 = scmp.lt.u32.totalorder %s4279_s22, %s5204_s10 }
  0x58   :  { %p4285_p12 = pnand %p4283_p11, %p4280_p10 }
  0x5a   :  { %4288 = shalt.err (!%p4285_p12)
}
  0x5b   :  { %s4289_s1 = scalar_lea.vmem %s126_s4, 2048  ;;  %p4294_p0 = scmp.lt.s32.totalorder %s126_s4, %s126_s4 }
  0x5c   :  { %p4290_p13 = scmp.ne.s32.totalorder %s126_s4, %s4289_s1  ;;  %p4295_p1 = scmp.lt.s32.totalorder %s4289_s1, %s4289_s1 }
  0x5e   :  { %p4296_p2 = por %p4295_p1, %p4294_p0 }
  0x60   :  { %p4297_p3 = pnand %p4296_p2, %p4290_p13 }
  0x62   :  { %4300 = shalt.err (!%p4297_p3)
}
  0x63   :  { %131 = dma.hbm_to_vmem [thread:$0]  %s5204_s10, 2048, %s126_s4, [#allocation15], %s4492_s25, %s4492_s25, %s4493_s26  }
  0x64   :  { %s4497_s24 = smov [#allocation17]   ;;  %s4498_s29 = smov [#allocation2]  }
  0x65   :  { %s161_s6 = sshll.u32 %s4497_s24, 4  ;;  %s39_s5 = sshll.u32 %s4498_s29, 4  ;;  %s162_s6 = int_to_ptr.vmem [resolvable:$true] %s161_s6  ;;  %s4684_s5 = int_to_ptr.vmem [resolvable:$true] %s39_s5 }
  0x66   :  { %s4301_s27 = scalar_lea.hbm %s5212_s18, 4096 }
  0x67   :  { %p4302_p4 = scmp.ne.s32.totalorder %s5212_s18, %s4301_s27  ;;  %p4305_p5 = scmp.lt.u32.totalorder %s4301_s27, %s5212_s18 }
  0x69   :  { %p4307_p6 = pnand %p4305_p5, %p4302_p4 }
  0x6b   :  { %4310 = shalt.err (!%p4307_p6)
}
  0x6c   :  { %s4311_s10 = scalar_lea.vmem %s162_s6, 4096  ;;  %p4316_p8 = scmp.lt.s32.totalorder %s162_s6, %s162_s6 }
  0x6d   :  { %p4312_p7 = scmp.ne.s32.totalorder %s162_s6, %s4311_s10  ;;  %p4317_p9 = scmp.lt.s32.totalorder %s4311_s10, %s4311_s10 }
  0x6f   :  { %p4318_p10 = por %p4317_p9, %p4316_p8 }
  0x71   :  { %p4319_p11 = pnand %p4318_p10, %p4312_p7 }
  0x73   :  { %4322 = shalt.err (!%p4319_p11)
}
  0x74   :  { %s4499_s4 = smov 128   ;;  %s4500_s23 = smov 8  }
  0x75   :  { %167 = dma.hbm_to_vmem [thread:$0]  %s5212_s18, 4096, %s162_s6, [#allocation18], %s4499_s4, %s4499_s4, %s4500_s23  }
  0x76   :  { %s5240_s29 = sld [smem:[#allocation28_spill]] }
  0x7c   :  { %s4323_s28 = scalar_lea.hbm %s5240_s29, 256 }
  0x7d   :  { %p4324_p12 = scmp.ne.s32.totalorder %s5240_s29, %s4323_s28  ;;  %p4327_p13 = scmp.lt.u32.totalorder %s4323_s28, %s5240_s29 }
  0x7f   :  { %p4329_p0 = pnand %p4327_p13, %p4324_p12 }
  0x81   :  { %4332 = shalt.err (!%p4329_p0)
}
  0x82   :  { %s4333_s19 = scalar_lea.vmem %s4684_s5, 256  ;;  %p4338_p2 = scmp.lt.s32.totalorder %s4684_s5, %s4684_s5 }
  0x83   :  { %p4334_p1 = scmp.ne.s32.totalorder %s4684_s5, %s4333_s19  ;;  %p4339_p3 = scmp.lt.s32.totalorder %s4333_s19, %s4333_s19 }
  0x85   :  { %p4340_p4 = por %p4339_p3, %p4338_p2 }
  0x87   :  { %p4341_p5 = pnand %p4340_p4, %p4334_p1 }
  0x89   :  { %4344 = shalt.err (!%p4341_p5)
}
  0x8a   :  { %45 = dma.hbm_to_vmem [thread:$0]  %s5240_s29, 256, %s4684_s5, [#allocation3], %s4499_s4, %s4499_s4, %s4500_s23  }
  0x8b   :  { %s4501_s21 = smov [#allocation7]   ;;  %s4502_s1 = smov [#allocation10]  }
  0x8c   :  { %s63_s10 = sshll.u32 %s4501_s21, 4  ;;  %s86_s0 = sshll.u32 %s4502_s1, 4  ;;  %s64_s10 = int_to_ptr.vmem [resolvable:$true] %s63_s10  ;;  %s87_s0 = int_to_ptr.vmem [resolvable:$true] %s86_s0 }
  0x8d   :  { %s5241_s28 = sld [smem:[#allocation30_spill]] }
  0x93   :  { %s4345_s2 = scalar_lea.hbm %s5241_s28, 256 }
  0x94   :  { %p4346_p6 = scmp.ne.s32.totalorder %s5241_s28, %s4345_s2  ;;  %p4349_p7 = scmp.lt.u32.totalorder %s4345_s2, %s5241_s28 }
  0x96   :  { %p4351_p8 = pnand %p4349_p7, %p4346_p6 }
  0x98   :  { %4354 = shalt.err (!%p4351_p8)
}
  0x99   :  { %s4355_s5 = scalar_lea.vmem %s64_s10, 256  ;;  %p4360_p10 = scmp.lt.s32.totalorder %s64_s10, %s64_s10 }
  0x9a   :  { %p4356_p9 = scmp.ne.s32.totalorder %s64_s10, %s4355_s5  ;;  %p4361_p11 = scmp.lt.s32.totalorder %s4355_s5, %s4355_s5 }
  0x9c   :  { %p4362_p12 = por %p4361_p11, %p4360_p10 }
  0x9e   :  { %p4363_p13 = pnand %p4362_p12, %p4356_p9 }
  0xa0   :  { %4366 = shalt.err (!%p4363_p13)
}
  0xa1   :  { %69 = dma.hbm_to_vmem [thread:$0]  %s5241_s28, 256, %s64_s10, [#allocation6], %s4499_s4, %s4499_s4, %s4500_s23  }
  0xa2   :  { %s5242_s1 = sld [smem:[#allocation32_spill]] }
  0xa8   :  { %s4367_s30 = scalar_lea.hbm %s5242_s1, 16 }
  0xa9   :  { %p4368_p0 = scmp.ne.s32.totalorder %s5242_s1, %s4367_s30  ;;  %p4371_p1 = scmp.lt.u32.totalorder %s4367_s30, %s5242_s1 }
  0xab   :  { %p4373_p2 = pnand %p4371_p1, %p4368_p0 }
  0xad   :  { %4376 = shalt.err (!%p4373_p2)
}
  0xae   :  { %s4377_s3 = scalar_lea.vmem %s87_s0, 16  ;;  %s4381_s19 = scalar_lea.vmem %s87_s0, 32 }
  0xaf   :  { %p4378_p3 = scmp.ne.s32.totalorder %s87_s0, %s4377_s3  ;;  %p4382_p4 = scmp.lt.s32.totalorder %s87_s0, %s87_s0 }
  0xb0   :  { %p4383_p5 = scmp.lt.s32.totalorder %s4381_s19, %s4377_s3 }
  0xb2   :  { %p4384_p6 = por %p4383_p5, %p4382_p4 }
  0xb4   :  { %p4385_p7 = pnand %p4384_p6, %p4378_p3 }
  0xb6   :  { %4388 = shalt.err (!%p4385_p7)
}
  0xb7   :  { %89 = dma.hbm_to_vmem [thread:$0]  %s5242_s1, 16, %s87_s0, [#allocation9]  }
  0xb8   :  { %s4503_s5 = smov [#allocation13]   ;;  %s4504_s18 = smov [#allocation16]  }
  0xb9   :  { %s111_s29 = sshll.u32 %s4503_s5, 4  ;;  %s139_s6 = sshll.u32 %s4504_s18, 4  ;;  %s112_s29 = int_to_ptr.vmem [resolvable:$true] %s111_s29  ;;  %s4748_s6 = int_to_ptr.vmem [resolvable:$true] %s139_s6 }
  0xba   :  { %s4389_s24 = scalar_lea.hbm %s5202_s8, 2048 }
  0xbb   :  { %p4390_p8 = scmp.ne.s32.totalorder %s5202_s8, %s4389_s24  ;;  %p4393_p9 = scmp.lt.u32.totalorder %s4389_s24, %s5202_s8 }
  0xbd   :  { %p4395_p10 = pnand %p4393_p9, %p4390_p8 }
  0xbf   :  { %4398 = shalt.err (!%p4395_p10)
}
  0xc0   :  { %s4399_s0 = scalar_lea.vmem %s112_s29, 2048  ;;  %p4404_p12 = scmp.lt.s32.totalorder %s112_s29, %s112_s29 }
  0xc1   :  { %p4400_p11 = scmp.ne.s32.totalorder %s112_s29, %s4399_s0  ;;  %p4405_p13 = scmp.lt.s32.totalorder %s4399_s0, %s4399_s0 }
  0xc3   :  { %p4406_p0 = por %p4405_p13, %p4404_p12 }
  0xc5   :  { %p4407_p1 = pnand %p4406_p0, %p4400_p11 }
  0xc7   :  { %4410 = shalt.err (!%p4407_p1)
}
  0xc8   :  { %117 = dma.hbm_to_vmem [thread:$0]  %s5202_s8, 2048, %s112_s29, [#allocation12], %s4492_s25, %s4492_s25, %s4493_s26  }
  0xc9   :  { %s4411_s5 = scalar_lea.hbm %s5206_s12, 2048 }
  0xca   :  { %p4412_p2 = scmp.ne.s32.totalorder %s5206_s12, %s4411_s5  ;;  %p4415_p3 = scmp.lt.u32.totalorder %s4411_s5, %s5206_s12 }
  0xcc   :  { %p4417_p4 = pnand %p4415_p3, %p4412_p2 }
  0xce   :  { %4420 = shalt.err (!%p4417_p4)
}
  0xcf   :  { %s4421_s2 = scalar_lea.vmem %s4748_s6, 2048  ;;  %p4426_p6 = scmp.lt.s32.totalorder %s4748_s6, %s4748_s6 }
  0xd0   :  { %p4422_p5 = scmp.ne.s32.totalorder %s4748_s6, %s4421_s2  ;;  %p4427_p7 = scmp.lt.s32.totalorder %s4421_s2, %s4421_s2 }
  0xd2   :  { %p4428_p8 = por %p4427_p7, %p4426_p6 }
  0xd4   :  { %p4429_p9 = pnand %p4428_p8, %p4422_p5 }
  0xd6   :  { %4432 = shalt.err (!%p4429_p9)
}
  0xd7   :  { %145 = dma.hbm_to_vmem [thread:$0]  %s5206_s12, 2048, %s4748_s6, [#allocation15], %s4492_s25, %s4492_s25, %s4493_s26  }
  0xd8   :  { %s4505_s27 = smov [#allocation19]   ;;  %s4433_s1 = scalar_lea.hbm %s5214_s20, 4096 }
  0xd9   :  { %s175_s22 = sshll.u32 %s4505_s27, 4  ;;  %p4434_p10 = scmp.ne.s32.totalorder %s5214_s20, %s4433_s1  ;;  %s176_s22 = int_to_ptr.vmem [resolvable:$true] %s175_s22 }
  0xda   :  { %p4437_p11 = scmp.lt.u32.totalorder %s4433_s1, %s5214_s20 }
  0xdc   :  { %p4439_p12 = pnand %p4437_p11, %p4434_p10 }
  0xde   :  { %4442 = shalt.err (!%p4439_p12)
}
  0xdf   :  { %s4443_s18 = scalar_lea.vmem %s176_s22, 4096  ;;  %p4448_p0 = scmp.lt.s32.totalorder %s176_s22, %s176_s22 }
  0xe0   :  { %p4444_p13 = scmp.ne.s32.totalorder %s176_s22, %s4443_s18  ;;  %p4449_p1 = scmp.lt.s32.totalorder %s4443_s18, %s4443_s18 }
  0xe2   :  { %p4450_p2 = por %p4449_p1, %p4448_p0 }
  0xe4   :  { %p4451_p3 = pnand %p4450_p2, %p4444_p13 }
  0xe6   :  { %4454 = shalt.err (!%p4451_p3)
}
  0xe7   :  { %181 = dma.hbm_to_vmem [thread:$0]  %s5214_s20, 4096, %s176_s22, [#allocation18], %s4492_s25, %s4492_s25, %s4493_s26  }
  0xe8   :  { %4477 = dma.done.wait [#allocation3], 256  }
  0xe9   :  { %4478 = vsyncadd [#allocation3], 4294967040 }
  0xea   :  { %4479 = dma.done.wait [#allocation6], 1792  }
  0xeb   :  { %4480 = vsyncadd [#allocation6], 4294965504 }
  0xec   :  { %4481 = dma.done.wait [#allocation9], 32  }
  0xed   :  { %4482 = vsyncadd [#allocation9], 4294967264 }
  0xee   :  { %4483 = dma.done.wait [#allocation12], 4096  }
  0xef   :  { %4484 = vsyncadd [#allocation12], 4294963200 }
  0xf0   :  { %4485 = dma.done.wait [#allocation15], 4096  }
  0xf1   :  { %4486 = vsyncadd [#allocation15], 4294963200 }
  0xf2   :  { %4487 = dma.done.wait [#allocation18], 8192  }
  0xf3   :  { %4488 = vsyncadd [#allocation18], 4294959104  ;;  %v4506_v0 = vmov 0   ;;  %v3936_v1 = vld [vmem:[#allocation5] sm:$0xff]   ;;  %v3937_v2 = vld [vmem:[#allocation5 + $0x8] sm:$0xff]   ;;  %vm327_vm0 = vcmask 523264  }
  0xf4   :  { %331 = vmatprep.subr.bf16.mxu0 %v4506_v0  ;;  %v3938_v3 = vld [vmem:[#allocation5 + $0x10] sm:$0xff]   ;;  %v3939_v4 = vld [vmem:[#allocation5 + $0x18] sm:$0xff]   ;;  %v3940_v5 = vld [vmem:[#allocation5 + $0x20] sm:$0xff]   ;;  %v4507_v49 = vmov 0.0   ;;  %vm4508_vm1 = vmmov 0   ;;  %s4509_s27 = smov 96  }
  0xf5   :  { %332 = vmatpush1.bf16.msra.mxu0 %v3936_v1  ;;  %v3950_v6 = vld [vmem:[#allocation2 + $0x4] ss:$8 sps:$4 sm:$0xff]   ;;  %v3941_v7 = vld [vmem:[#allocation5 + $0x28] sm:$0xff]   ;;  %v3944_v10 = vld [vmem:[#allocation5 + $0x40] sm:$0xff]   ;;  %3629 = vmatprep.subr.bf16.mxu1 %v4507_v49  ;;  %vm819_vm2 = vcmask 261120   ;;  %s4510_s0 = smov 32  }
  0xf6   :  { %333 = vmatprep.subr.bf16.mxu0 %v4506_v0  ;;  %3298 = vmatprep.mubr.msk.bf16.mxu0 %vm327_vm0, %v3950_v6  ;;  %v3942_v8 = vld [vmem:[#allocation5 + $0x30] sm:$0xff]   ;;  %v3943_v9 = vld [vmem:[#allocation5 + $0x38] sm:$0xff]   ;;  %v3945_v11 = vld [vmem:[#allocation5 + $0x48] sm:$0xff]   ;;  %s5243_s10 = sld [smem:[#allocation33_spill]]  ;;  %vm1008_vm3 = vcmask 130048   ;;  %vm1305_vm4 = vcmask 785408  }
  0xf7   :  { %v3946_v12 = vld [vmem:[#allocation5 + $0x50] sm:$0xff]   ;;  %v3947_v13 = vld [vmem:[#allocation5 + $0x58] sm:$0xff]   ;;  %v244_v15 = vld [vmem:[#allocation7] sm:$0xff]  ;;  %3645 = vmatprep.mubr.msk.bf16.mxu1 %vm4508_vm1, %v4507_v49  ;;  %s5244_s2 = sld [smem:[#allocation35_spill]]  ;;  %s5245_s22 = sld [smem:[#allocation36_spill]] }
  0xf8   :  { %v3948_v14 = vld [vmem:[#allocation2] ss:$8 sps:$4 sm:$0xff]   ;;  %v245_v19 = vld [vmem:[#allocation7 + $0x8] sm:$0xff]  ;;  %v3953_v50 = vld [vmem:[#allocation11 + $0x8] sm:$0xff]   ;;  %s4511_s24 = smov [#allocation20]  }
  0xf9   :  { %334 = vmatpush1.bf16.msra.mxu0 %v3937_v2  ;;  %v3299_v38 = vld [vmem:[#allocation8] ss:$0 sm:$0xff]  ;;  %v3300_v40 = vld [vmem:[#allocation10] ss:$0 sm:$0xff]  ;;  %v3951_v47 = vld [vmem:[#allocation11] sm:$0xff]  }
  0xfa   :  { %335 = vmatprep.subr.bf16.mxu0 %v4506_v0  ;;  %v3952_v48 = vld [vmem:[#allocation14] sm:$0xff]   ;;  %3630 = vmatpush3.bf16.msra.mxu1 %v3951_v47  ;;  %v3954_v59 = vld [vmem:[#allocation14 + $0x8] sm:$0xff]   ;;  %v3955_v60 = vld [vmem:[#allocation11 + $0x10] sm:$0xff]  }
  0xfb   :  { %3631 = vmatprep.subr.bf16.mxu1 %v4507_v49  ;;  %v3956_v61 = vld [vmem:[#allocation14 + $0x10] sm:$0xff]   ;;  %v3957_v62 = vld [vmem:[#allocation11 + $0x18] sm:$0xff]   ;;  %v3959_v1 = vld [vmem:[#allocation11 + $0x20] sm:$0xff]  }
  0xfc   :  { %v3958_v63 = vld [vmem:[#allocation14 + $0x18] sm:$0xff]   ;;  %v3960_v2 = vld [vmem:[#allocation14 + $0x20] sm:$0xff]   ;;  %v3964_v6 = vld [vmem:[#allocation14 + $0x30] sm:$0xff]  }
  0xfd   :  { %336 = vmatpush1.bf16.msra.mxu0 %v3938_v3  ;;  %v3961_v3 = vld [vmem:[#allocation11 + $0x28] sm:$0xff]  }
  0xfe   :  { %337 = vmatprep.subr.bf16.mxu0 %v4506_v0  ;;  %3632 = vmatpush3.bf16.msra.mxu1 %v3953_v50 }
  0xff   :  { %3633 = vmatprep.subr.bf16.mxu1 %v4507_v49 }
 0x101   :  { %338 = vmatpush1.bf16.msra.mxu0 %v3939_v4  ;;  %v3962_v4 = vld [vmem:[#allocation14 + $0x28] sm:$0xff]  }
 0x102   :  { %339 = vmatprep.subr.bf16.mxu0 %v4506_v0  ;;  %3634 = vmatpush3.bf16.msra.mxu1 %v3955_v60 }
 0x103   :  { %3635 = vmatprep.subr.bf16.mxu1 %v4507_v49 }
 0x105   :  { %340 = vmatpush1.bf16.msra.mxu0 %v3940_v5  ;;  %v3963_v5 = vld [vmem:[#allocation11 + $0x30] sm:$0xff]  }
 0x106   :  { %341 = vmatprep.subr.bf16.mxu0 %v4506_v0  ;;  %3636 = vmatpush3.bf16.msra.mxu1 %v3957_v62 }
 0x107   :  { %3637 = vmatprep.subr.bf16.mxu1 %v4507_v49 }
 0x109   :  { %342 = vmatpush1.bf16.msra.mxu0 %v3941_v7  ;;  %v3965_v7 = vld [vmem:[#allocation11 + $0x38] sm:$0xff]  }
 0x10a   :  { %343 = vmatprep.subr.bf16.mxu0 %v4506_v0  ;;  %3638 = vmatpush3.bf16.msra.mxu1 %v3959_v1 }
 0x10b   :  { %3639 = vmatprep.subr.bf16.mxu1 %v4507_v49 }
 0x10d   :  { %344 = vmatpush1.bf16.msra.mxu0 %v3942_v8  ;;  %v3966_v8 = vld [vmem:[#allocation14 + $0x38] sm:$0xff]  }
 0x10e   :  { %345 = vmatprep.subr.bf16.mxu0 %v4506_v0  ;;  %3640 = vmatpush3.bf16.msra.mxu1 %v3961_v3 }
 0x10f   :  { %3641 = vmatprep.subr.bf16.mxu1 %v4507_v49 }
 0x111   :  { %346 = vmatpush1.bf16.msra.mxu0 %v3943_v9 }
 0x112   :  { %347 = vmatprep.subr.bf16.mxu0 %v4506_v0  ;;  %3642 = vmatpush3.bf16.msra.mxu1 %v3963_v5 }
 0x113   :  { %3643 = vmatprep.subr.bf16.mxu1 %v4507_v49 }
 0x115   :  { %348 = vmatpush1.bf16.msra.mxu0 %v3944_v10 }
 0x116   :  { %349 = vmatprep.subr.bf16.mxu0 %v4506_v0  ;;  %3644 = vmatpush3.bf16.msra.mxu1 %v3965_v7 }
 0x117   :  { %3649 = vmatprep.subr.bf16.mxu1 %v4507_v49 }
 0x119   :  { %350 = vmatpush1.bf16.msra.mxu0 %v3945_v11 }
 0x11a   :  { %351 = vmatprep.subr.bf16.mxu0 %v4506_v0 }
 0x11d   :  { %352 = vmatpush1.bf16.msra.mxu0 %v3946_v12 }
 0x11e   :  { %353 = vmatprep.subr.bf16.mxu0 %v4506_v0 }
 0x121   :  { %354 = vmatpush1.bf16.msra.mxu0 %v3947_v13 }
 0x122   :  { %3669 = vmatprep.subr.bf16.mxu0 %v4507_v49 }
 0x124   :  { %364 = vmatmul.mubr.bf16.vlgmr.msra.gmra.mrb[0].mxu0 %v3948_v14 }
 0x125   :  { %3670 = vmatpush3.bf16.msra.mxu0 %v3952_v48  ;;  %3685 = vmatprep.mubr.msk.bf16.mxu0 %vm4508_vm1, %v4507_v49 }
 0x126   :  { %3671 = vmatprep.subr.bf16.mxu0 %v4507_v49 }
 0x129   :  { %3672 = vmatpush3.bf16.msra.mxu0 %v3954_v59 }
 0x12a   :  { %3673 = vmatprep.subr.bf16.mxu0 %v4507_v49 }
 0x12d   :  { %3674 = vmatpush3.bf16.msra.mxu0 %v3956_v61 }
 0x12e   :  { %3675 = vmatprep.subr.bf16.mxu0 %v4507_v49 }
 0x131   :  { %3676 = vmatpush3.bf16.msra.mxu0 %v3958_v63 }
 0x132   :  { %3677 = vmatprep.subr.bf16.mxu0 %v4507_v49 }
 0x135   :  { %3678 = vmatpush3.bf16.msra.mxu0 %v3960_v2 }
 0x136   :  { %3679 = vmatprep.subr.bf16.mxu0 %v4507_v49 }
 0x139   :  { %3680 = vmatpush3.bf16.msra.mxu0 %v3962_v4 }
 0x13a   :  { %3681 = vmatprep.subr.bf16.mxu0 %v4507_v49 }
 0x13d   :  { %3682 = vmatpush3.bf16.msra.mxu0 %v3964_v6 }
 0x13e   :  { %3683 = vmatprep.subr.bf16.mxu0 %v4507_v49 }
 0x141   :  { %3684 = vmatpush3.bf16.msra.mxu0 %v3966_v8  ;;  %v413_v8 = vld [vmem:[%s5243_s10] sm:$0xff] }
 0x142   :  { %3725 = vmatprep.subr.bf16.mxu0 %v4507_v49 }
 0x1f7   :  { %v365_v16 = vpop.f32.mrb[0].mxu0 }
 0x1f8   :  { %v366_v17 = vadd.f32 %v365_v16, %v244_v15  ;;  %v367_v18 = vpop.f32.mrb[1].mxu0 }
 0x1f9   :  { %v368_v20 = vpop.f32.mrb[2].mxu0 }
 0x1fa   :  { %v370_v21 = vpop.f32.mrb[3].mxu0  ;;  %374 = vadd.xlane.f32.xlu0 %v366_v17  ;;  %v369_v22 = vadd.f32 %v368_v20, %v245_v19 }
 0x1fb   :  { %v3302_v21 = vld [vmem:[%s5209_s15] ss:$0 sm:$0xff] }
 0x1fe   :  { %376 = vadd.xlane.f32.xlu0 %v369_v22 }
 0x287   :  { %v375_v23 = vpop.xlane.xlu0 %374 }
 0x288   :  { %v379_v24 = vmul.f32 0.0078125, %v375_v23 }
 0x28a   :  { %v381_v25 = vsub.f32 %v366_v17, %v379_v24  ;;  %v3301_v17 = vld [vmem:[%s5208_s14] ss:$0 sm:$0xff] }
 0x28b   :  { %v377_v26 = vpop.xlane.xlu0 %376 }
 0x28c   :  { %v380_v27 = vmul.f32 0.0078125, %v377_v26  ;;  %v383_v28 = vmul.f32 %v381_v25, %v381_v25 }
 0x28e   :  { %v382_v29 = vsub.f32 %v369_v22, %v380_v27  ;;  %385 = vadd.xlane.f32.xlu1 %v383_v28  ;;  %v3968_v27 = vld [vmem:[#allocation13 + $0x8] sm:$0xff]   ;;  %v3969_v28 = vld [vmem:[#allocation13 + $0x10] sm:$0xff]  }
 0x290   :  { %v384_v30 = vmul.f32 %v382_v29, %v382_v29 }
 0x292   :  { %387 = vadd.xlane.f32.xlu1 %v384_v30  ;;  %v3971_v30 = vld [vmem:[#allocation13 + $0x20] sm:$0xff]  }
 0x31b   :  { %v386_v31 = vpop.xlane.xlu1 %385 }
 0x31c   :  { %v389_v32 = vmul.f32 0.0078125, %v386_v31  ;;  %v3972_v31 = vld [vmem:[#allocation13 + $0x28] sm:$0xff]  }
 0x31e   :  { %v391_v33 = vadd.f32 1e-05, %v389_v32  ;;  %v3973_v32 = vld [vmem:[#allocation13 + $0x30] sm:$0xff]  }
 0x31f   :  { %v388_v34 = vpop.xlane.xlu1 %387 }
 0x320   :  { %4095 = vrsqrt.f32 %v391_v33  ;;  %v390_v35 = vmul.f32 0.0078125, %v388_v34  ;;  %v3974_v33 = vld [vmem:[#allocation13 + $0x38] sm:$0xff]  }
 0x321   :  { %v3303_v34 = vld [vmem:[%s5201_s7] ss:$0 sm:$0xff] }
 0x322   :  { %v392_v36 = vadd.f32 1e-05, %v390_v35 }
 0x324   :  { %4097 = vrsqrt.f32 %v392_v36  ;;  %v3321_v36 = vld [vmem:[%s5205_s11] ss:$0 sm:$0xff] }
 0x32a   :  { %v4096_v37 = vpop.eup %4095 }
 0x32b   :  { %v395_v39 = vmul.f32 %v4096_v37, %v381_v25  ;;  %v3967_v25 = vld [vmem:[#allocation13] sm:$0xff]  }
 0x32d   :  { %v403_v41 = vmul.f32 %v3299_v38, %v395_v39 }
 0x32e   :  { %v4098_v42 = vpop.eup %4097 }
 0x32f   :  { %v4813_v43 = vadd.f32 %v3300_v40, %v403_v41  ;;  %v396_v44 = vmul.f32 %v4098_v42, %v382_v29  ;;  %v3970_v29 = vld [vmem:[#allocation13 + $0x18] sm:$0xff]  }
 0x331   :  { %417 = vadd.xlane.f32.xlu0 %v4813_v43  ;;  %v404_v45 = vmul.f32 %v3299_v38, %v396_v44 }
 0x333   :  { %v4816_v46 = vadd.f32 %v3300_v40, %v404_v45 }
 0x335   :  { %419 = vadd.xlane.f32.xlu1 %v4816_v46 }
 0x3be   :  { %v418_v51 = vpop.xlane.xlu0 %417 }
 0x3bf   :  { %v421_v52 = vmul.f32 0.0078125, %v418_v51 }
 0x3c1   :  { %v423_v53 = vsub.f32 %v4813_v43, %v421_v52 }
 0x3c2   :  { %v420_v54 = vpop.xlane.xlu1 %419 }
 0x3c3   :  { %v422_v55 = vmul.f32 0.0078125, %v420_v54  ;;  %v425_v56 = vmul.f32 %v423_v53, %v423_v53 }
 0x3c5   :  { %v424_v57 = vsub.f32 %v4816_v46, %v422_v55  ;;  %427 = vadd.xlane.f32.xlu0 %v425_v56 }
 0x3c7   :  { %v426_v58 = vmul.f32 %v424_v57, %v424_v57 }
 0x3c9   :  { %429 = vadd.xlane.f32.xlu1 %v426_v58 }
 0x452   :  { %v428_v9 = vpop.xlane.xlu0 %427 }
 0x453   :  { %v431_v10 = vmul.f32 0.0078125, %v428_v9 }
 0x455   :  { %v433_v11 = vadd.f32 1e-05, %v431_v10  ;;  %v414_v10 = vld [vmem:[%s5243_s10 + $0x8] sm:$0xff] }
 0x456   :  { %v430_v12 = vpop.xlane.xlu1 %429 }
 0x457   :  { %4099 = vrsqrt.f32 %v433_v11  ;;  %v432_v13 = vmul.f32 0.0078125, %v430_v12 }
 0x459   :  { %v434_v14 = vadd.f32 1e-05, %v432_v13 }
 0x45b   :  { %4101 = vrsqrt.f32 %v434_v14 }
 0x461   :  { %v4100_v15 = vpop.eup %4099 }
 0x462   :  { %v437_v16 = vmul.f32 %v4100_v15, %v423_v53  ;;  %v3312_v53 = vld [vmem:[%s5203_s9] ss:$0 sm:$0xff] }
 0x464   :  { %v445_v20 = vmul.f32 %v3301_v17, %v437_v16 }
 0x465   :  { %v4102_v18 = vpop.eup %4101 }
 0x466   :  { %v438_v19 = vmul.f32 %v4102_v18, %v424_v57  ;;  %v453_v23 = vadd.f32 %v3302_v21, %v445_v20 }
 0x468   :  { %v446_v22 = vmul.f32 %v3301_v17, %v438_v19 }
 0x46a   :  { %v454_v24 = vadd.f32 %v3302_v21, %v446_v22 }
 0x46c   :  { %v455_v26 = vpack.c.bf16 %v454_v24, %v453_v23 }
 0x46e   :  { %3646 = vmatmul.mubr.bf16.vlgmr.msra.gmra.mrb[0].mxu1 %v455_v26  ;;  %3686 = vmatmul.mubr.bf16.vlgmr.msra.gmra.mrb[4].mxu0 %v455_v26 }
 0x46f   :  { %3650 = vmatpush3.bf16.msra.mxu1 %v3967_v25  ;;  %3665 = vmatprep.mubr.msk.bf16.mxu1 %vm4508_vm1, %v4507_v49 }
 0x470   :  { %3651 = vmatprep.subr.bf16.mxu1 %v4507_v49  ;;  %3727 = vmatprep.mubr.msk.bf16.mxu0 %vm4508_vm1, %v4507_v49 }
 0x473   :  { %3652 = vmatpush3.bf16.msra.mxu1 %v3968_v27 }
 0x474   :  { %3653 = vmatprep.subr.bf16.mxu1 %v4507_v49 }
 0x477   :  { %3654 = vmatpush3.bf16.msra.mxu1 %v3969_v28 }
 0x478   :  { %3655 = vmatprep.subr.bf16.mxu1 %v4507_v49 }
 0x47b   :  { %3656 = vmatpush3.bf16.msra.mxu1 %v3970_v29 }
 0x47c   :  { %3657 = vmatprep.subr.bf16.mxu1 %v4507_v49 }
 0x47f   :  { %3658 = vmatpush3.bf16.msra.mxu1 %v3971_v30 }
 0x480   :  { %3659 = vmatprep.subr.bf16.mxu1 %v4507_v49 }
 0x483   :  { %3660 = vmatpush3.bf16.msra.mxu1 %v3972_v31 }
 0x484   :  { %3661 = vmatprep.subr.bf16.mxu1 %v4507_v49 }
 0x487   :  { %3662 = vmatpush3.bf16.msra.mxu1 %v3973_v32 }
 0x488   :  { %3663 = vmatprep.subr.bf16.mxu1 %v4507_v49 }
 0x48b   :  { %3664 = vmatpush3.bf16.msra.mxu1 %v3974_v33 }
 0x48c   :  { %3689 = vmatprep.subr.bf16.mxu1 %v4507_v49 }
 0x48e   :  { %3666 = vmatmul.mubr.bf16.vlgmr.msra.gmra.mrb[4].mxu1 %v455_v26 }
 0x48f   :  { %3691 = vmatprep.mubr.msk.bf16.mxu1 %vm4508_vm1, %v4507_v49 }
 0x541   :  { %v561_v35 = vpop.f32.mrb[0].mxu1  ;;  %v785_v37 = vpop.f32.mrb[4].mxu0 }
 0x542   :  { %v3647_v38 = vpop.f32.mrb[1].mxu1  ;;  %v3687_v39 = vpop.f32.mrb[5].mxu0  ;;  %v562_v42 = vadd.f32 %v3303_v34, %v561_v35  ;;  %v786_v44 = vadd.f32 %v3321_v36, %v785_v37 }
 0x543   :  { %v564_v40 = vpop.f32.mrb[2].mxu1  ;;  %v788_v41 = vpop.f32.mrb[6].mxu0 }
 0x544   :  { %v565_v45 = vadd.f32 %v3303_v34, %v564_v40  ;;  %v789_v47 = vadd.f32 %v3321_v36, %v788_v41  ;;  %v3648_v48 = vpop.f32.mrb[3].mxu1  ;;  %v3688_v50 = vpop.f32.mrb[7].mxu0 }
 0x546   :  { %v792_v51 = vpack.c.bf16 %v565_v45, %v562_v42  ;;  %v4869_v52 = vpack.c.bf16 %v789_v47, %v786_v44 }
 0x548   :  { %796 = vrot.lane.b32.xlu1 %v792_v51, %s4509_s27 }
 0x561   :  { %v673_v54 = vpop.f32.mrb[4].mxu1 }
 0x562   :  { %v3667_v55 = vpop.f32.mrb[5].mxu1  ;;  %v674_v57 = vadd.f32 %v3312_v53, %v673_v54 }
 0x563   :  { %v676_v56 = vpop.f32.mrb[6].mxu1 }
 0x564   :  { %v677_v58 = vadd.f32 %v3312_v53, %v676_v56  ;;  %v3668_v59 = vpop.f32.mrb[7].mxu1 }
 0x566   :  { %v793_v60 = vpack.c.bf16 %v677_v58, %v674_v57 }
 0x568   :  { %805 = vrot.lane.b32.xlu1 %v793_v60, %s4492_s25  ;;  %803 = vrot.lane.b32.xlu0 %v793_v60, %s4509_s27  ;;  %v824_v61 = vsel %vm819_vm2, %v793_v60, 0 }
 0x569   :  { %3690 = vmatpush3.bf16.xpose.msra.mxu1 %v824_v61 }
 0x56a   :  { %3695 = vmatprep.subr.bf16.mxu1 %v4507_v49 }
 0x56c   :  { %798 = vrot.lane.b32.xlu1 %v792_v51, %s4492_s25  ;;  %807 = vrot.lane.b32.xlu0 %v793_v60, %s4510_s0 }
 0x570   :  { %800 = vrot.lane.b32.xlu1 %v792_v51, %s4510_s0  ;;  %3692 = vmatmul.mubr.msk.bf16.vlgmr.msra.gmra.mrb[8].mxu1 %vm819_vm2, %v792_v51 }
 0x571   :  { %3697 = vmatprep.mubr.msk.bf16.mxu1 %vm4508_vm1, %v4507_v49 }
 0x5ba   :  { %v797_v1 = vpop.permute.xlu1 %796 }
 0x5da   :  { %v804_v62 = vpop.permute.xlu0 %803  ;;  %v806_v2 = vpop.permute.xlu1 %805 }
 0x5db   :  { %v871_v63 = vsel %vm819_vm2, %v804_v62, 0  ;;  %v918_v3 = vsel %vm819_vm2, %v806_v2, 0 }
 0x5dc   :  { %3696 = vmatpush3.bf16.xpose.msra.mxu1 %v871_v63 }
 0x5dd   :  { %3701 = vmatprep.subr.bf16.mxu1 %v4507_v49 }
 0x5de   :  { %v808_v4 = vpop.permute.xlu0 %807  ;;  %v799_v5 = vpop.permute.xlu1 %798 }
 0x5df   :  { %v965_v6 = vsel %vm819_vm2, %v808_v4, 0 }
 0x5e2   :  { %v801_v7 = vpop.permute.xlu1 %800 }
 0x5e3   :  { %3698 = vmatmul.mubr.msk.bf16.vlgmr.msra.gmra.mrb[12].mxu1 %vm819_vm2, %v797_v1 }
 0x5e4   :  { %3702 = vmatpush3.bf16.xpose.msra.mxu1 %v918_v3  ;;  %3703 = vmatprep.mubr.msk.bf16.mxu1 %vm4508_vm1, %v4507_v49 }
 0x5e5   :  { %3707 = vmatprep.subr.bf16.mxu1 %v4507_v49 }
 0x5eb   :  { %3704 = vmatmul.mubr.msk.bf16.vlgmr.msra.gmra.mrb[16].mxu1 %vm819_vm2, %v799_v5 }
 0x5ec   :  { %3708 = vmatpush3.bf16.xpose.msra.mxu1 %v965_v6  ;;  %3709 = vmatprep.mubr.msk.bf16.mxu1 %vm4508_vm1, %v4507_v49 }
 0x5ed   :  { %3713 = vmatprep.subr.bf16.mxu1 %v4507_v49 }
 0x5f3   :  { %3710 = vmatmul.mubr.msk.bf16.vlgmr.msra.gmra.mrb[20].mxu1 %vm819_vm2, %v801_v7 }
 0x5f4   :  { %3714 = vmatpush3.bf16.msra.mxu1 %v4869_v52  ;;  %3715 = vmatprep.mubr.msk.bf16.mxu1 %vm4508_vm1, %v4507_v49 }
 0x5f5   :  { %3719 = vmatprep.subr.bf16.mxu1 %v4507_v49 }
 0x643   :  { %v860_v9 = vpop.f32.mrb[8].mxu1 }
 0x644   :  { %v861_v11 = vadd.f32 %v860_v9, %v413_v8  ;;  %v3693_v12 = vpop.f32.mrb[9].mxu1 }
 0x645   :  { %v863_v13 = vpop.f32.mrb[10].mxu1 }
 0x646   :  { %v864_v14 = vadd.f32 %v863_v13, %v414_v10  ;;  %v3694_v15 = vpop.f32.mrb[11].mxu1  ;;  %v1009_v16 = vsel %vm1008_vm3, %v861_v11, -inf }
 0x647   :  { %1010 = vmax.xlane.f32.xlu0 %v1009_v16 }
 0x648   :  { %v1012_v17 = vsel %vm1008_vm3, %v864_v14, -inf }
 0x649   :  { %1013 = vmax.xlane.f32.xlu1 %v1012_v17 }
 0x6b6   :  { %v907_v18 = vpop.f32.mrb[12].mxu1 }
 0x6b7   :  { %v908_v19 = vadd.f32 %v907_v18, %v413_v8  ;;  %v3699_v20 = vpop.f32.mrb[13].mxu1 }
 0x6b8   :  { %v910_v21 = vpop.f32.mrb[14].mxu1 }
 0x6b9   :  { %v911_v22 = vadd.f32 %v910_v21, %v414_v10  ;;  %v3700_v23 = vpop.f32.mrb[15].mxu1  ;;  %v1015_v24 = vsel %vm1008_vm3, %v908_v19, -inf }
 0x6ba   :  { %1016 = vmax.xlane.f32.xlu0 %v1015_v24 }
 0x6bb   :  { %v1018_v25 = vsel %vm1008_vm3, %v911_v22, -inf }
 0x6be   :  { %1019 = vmax.xlane.f32.xlu0 %v1018_v25  ;;  %v954_v26 = vpop.f32.mrb[16].mxu1 }
 0x6bf   :  { %v955_v27 = vadd.f32 %v954_v26, %v413_v8  ;;  %v3705_v28 = vpop.f32.mrb[17].mxu1 }
 0x6c0   :  { %v957_v29 = vpop.f32.mrb[18].mxu1 }
 0x6c1   :  { %v958_v30 = vadd.f32 %v957_v29, %v414_v10  ;;  %v3706_v31 = vpop.f32.mrb[19].mxu1  ;;  %v1021_v32 = vsel %vm1008_vm3, %v955_v27, -inf }
 0x6c2   :  { %1022 = vmax.xlane.f32.xlu0 %v1021_v32 }
 0x6c3   :  { %v1024_v33 = vsel %vm1008_vm3, %v958_v30, -inf }
 0x6c4   :  { %1025 = vmax.xlane.f32.xlu1 %v1024_v33 }
 0x6c6   :  { %v1001_v34 = vpop.f32.mrb[20].mxu1 }
 0x6c7   :  { %v1002_v35 = vadd.f32 %v1001_v34, %v413_v8  ;;  %v3711_v36 = vpop.f32.mrb[21].mxu1 }
 0x6c8   :  { %v1004_v37 = vpop.f32.mrb[22].mxu1 }
 0x6c9   :  { %v4914_v38 = vadd.f32 %v1004_v37, %v414_v10  ;;  %v3712_v39 = vpop.f32.mrb[23].mxu1  ;;  %v1027_v40 = vsel %vm1008_vm3, %v1002_v35, -inf }
 0x6ca   :  { %1028 = vmax.xlane.f32.xlu0 %v1027_v40 }
 0x6cb   :  { %v1030_v41 = vsel %vm1008_vm3, %v4914_v38, -inf }
 0x6cc   :  { %1031 = vmax.xlane.f32.xlu1 %v1030_v41 }
 0x6d4   :  { %v1011_v42 = vpop.xlane.xlu0 %1010 }
 0x6d5   :  { %v1033_v44 = vsub.f32 %v861_v11, %v1011_v42 }
 0x6d6   :  { %v1014_v45 = vpop.xlane.xlu1 %1013 }
 0x6d7   :  { %v1041_v47 = vmul.f32 1.442695, %v1033_v44  ;;  %v1034_v48 = vsub.f32 %v864_v14, %v1014_v45 }
 0x6d9   :  { %4103 = vpow2.f32 %v1041_v47  ;;  %v1043_v50 = vmul.f32 1.442695, %v1034_v48 }
 0x6db   :  { %4105 = vpow2.f32 %v1043_v50 }
 0x6e3   :  { %v4104_v51 = vpop.eup %4103 }
 0x6e4   :  { %v1057_v53 = vsel %vm1008_vm3, %v4104_v51, 0.0 }
 0x6e5   :  { %v4106_v54 = vpop.eup %4105  ;;  %1058 = vadd.xlane.f32.xlu0 %v1057_v53 }
 0x6e6   :  { %v1060_v55 = vsel %vm1008_vm3, %v4106_v54, 0.0 }
 0x6e7   :  { %1061 = vadd.xlane.f32.xlu1 %v1060_v55 }
 0x747   :  { %v1017_v56 = vpop.xlane.xlu0 %1016 }
 0x748   :  { %v1035_v57 = vsub.f32 %v908_v19, %v1017_v56 }
 0x74a   :  { %v1045_v58 = vmul.f32 1.442695, %v1035_v57 }
 0x74b   :  { %v1020_v59 = vpop.xlane.xlu0 %1019 }
 0x74c   :  { %4107 = vpow2.f32 %v1045_v58  ;;  %v1036_v60 = vsub.f32 %v911_v22, %v1020_v59 }
 0x74e   :  { %v1047_v61 = vmul.f32 1.442695, %v1036_v60 }
 0x74f   :  { %v1023_v62 = vpop.xlane.xlu0 %1022 }
 0x750   :  { %4109 = vpow2.f32 %v1047_v61  ;;  %v1037_v63 = vsub.f32 %v955_v27, %v1023_v62  ;;  %v3975_v61 = vld [vmem:[#allocation16] sm:$0xff]   ;;  %v3976_v62 = vld [vmem:[#allocation16 + $0x8] sm:$0xff]  }
 0x751   :  { %v1026_v1 = vpop.xlane.xlu1 %1025 }
 0x752   :  { %v1049_v2 = vmul.f32 1.442695, %v1037_v63  ;;  %v1038_v3 = vsub.f32 %v958_v30, %v1026_v1 }
 0x754   :  { %4111 = vpow2.f32 %v1049_v2  ;;  %v1051_v4 = vmul.f32 1.442695, %v1038_v3 }
 0x756   :  { %v4108_v5 = vpop.eup %4107  ;;  %4113 = vpow2.f32 %v1051_v4  ;;  %v3977_v4 = vld [vmem:[#allocation16 + $0x10] sm:$0xff]  }
 0x757   :  { %v1029_v6 = vpop.xlane.xlu0 %1028  ;;  %v1063_v7 = vsel %vm1008_vm3, %v4108_v5, 0.0 }
 0x758   :  { %v1039_v8 = vsub.f32 %v1002_v35, %v1029_v6  ;;  %1064 = vadd.xlane.f32.xlu0 %v1063_v7 }
 0x759   :  { %v1032_v18 = vpop.xlane.xlu1 %1031 }
 0x75a   :  { %v4110_v9 = vpop.eup %4109  ;;  %v1053_v10 = vmul.f32 1.442695, %v1039_v8  ;;  %v1040_v25 = vsub.f32 %v4914_v38, %v1032_v18 }
 0x75b   :  { %v1066_v11 = vsel %vm1008_vm3, %v4110_v9, 0.0 }
 0x75c   :  { %4115 = vpow2.f32 %v1053_v10  ;;  %1067 = vadd.xlane.f32.xlu1 %v1066_v11  ;;  %v1055_v27 = vmul.f32 1.442695, %v1040_v25  ;;  %v3978_v11 = vld [vmem:[#allocation16 + $0x18] sm:$0xff]  }
 0x75e   :  { %v4112_v12 = vpop.eup %4111 }
 0x75f   :  { %v1069_v13 = vsel %vm1008_vm3, %v4112_v12, 0.0 }
 0x760   :  { %v4114_v14 = vpop.eup %4113  ;;  %1070 = vadd.xlane.f32.xlu0 %v1069_v13  ;;  %v3980_v13 = vld [vmem:[#allocation16 + $0x28] sm:$0xff]  }
 0x761   :  { %v1072_v15 = vsel %vm1008_vm3, %v4114_v14, 0.0 }
 0x762   :  { %1073 = vadd.xlane.f32.xlu1 %v1072_v15  ;;  %v3982_v15 = vld [vmem:[#allocation16 + $0x38] sm:$0xff]  }
 0x766   :  { %v4116_v16 = vpop.eup %4115 }
 0x767   :  { %v1075_v17 = vsel %vm1008_vm3, %v4116_v16, 0.0 }
 0x768   :  { %1076 = vadd.xlane.f32.xlu0 %v1075_v17 }
 0x772   :  { %v1059_v19 = vpop.xlane.xlu0 %1058 }
 0x773   :  { %4117 = vrcp.f32 %v1059_v19  ;;  %813 = vrot.lane.b32.xlu1 %v4869_v52, %s4492_s25 }
 0x774   :  { %v1062_v20 = vpop.xlane.xlu1 %1061 }
 0x775   :  { %4119 = vrcp.f32 %v1062_v20 }
 0x776   :  { %4121 = vpow2.f32 %v1055_v27 }
 0x77d   :  { %v4118_v21 = vpop.eup %4117 }
 0x77e   :  { %810 = vrot.lane.b32.xlu0 %v4869_v52, %s4509_s27  ;;  %v1089_v23 = vmul.f32 %v4118_v21, %v4104_v51 }
 0x77f   :  { %v4120_v22 = vpop.eup %4119 }
 0x780   :  { %v1090_v24 = vmul.f32 %v4120_v22, %v4106_v54  ;;  %v4122_v28 = vpop.eup %4121 }
 0x781   :  { %v1078_v29 = vsel %vm1008_vm3, %v4122_v28, 0.0 }
 0x782   :  { %v1097_v26 = vpack.c.bf16 %v1090_v24, %v1089_v23 }
 0x784   :  { %3716 = vmatmul.mubr.msk.bf16.vlgmr.msra.gmra.mrb[24].mxu1 %vm1008_vm3, %v1097_v26 }
 0x785   :  { %3721 = vmatprep.mubr.msk.bf16.mxu1 %vm4508_vm1, %v4507_v49 }
 0x797   :  { %1079 = vadd.xlane.f32.xlu1 %v1078_v29 }
 0x7a8   :  { %816 = vrot.lane.b32.xlu1 %v4869_v52, %s4510_s0 }
 0x7e5   :  { %v1065_v30 = vpop.xlane.xlu0 %1064 }
 0x7e9   :  { %v1068_v31 = vpop.xlane.xlu1 %1067 }
 0x7ea   :  { %4123 = vrcp.f32 %v1068_v31 }
 0x7eb   :  { %4125 = vrcp.f32 %v1065_v30 }
 0x7ed   :  { %v1071_v32 = vpop.xlane.xlu0 %1070 }
 0x7ee   :  { %4127 = vrcp.f32 %v1071_v32 }
 0x7ef   :  { %v1074_v33 = vpop.xlane.xlu1 %1073 }
 0x7f0   :  { %4129 = vrcp.f32 %v1074_v33 }
 0x7f3   :  { %v814_v34 = vpop.permute.xlu1 %813 }
 0x7f4   :  { %v4124_v35 = vpop.eup %4123  ;;  %3726 = vmatpush3.bf16.msra.mxu0 %v814_v34 }
 0x7f5   :  { %v1077_v36 = vpop.xlane.xlu0 %1076  ;;  %3737 = vmatprep.subr.bf16.mxu0 %v4507_v49  ;;  %v4126_v37 = vpop.eup %4125  ;;  %v1092_v38 = vmul.f32 %v4124_v35, %v4110_v9 }
 0x7f6   :  { %v1091_v40 = vmul.f32 %v4126_v37, %v4108_v5  ;;  %4131 = vrcp.f32 %v1077_v36 }
 0x7f8   :  { %v4128_v39 = vpop.eup %4127  ;;  %v1098_v45 = vpack.c.bf16 %v1092_v38, %v1091_v40  ;;  %v3346_v38 = vld [vmem:[%s5207_s13] ss:$0 sm:$0xff] }
 0x7f9   :  { %v811_v41 = vpop.permute.xlu0 %810  ;;  %v1093_v42 = vmul.f32 %v4128_v39, %v4112_v12  ;;  %v3979_v12 = vld [vmem:[#allocation16 + $0x20] sm:$0xff]  }
 0x7fa   :  { %v4130_v52 = vpop.eup %4129  ;;  %3720 = vmatpush3.bf16.msra.mxu1 %v811_v41 }
 0x7fb   :  { %v1094_v44 = vmul.f32 %v4130_v52, %v4114_v14  ;;  %3731 = vmatprep.subr.bf16.mxu1 %v4507_v49  ;;  %v3981_v14 = vld [vmem:[#allocation16 + $0x30] sm:$0xff]  }
 0x7fd   :  { %3722 = vmatmul.mubr.msk.bf16.vlgmr.msra.gmra.mrb[28].mxu1 %vm1008_vm3, %v1098_v45  ;;  %v1099_v47 = vpack.c.bf16 %v1094_v44, %v1093_v42 }
 0x7fe   :  { %3733 = vmatprep.mubr.msk.bf16.mxu1 %vm4508_vm1, %v4507_v49 }
 0x7ff   :  { %3728 = vmatmul.mubr.msk.bf16.vlgmr.msra.gmra.mrb[8].mxu0 %vm1008_vm3, %v1099_v47  ;;  %v3983_v47 = vld [vmem:[#allocation17] ss:$8 sps:$4 sm:$0xff]  }
 0x800   :  { %3753 = vmatprep.mubr.msk.bf16.mxu0 %vm4508_vm1, %v4507_v49  ;;  %v4132_v51 = vpop.eup %4131  ;;  %3738 = vmatpush3.bf16.msra.mxu0 %v3975_v61  ;;  %v3994_v61 = vld [vmem:[#allocation17 + $0x34] ss:$8 sps:$4 sm:$0xff]  }
 0x801   :  { %v1095_v54 = vmul.f32 %v4132_v51, %v4116_v16  ;;  %3739 = vmatprep.subr.bf16.mxu0 %v4507_v49  ;;  %v3986_v51 = vld [vmem:[#allocation17 + $0x10] ss:$8 sps:$4 sm:$0xff]  }
 0x804   :  { %3740 = vmatpush3.bf16.msra.mxu0 %v3976_v62  ;;  %v3992_v62 = vld [vmem:[#allocation17 + $0x30] ss:$8 sps:$4 sm:$0xff]  }
 0x805   :  { %3741 = vmatprep.subr.bf16.mxu0 %v4507_v49 }
 0x808   :  { %3742 = vmatpush3.bf16.msra.mxu0 %v3977_v4  ;;  %v4003_v4 = vld [vmem:[#allocation17 + $0x64] ss:$8 sps:$4 sm:$0xff]  }
 0x809   :  { %3743 = vmatprep.subr.bf16.mxu0 %v4507_v49 }
 0x80c   :  { %3744 = vmatpush3.bf16.msra.mxu0 %v3978_v11 }
 0x80d   :  { %3745 = vmatprep.subr.bf16.mxu0 %v4507_v49 }
 0x810   :  { %3746 = vmatpush3.bf16.msra.mxu0 %v3979_v12 }
 0x811   :  { %3747 = vmatprep.subr.bf16.mxu0 %v4507_v49 }
 0x814   :  { %3748 = vmatpush3.bf16.msra.mxu0 %v3980_v13 }
 0x815   :  { %3749 = vmatprep.subr.bf16.mxu0 %v4507_v49 }
 0x818   :  { %3750 = vmatpush3.bf16.msra.mxu0 %v3981_v14 }
 0x819   :  { %3751 = vmatprep.subr.bf16.mxu0 %v4507_v49 }
 0x81c   :  { %3752 = vmatpush3.bf16.msra.mxu0 %v3982_v15 }
 0x824   :  { %v1080_v48 = vpop.xlane.xlu1 %1079 }
 0x825   :  { %4133 = vrcp.f32 %v1080_v48  ;;  %v3985_v48 = vld [vmem:[#allocation17 + $0x4] ss:$8 sps:$4 sm:$0xff]  }
 0x828   :  { %v817_v50 = vpop.permute.xlu1 %816 }
 0x829   :  { %3732 = vmatpush3.bf16.msra.mxu1 %v817_v50  ;;  %v3988_v50 = vld [vmem:[#allocation17 + $0x14] ss:$8 sps:$4 sm:$0xff]  }
 0x82a   :  { %1574 = vmatprep.subr.bf16.mxu1 %v3985_v48 }
 0x82f   :  { %v4134_v53 = vpop.eup %4133 }
 0x830   :  { %v1096_v55 = vmul.f32 %v4134_v53, %v4122_v28 }
 0x832   :  { %v1100_v56 = vpack.c.bf16 %v1096_v55, %v1095_v54 }
 0x834   :  { %3734 = vmatmul.mubr.msk.bf16.vlgmr.msra.gmra.mrb[32].mxu1 %vm1008_vm3, %v1100_v56 }
 0x835   :  { %1606 = vmatprep.mubr.bf16.mxu1 %v4506_v0  ;;  %1575 = vmatpush1.bf16.msra.mxu1 %v3983_v47  ;;  %v1482_v47 = vld [vmem:[%s5244_s2] sm:$0x3] }
 0x836   :  { %1576 = vmatprep.subr.bf16.mxu1 %v3988_v50 }
 0x839   :  { %1577 = vmatpush1.bf16.msra.mxu1 %v3986_v51 }
 0x857   :  { %v1138_v57 = vpop.f32.mrb[24].mxu1 }
 0x858   :  { %v3717_v58 = vpop.f32.mrb[25].mxu1 }
 0x859   :  { %v1141_v59 = vpop.f32.mrb[26].mxu1 }
 0x85a   :  { %v3718_v60 = vpop.f32.mrb[27].mxu1 }
 0x85b   :  { %v3989_v60 = vld [vmem:[#allocation17 + $0x20] ss:$8 sps:$4 sm:$0xff]  }
 0x8d0   :  { %v1182_v63 = vpop.f32.mrb[28].mxu1 }
 0x8d1   :  { %v3723_v1 = vpop.f32.mrb[29].mxu1 }
 0x8d2   :  { %v1185_v2 = vpop.f32.mrb[30].mxu1  ;;  %v1226_v3 = vpop.f32.mrb[8].mxu0  ;;  %v3995_v1 = vld [vmem:[#allocation17 + $0x40] ss:$8 sps:$4 sm:$0xff]  }
 0x8d3   :  { %v3906_v5 = vpack.i.bf16 %v1185_v2, %v1182_v63  ;;  %v3724_v6 = vpop.f32.mrb[31].mxu1  ;;  %v3729_v7 = vpop.f32.mrb[9].mxu0  ;;  %v3997_v63 = vld [vmem:[#allocation17 + $0x44] ss:$8 sps:$4 sm:$0xff]   ;;  %v4000_v2 = vld [vmem:[#allocation17 + $0x54] ss:$8 sps:$4 sm:$0xff]  }
 0x8d4   :  { %v1229_v8 = vpop.f32.mrb[10].mxu0  ;;  %v4006_v6 = vld [vmem:[#allocation17 + $0x74] ss:$8 sps:$4 sm:$0xff]   ;;  %v4004_v7 = vld [vmem:[#allocation17 + $0x70] ss:$8 sps:$4 sm:$0xff]  }
 0x8d5   :  { %v3911_v9 = vpack.i.bf16 %v1229_v8, %v1226_v3  ;;  %v3730_v10 = vpop.f32.mrb[11].mxu0  ;;  %3907 = vrot.lane.b32.xlu1 %v3906_v5, %s4510_s0  ;;  %v3998_v3 = vld [vmem:[#allocation17 + $0x50] ss:$8 sps:$4 sm:$0xff]   ;;  %v4001_v5 = vld [vmem:[#allocation17 + $0x60] ss:$8 sps:$4 sm:$0xff]  }
 0x8d7   :  { %3912 = vrot.lane.b32.xlu0 %v3911_v9, %s4492_s25 }
 0x907   :  { %v1270_v16 = vpop.f32.mrb[32].mxu1 }
 0x908   :  { %v3735_v17 = vpop.f32.mrb[33].mxu1 }
 0x909   :  { %v1273_v18 = vpop.f32.mrb[34].mxu1 }
 0x90a   :  { %v3916_v19 = vpack.i.bf16 %v1273_v18, %v1270_v16  ;;  %v3736_v20 = vpop.f32.mrb[35].mxu1  ;;  %v3347_v16 = vld [vmem:[%s5210_s16] ss:$0 sm:$0xff] }
 0x90b   :  { %v3348_v20 = vld [vmem:[%s5211_s17] ss:$0 sm:$0xff] }
 0x90c   :  { %3917 = vrot.lane.b32.xlu1 %v3916_v19, %s4509_s27 }
 0x947   :  { %v3908_v21 = vpop.permute.xlu1 %3907 }
 0x948   :  { %v3910_v22 = vunpack.i.h.bf16 %v3908_v21  ;;  %v3909_v23 = vunpack.i.l.bf16 %v3908_v21 }
 0x949   :  { %v3913_v24 = vpop.permute.xlu0 %3912 }
 0x94a   :  { %v3915_v25 = vunpack.i.h.bf16 %v3913_v24  ;;  %v3914_v26 = vunpack.i.l.bf16 %v3913_v24  ;;  %v1302_v27 = vsel %vm819_vm2, %v1141_v59, %v3910_v22  ;;  %v1301_v28 = vsel %vm819_vm2, %v1138_v57, %v3909_v23  ;;  %v3991_v59 = vld [vmem:[#allocation17 + $0x24] ss:$8 sps:$4 sm:$0xff]  }
 0x94b   :  { %1578 = vmatprep.subr.bf16.mxu1 %v3991_v59 }
 0x94c   :  { %v1303_v32 = vsel %vm327_vm0, %v1301_v28, %v3914_v26  ;;  %v1304_v33 = vsel %vm327_vm0, %v1302_v27, %v3915_v25  ;;  %1579 = vmatpush1.bf16.msra.mxu1 %v3989_v60  ;;  %v4007_v25 = vld [vmem:[#allocation19 + $0x40] sm:$0xff]   ;;  %v4009_v27 = vld [vmem:[#allocation19 + $0x48] sm:$0xff]  }
 0x94d   :  { %1580 = vmatprep.subr.bf16.mxu1 %v3994_v61  ;;  %v4008_v26 = vld [vmem:[#allocation19] sm:$0xff]   ;;  %3533 = vmatprep.subr.bf16.mxu0 %v4007_v25  ;;  %v4010_v28 = vld [vmem:[#allocation19 + $0x8] sm:$0xff]  }
 0x950   :  { %1581 = vmatpush1.bf16.msra.mxu1 %v3992_v62 }
 0x951   :  { %1582 = vmatprep.subr.bf16.mxu1 %v3997_v63 }
 0x954   :  { %1583 = vmatpush1.bf16.msra.mxu1 %v3995_v1 }
 0x955   :  { %1584 = vmatprep.subr.bf16.mxu1 %v4000_v2 }
 0x958   :  { %1585 = vmatpush1.bf16.msra.mxu1 %v3998_v3 }
 0x959   :  { %1586 = vmatprep.subr.bf16.mxu1 %v4003_v4 }
 0x95c   :  { %1587 = vmatpush1.bf16.msra.mxu1 %v4001_v5 }
 0x95d   :  { %1588 = vmatprep.subr.bf16.mxu1 %v4006_v6 }
 0x960   :  { %1589 = vmatpush1.bf16.msra.mxu1 %v4004_v7 }
 0x961   :  { %3757 = vmatprep.subr.bf16.mxu1 %v4507_v49 }
 0x97e   :  { %v3918_v29 = vpop.permute.xlu1 %3917 }
 0x97f   :  { %v3920_v30 = vunpack.i.h.bf16 %v3918_v29  ;;  %v3919_v31 = vunpack.i.l.bf16 %v3918_v29  ;;  %v4011_v29 = vld [vmem:[#allocation19 + $0x50] sm:$0xff]  }
 0x981   :  { %v1307_v34 = vsel %vm1305_vm4, %v1304_v33, %v3920_v30  ;;  %v1306_v35 = vsel %vm1305_vm4, %v1303_v32, %v3919_v31  ;;  %v4012_v30 = vld [vmem:[#allocation19 + $0x10] sm:$0xff]   ;;  %v4013_v31 = vld [vmem:[#allocation19 + $0x58] sm:$0xff]   ;;  %v4015_v33 = vld [vmem:[#allocation19 + $0x60] sm:$0xff]  }
 0x982   :  { %v1308_v36 = vpack.c.bf16 %v1307_v34, %v1306_v35  ;;  %v4014_v32 = vld [vmem:[#allocation19 + $0x18] sm:$0xff]   ;;  %v4016_v34 = vld [vmem:[#allocation19 + $0x20] sm:$0xff]   ;;  %v4017_v35 = vld [vmem:[#allocation19 + $0x68] sm:$0xff]  }
 0x984   :  { %3754 = vmatmul.mubr.bf16.vlgmr.msra.gmra.mrb[12].mxu0 %v1308_v36  ;;  %v4018_v36 = vld [vmem:[#allocation19 + $0x28] sm:$0xff]  }
 0x985   :  { %3534 = vmatpush3.bf16.msra.mxu0 %v4008_v26 }
 0x986   :  { %3535 = vmatprep.subr.bf16.mxu0 %v4009_v27  ;;  %v3385_v27 = vld [vmem:[%s5245_s22] ss:$0 sm:$0xff] }
 0x989   :  { %3536 = vmatpush3.bf16.msra.mxu0 %v4010_v28 }
 0x98a   :  { %3537 = vmatprep.subr.bf16.mxu0 %v4011_v29 }
 0x98d   :  { %3538 = vmatpush3.bf16.msra.mxu0 %v4012_v30 }
 0x98e   :  { %3539 = vmatprep.subr.bf16.mxu0 %v4013_v31 }
 0x991   :  { %3540 = vmatpush3.bf16.msra.mxu0 %v4014_v32 }
 0x992   :  { %3541 = vmatprep.subr.bf16.mxu0 %v4015_v33  ;;  %v4023_v33 = vld [vmem:[#allocation11 + $0x40] sm:$0xff]  }
 0x995   :  { %3542 = vmatpush3.bf16.msra.mxu0 %v4016_v34  ;;  %v4024_v34 = vld [vmem:[#allocation13 + $0x40] sm:$0xff]  }
 0x996   :  { %3543 = vmatprep.subr.bf16.mxu0 %v4017_v35  ;;  %v4025_v35 = vld [vmem:[#allocation11 + $0x48] sm:$0xff]  }
 0x999   :  { %3544 = vmatpush3.bf16.msra.mxu0 %v4018_v36  ;;  %v4026_v36 = vld [vmem:[#allocation13 + $0x48] sm:$0xff]  }
 0xa57   :  { %v1407_v37 = vpop.f32.mrb[12].mxu0 }
 0xa58   :  { %v1414_v39 = vadd.f32 %v1407_v37, %v4813_v43  ;;  %v3755_v40 = vpop.f32.mrb[13].mxu0  ;;  %v4019_v37 = vld [vmem:[#allocation19 + $0x70] sm:$0xff]  }
 0xa59   :  { %v1410_v41 = vpop.f32.mrb[14].mxu0  ;;  %3545 = vmatprep.subr.bf16.mxu0 %v4019_v37  ;;  %v4022_v40 = vld [vmem:[#allocation19 + $0x38] sm:$0xff]  }
 0xa5a   :  { %v4967_v52 = vadd.f32 %v3346_v38, %v1414_v39  ;;  %v1415_v42 = vadd.f32 %v1410_v41, %v4816_v46  ;;  %v3756_v44 = vpop.f32.mrb[15].mxu0  ;;  %v4021_v39 = vld [vmem:[#allocation19 + $0x78] sm:$0xff]   ;;  %v1484_v41 = vlaneseq }
 0xa5c   :  { %v4970_v45 = vadd.f32 %v3346_v38, %v1415_v42  ;;  %1427 = vadd.xlane.f32.xlu0 %v4967_v52  ;;  %v4020_v38 = vld [vmem:[#allocation19 + $0x30] sm:$0xff]   ;;  %v4986_v42 = vshrl.u32 %v1484_v41, 7 }
 0xa5d   :  { %3546 = vmatpush3.bf16.msra.mxu0 %v4020_v38 }
 0xa5e   :  { %1429 = vadd.xlane.f32.xlu1 %v4970_v45  ;;  %3547 = vmatprep.subr.bf16.mxu0 %v4021_v39  ;;  %v1486_v44 = vsub.s32 0, %v4986_v42  ;;  %v1490_v48 = vsub.s32 1, %v4986_v42 }
 0xa60   :  { %v1487_v50 = vrot.slane %v1482_v47, %v1486_v44  ;;  %v1491_v51 = vrot.slane %v1482_v47, %v1490_v48 }
 0xa61   :  { %3548 = vmatpush3.bf16.msra.mxu0 %v4022_v40 }
 0xa62   :  { %3777 = vmatprep.subr.bf16.mxu0 %v4507_v49 }
 0xae9   :  { %v1428_v43 = vpop.xlane.xlu0 %1427 }
 0xaea   :  { %v1431_v53 = vmul.f32 0.0078125, %v1428_v43 }
 0xaeb   :  { %v1430_v54 = vpop.xlane.xlu1 %1429 }
 0xaec   :  { %v1433_v46 = vsub.f32 %v4967_v52, %v1431_v53  ;;  %v1432_v55 = vmul.f32 0.0078125, %v1430_v54 }
 0xaee   :  { %v1434_v56 = vsub.f32 %v4970_v45, %v1432_v55  ;;  %v1435_v57 = vmul.f32 %v1433_v46, %v1433_v46 }
 0xaf0   :  { %1437 = vadd.xlane.f32.xlu0 %v1435_v57  ;;  %v1436_v58 = vmul.f32 %v1434_v56, %v1434_v56 }
 0xaf4   :  { %1439 = vadd.xlane.f32.xlu0 %v1436_v58 }
 0xb7d   :  { %v1438_v8 = vpop.xlane.xlu0 %1437 }
 0xb7e   :  { %v1441_v9 = vmul.f32 0.0078125, %v1438_v8 }
 0xb80   :  { %v1443_v10 = vadd.f32 1e-05, %v1441_v9 }
 0xb81   :  { %v1440_v11 = vpop.xlane.xlu0 %1439 }
 0xb82   :  { %4135 = vrsqrt.f32 %v1443_v10  ;;  %v1442_v12 = vmul.f32 0.0078125, %v1440_v11 }
 0xb84   :  { %v1444_v13 = vadd.f32 1e-05, %v1442_v12 }
 0xb86   :  { %4137 = vrsqrt.f32 %v1444_v13 }
 0xb8c   :  { %v4136_v14 = vpop.eup %4135 }
 0xb8d   :  { %v1447_v15 = vmul.f32 %v4136_v14, %v1433_v46 }
 0xb8f   :  { %v1455_v19 = vmul.f32 %v3347_v16, %v1447_v15 }
 0xb90   :  { %v4138_v17 = vpop.eup %4137 }
 0xb91   :  { %v1448_v18 = vmul.f32 %v4138_v17, %v1434_v56  ;;  %v1463_v22 = vadd.f32 %v3348_v20, %v1455_v19 }
 0xb93   :  { %v1456_v21 = vmul.f32 %v3347_v16, %v1448_v18 }
 0xb95   :  { %v1464_v23 = vadd.f32 %v3348_v20, %v1456_v21 }
 0xb97   :  { %v1465_v24 = vpack.c.bf16 %v1464_v23, %v1463_v22 }
 0xb99   :  { %1607 = vmatmul.mubr.bf16.vlgmr.msra.gmra.mrb[36].mxu1 %v1465_v24 }
 0xb9a   :  { %3773 = vmatprep.mubr.msk.bf16.mxu1 %vm4508_vm1, %v4507_v49  ;;  %3758 = vmatpush3.bf16.msra.mxu1 %v4023_v33 }
 0xb9b   :  { %3759 = vmatprep.subr.bf16.mxu1 %v4507_v49 }
 0xb9e   :  { %3760 = vmatpush3.bf16.msra.mxu1 %v4025_v35 }
 0xb9f   :  { %3761 = vmatprep.subr.bf16.mxu1 %v4507_v49 }
 0xc6c   :  { %v1608_v43 = vpop.f32.mrb[36].mxu1 }
 0xc6d   :  { %v1609_v53 = vadd.f32 %v1608_v43, %v1487_v50  ;;  %v1610_v54 = vpop.f32.mrb[37].mxu1  ;;  %v4029_v43 = vld [vmem:[#allocation11 + $0x58] sm:$0xff]  }
 0xc6e   :  { %v1611_v46 = vadd.f32 %v1610_v54, %v1491_v51  ;;  %v1612_v55 = vpop.f32.mrb[38].mxu1  ;;  %v4031_v54 = vld [vmem:[#allocation11 + $0x60] sm:$0xff]  }
 0xc6f   :  { %v3365_v56 = vmul.f32 -1.702, %v1609_v53  ;;  %v1613_v57 = vadd.f32 %v1612_v55, %v1487_v50  ;;  %v1614_v58 = vpop.f32.mrb[39].mxu1  ;;  %v4027_v50 = vld [vmem:[#allocation11 + $0x50] sm:$0xff]   ;;  %v4033_v55 = vld [vmem:[#allocation11 + $0x68] sm:$0xff]  }
 0xc70   :  { %v3366_v59 = vmul.f32 -1.702, %v1611_v46  ;;  %v1615_v60 = vadd.f32 %v1614_v58, %v1491_v51  ;;  %v4028_v51 = vld [vmem:[#allocation13 + $0x50] sm:$0xff]   ;;  %3762 = vmatpush3.bf16.msra.mxu1 %v4027_v50 }
 0xc71   :  { %v1625_v61 = vmul.f32 1.442695, %v3365_v56  ;;  %v3367_v62 = vmul.f32 -1.702, %v1613_v57  ;;  %3763 = vmatprep.subr.bf16.mxu1 %v4507_v49  ;;  %v4034_v56 = vld [vmem:[#allocation13 + $0x68] sm:$0xff]   ;;  %v4036_v58 = vld [vmem:[#allocation13 + $0x70] sm:$0xff]  }
 0xc72   :  { %v1627_v63 = vmul.f32 1.442695, %v3366_v59  ;;  %v3368_v1 = vmul.f32 -1.702, %v1615_v60  ;;  %v4037_v59 = vld [vmem:[#allocation11 + $0x78] sm:$0xff]  }
 0xc73   :  { %4139 = vpow2.f32 %v1625_v61  ;;  %v1629_v2 = vmul.f32 1.442695, %v3367_v62 }
 0xc74   :  { %4141 = vpow2.f32 %v1627_v63  ;;  %v1631_v3 = vmul.f32 1.442695, %v3368_v1  ;;  %3764 = vmatpush3.bf16.msra.mxu1 %v4029_v43 }
 0xc75   :  { %4143 = vpow2.f32 %v1629_v2  ;;  %3765 = vmatprep.subr.bf16.mxu1 %v4507_v49 }
 0xc76   :  { %4145 = vpow2.f32 %v1631_v3 }
 0xc78   :  { %3766 = vmatpush3.bf16.msra.mxu1 %v4031_v54 }
 0xc79   :  { %3767 = vmatprep.subr.bf16.mxu1 %v4507_v49 }
 0xc7c   :  { %3768 = vmatpush3.bf16.msra.mxu1 %v4033_v55 }
 0xc7d   :  { %v4140_v4 = vpop.eup %4139  ;;  %3769 = vmatprep.subr.bf16.mxu1 %v4507_v49 }
 0xc7e   :  { %v4142_v5 = vpop.eup %4141  ;;  %v1633_v6 = vadd.f32 1.0, %v4140_v4 }
 0xc7f   :  { %v4144_v7 = vpop.eup %4143  ;;  %v1634_v8 = vadd.f32 1.0, %v4142_v5  ;;  %v3388_v5 = vld [vmem:[%s5208_s14 + $0x1] ss:$0 sm:$0xff] }
 0xc80   :  { %v4146_v9 = vpop.eup %4145  ;;  %4147 = vrcp.f32 %v1633_v6  ;;  %v1635_v10 = vadd.f32 1.0, %v4144_v7 }
 0xc81   :  { %4149 = vrcp.f32 %v1634_v8  ;;  %v1636_v11 = vadd.f32 1.0, %v4146_v9 }
 0xc82   :  { %4151 = vrcp.f32 %v1635_v10  ;;  %v3389_v10 = vld [vmem:[%s5209_s15 + $0x1] ss:$0 sm:$0xff] }
 0xc83   :  { %4153 = vrcp.f32 %v1636_v11 }
 0xc8a   :  { %v4148_v12 = vpop.eup %4147 }
 0xc8b   :  { %v4150_v13 = vpop.eup %4149  ;;  %v1645_v16 = vmul.f32 %v4148_v12, %v1609_v53  ;;  %v4030_v53 = vld [vmem:[#allocation13 + $0x58] sm:$0xff]  }
 0xc8c   :  { %v4152_v14 = vpop.eup %4151  ;;  %v1646_v18 = vmul.f32 %v4150_v13, %v1611_v46  ;;  %v4032_v46 = vld [vmem:[#allocation13 + $0x60] sm:$0xff]  }
 0xc8d   :  { %v4154_v15 = vpop.eup %4153  ;;  %v1647_v17 = vmul.f32 %v4152_v14, %v1613_v57  ;;  %v4035_v57 = vld [vmem:[#allocation11 + $0x70] sm:$0xff]   ;;  %v4039_v14 = vld [vmem:[#allocation14 + $0x40] sm:$0xff]  }
 0xc8e   :  { %v1648_v19 = vmul.f32 %v4154_v15, %v1615_v60  ;;  %3770 = vmatpush3.bf16.msra.mxu1 %v4035_v57  ;;  %v4038_v60 = vld [vmem:[#allocation13 + $0x78] sm:$0xff]  }
 0xc8f   :  { %v1649_v20 = vpack.c.bf16 %v1647_v17, %v1645_v16  ;;  %3771 = vmatprep.subr.bf16.mxu1 %v4507_v49  ;;  %v4040_v16 = vld [vmem:[#allocation14 + $0x48] sm:$0xff]   ;;  %v4041_v17 = vld [vmem:[#allocation14 + $0x50] sm:$0xff]  }
 0xc90   :  { %v1650_v21 = vpack.c.bf16 %v1648_v19, %v1646_v18  ;;  %v4042_v18 = vld [vmem:[#allocation14 + $0x58] sm:$0xff]   ;;  %v4043_v19 = vld [vmem:[#allocation14 + $0x60] sm:$0xff]  }
 0xc92   :  { %1811 = vmatprep.mubr.bf16.mxu0 %v1650_v21  ;;  %3772 = vmatpush3.bf16.msra.mxu1 %v4037_v59  ;;  %v4045_v21 = vld [vmem:[#allocation14 + $0x70] sm:$0xff]  }
 0xc93   :  { %1812 = vmatmul.mubr.bf16.vlgmr.msra.gmra.mrb[16].mxu0 %v1649_v20  ;;  %3797 = vmatprep.subr.bf16.mxu1 %v4507_v49  ;;  %v4044_v20 = vld [vmem:[#allocation14 + $0x68] sm:$0xff]  }
 0xc94   :  { %3793 = vmatprep.mubr.msk.bf16.mxu0 %vm4508_vm1, %v4507_v49  ;;  %3778 = vmatpush3.bf16.msra.mxu0 %v4024_v34 }
 0xc95   :  { %3779 = vmatprep.subr.bf16.mxu0 %v4507_v49 }
 0xc98   :  { %3780 = vmatpush3.bf16.msra.mxu0 %v4026_v36 }
 0xc99   :  { %3781 = vmatprep.subr.bf16.mxu0 %v4507_v49 }
 0xc9c   :  { %3782 = vmatpush3.bf16.msra.mxu0 %v4028_v51 }
 0xc9d   :  { %3783 = vmatprep.subr.bf16.mxu0 %v4507_v49 }
 0xca0   :  { %3784 = vmatpush3.bf16.msra.mxu0 %v4030_v53 }
 0xca1   :  { %3785 = vmatprep.subr.bf16.mxu0 %v4507_v49 }
 0xca4   :  { %3786 = vmatpush3.bf16.msra.mxu0 %v4032_v46 }
 0xca5   :  { %3787 = vmatprep.subr.bf16.mxu0 %v4507_v49 }
 0xca8   :  { %3788 = vmatpush3.bf16.msra.mxu0 %v4034_v56 }
 0xca9   :  { %3789 = vmatprep.subr.bf16.mxu0 %v4507_v49 }
 0xcac   :  { %3790 = vmatpush3.bf16.msra.mxu0 %v4036_v58 }
 0xcad   :  { %3791 = vmatprep.subr.bf16.mxu0 %v4507_v49 }
 0xcb0   :  { %3792 = vmatpush3.bf16.msra.mxu0 %v4038_v60 }
 0xcb1   :  { %3817 = vmatprep.subr.bf16.mxu0 %v4507_v49 }
 0xd66   :  { %v3549_v22 = vpop.f32.mrb[16].mxu0 }
 0xd67   :  { %v3550_v23 = vpop.f32.mrb[17].mxu0 }
 0xd68   :  { %v3551_v24 = vadd.f32 %v3550_v23, %v3549_v22  ;;  %v3552_v25 = vpop.f32.mrb[18].mxu0  ;;  %v4046_v22 = vld [vmem:[#allocation14 + $0x78] sm:$0xff]  }
 0xd69   :  { %v3553_v26 = vpop.f32.mrb[19].mxu0  ;;  %v3391_v23 = vld [vmem:[%s5201_s7 + $0x1] ss:$0 sm:$0xff] }
 0xd6a   :  { %v1820_v28 = vadd.f32 %v3551_v24, %v4967_v52  ;;  %v3554_v29 = vadd.f32 %v3553_v26, %v3552_v25  ;;  %v3401_v25 = vld [vmem:[%s5203_s9 + $0x1] ss:$0 sm:$0xff] }
 0xd6c   :  { %v1821_v30 = vadd.f32 %v3554_v29, %v4970_v45  ;;  %v5004_v31 = vadd.f32 %v3385_v27, %v1820_v28 }
 0xd6e   :  { %1835 = vadd.xlane.f32.xlu0 %v5004_v31  ;;  %v5007_v32 = vadd.f32 %v3385_v27, %v1821_v30 }
 0xd70   :  { %1837 = vadd.xlane.f32.xlu1 %v5007_v32 }
 0xdfb   :  { %v1836_v52 = vpop.xlane.xlu0 %1835 }
 0xdfc   :  { %v1839_v45 = vmul.f32 0.0078125, %v1836_v52 }
 0xdfd   :  { %v1838_v37 = vpop.xlane.xlu1 %1837 }
 0xdfe   :  { %v1841_v38 = vsub.f32 %v5004_v31, %v1839_v45  ;;  %v1840_v39 = vmul.f32 0.0078125, %v1838_v37 }
 0xe00   :  { %v1842_v40 = vsub.f32 %v5007_v32, %v1840_v39  ;;  %v1843_v41 = vmul.f32 %v1841_v38, %v1841_v38 }
 0xe02   :  { %1845 = vadd.xlane.f32.xlu0 %v1843_v41  ;;  %v1844_v47 = vmul.f32 %v1842_v40, %v1842_v40 }
 0xe04   :  { %1847 = vadd.xlane.f32.xlu1 %v1844_v47 }
 0xe8f   :  { %v1846_v61 = vpop.xlane.xlu0 %1845 }
 0xe90   :  { %v1849_v62 = vmul.f32 0.0078125, %v1846_v61 }
 0xe91   :  { %v1848_v63 = vpop.xlane.xlu1 %1847 }
 0xe92   :  { %v1851_v1 = vadd.f32 1e-05, %v1849_v62  ;;  %v1850_v2 = vmul.f32 0.0078125, %v1848_v63 }
 0xe94   :  { %4155 = vrsqrt.f32 %v1851_v1  ;;  %v1852_v3 = vadd.f32 1e-05, %v1850_v2  ;;  %v4211_v1 = vld [vmem:[%s5243_s10] sm:$0xff] }
 0xe96   :  { %4157 = vrsqrt.f32 %v1852_v3 }
 0xe9e   :  { %v4156_v4 = vpop.eup %4155 }
 0xe9f   :  { %v1855_v6 = vmul.f32 %v4156_v4, %v1841_v38 }
 0xea0   :  { %v4158_v7 = vpop.eup %4157 }
 0xea1   :  { %v1856_v8 = vmul.f32 %v4158_v7, %v1842_v40  ;;  %v1863_v9 = vmul.f32 %v3388_v5, %v1855_v6  ;;  %v3411_v40 = vld [vmem:[%s5205_s11 + $0x1] ss:$0 sm:$0xff] }
 0xea3   :  { %v1864_v11 = vmul.f32 %v3388_v5, %v1856_v8  ;;  %v1871_v12 = vadd.f32 %v3389_v10, %v1863_v9  ;;  %v4212_v5 = vld [vmem:[%s5243_s10 + $0x8] sm:$0xff] }
 0xea5   :  { %v1872_v13 = vadd.f32 %v3389_v10, %v1864_v11 }
 0xea7   :  { %v1873_v15 = vpack.c.bf16 %v1872_v13, %v1871_v12 }
 0xea9   :  { %3774 = vmatmul.mubr.bf16.vlgmr.msra.gmra.mrb[40].mxu1 %v1873_v15  ;;  %3794 = vmatmul.mubr.bf16.vlgmr.msra.gmra.mrb[20].mxu0 %v1873_v15 }
 0xeaa   :  { %3798 = vmatpush3.bf16.msra.mxu1 %v4039_v14  ;;  %3813 = vmatprep.mubr.msk.bf16.mxu1 %vm4508_vm1, %v4507_v49 }
 0xeab   :  { %3799 = vmatprep.subr.bf16.mxu1 %v4507_v49  ;;  %3819 = vmatprep.mubr.msk.bf16.mxu0 %vm4508_vm1, %v4507_v49 }
 0xeae   :  { %3800 = vmatpush3.bf16.msra.mxu1 %v4040_v16 }
 0xeaf   :  { %3801 = vmatprep.subr.bf16.mxu1 %v4507_v49 }
 0xeb2   :  { %3802 = vmatpush3.bf16.msra.mxu1 %v4041_v17 }
 0xeb3   :  { %3803 = vmatprep.subr.bf16.mxu1 %v4507_v49 }
 0xeb6   :  { %3804 = vmatpush3.bf16.msra.mxu1 %v4042_v18 }
 0xeb7   :  { %3805 = vmatprep.subr.bf16.mxu1 %v4507_v49 }
 0xeba   :  { %3806 = vmatpush3.bf16.msra.mxu1 %v4043_v19 }
 0xebb   :  { %3807 = vmatprep.subr.bf16.mxu1 %v4507_v49 }
 0xebe   :  { %3808 = vmatpush3.bf16.msra.mxu1 %v4044_v20 }
 0xebf   :  { %3809 = vmatprep.subr.bf16.mxu1 %v4507_v49 }
 0xec2   :  { %3810 = vmatpush3.bf16.msra.mxu1 %v4045_v21 }
 0xec3   :  { %3811 = vmatprep.subr.bf16.mxu1 %v4507_v49 }
 0xec6   :  { %3812 = vmatpush3.bf16.msra.mxu1 %v4046_v22 }
 0xec7   :  { %3823 = vmatprep.subr.bf16.mxu1 %v4507_v49 }
 0xec9   :  { %3814 = vmatmul.mubr.bf16.vlgmr.msra.gmra.mrb[44].mxu1 %v1873_v15 }
 0xeca   :  { %3825 = vmatprep.mubr.msk.bf16.mxu1 %vm4508_vm1, %v4507_v49 }
 0xf7c   :  { %v1981_v24 = vpop.f32.mrb[40].mxu1  ;;  %v2095_v26 = vpop.f32.mrb[20].mxu0 }
 0xf7d   :  { %v3775_v27 = vpop.f32.mrb[41].mxu1  ;;  %v3795_v28 = vpop.f32.mrb[21].mxu0  ;;  %v1982_v33 = vadd.f32 %v3391_v23, %v1981_v24  ;;  %v2096_v34 = vadd.f32 %v3401_v25, %v2095_v26 }
 0xf7e   :  { %v1984_v29 = vpop.f32.mrb[42].mxu1  ;;  %v2098_v30 = vpop.f32.mrb[22].mxu0 }
 0xf7f   :  { %v1985_v35 = vadd.f32 %v3391_v23, %v1984_v29  ;;  %v2099_v36 = vadd.f32 %v3401_v25, %v2098_v30  ;;  %v3776_v52 = vpop.f32.mrb[43].mxu1  ;;  %v3796_v45 = vpop.f32.mrb[23].mxu0 }
 0xf81   :  { %v2216_v37 = vpack.c.bf16 %v1985_v35, %v1982_v33  ;;  %v2217_v38 = vpack.c.bf16 %v2099_v36, %v2096_v34 }
 0xf83   :  { %2229 = vrot.lane.b32.xlu1 %v2217_v38, %s4492_s25  ;;  %2227 = vrot.lane.b32.xlu0 %v2217_v38, %s4509_s27  ;;  %v2247_v39 = vsel %vm819_vm2, %v2217_v38, 0 }
 0xf84   :  { %3818 = vmatpush3.bf16.xpose.msra.mxu0 %v2247_v39 }
 0xf85   :  { %3829 = vmatprep.subr.bf16.mxu0 %v4507_v49 }
 0xf87   :  { %2222 = vrot.lane.b32.xlu0 %v2216_v37, %s4492_s25  ;;  %2220 = vrot.lane.b32.xlu1 %v2216_v37, %s4509_s27 }
 0xf8b   :  { %2231 = vrot.lane.b32.xlu1 %v2217_v38, %s4510_s0  ;;  %3820 = vmatmul.mubr.msk.bf16.vlgmr.msra.gmra.mrb[24].mxu0 %vm819_vm2, %v2216_v37 }
 0xf8c   :  { %3831 = vmatprep.mubr.msk.bf16.mxu0 %vm4508_vm1, %v4507_v49 }
 0xf8f   :  { %2224 = vrot.lane.b32.xlu1 %v2216_v37, %s4510_s0 }
 0xf9c   :  { %v2209_v41 = vpop.f32.mrb[44].mxu1 }
 0xf9d   :  { %v3815_v47 = vpop.f32.mrb[45].mxu1  ;;  %v2210_v51 = vadd.f32 %v3411_v40, %v2209_v41 }
 0xf9e   :  { %v2212_v50 = vpop.f32.mrb[46].mxu1 }
 0xf9f   :  { %v2213_v43 = vadd.f32 %v3411_v40, %v2212_v50  ;;  %v3816_v53 = vpop.f32.mrb[47].mxu1 }
 0xfa1   :  { %v5068_v54 = vpack.c.bf16 %v2213_v43, %v2210_v51 }
 0xff5   :  { %v2230_v46 = vpop.permute.xlu1 %2229  ;;  %v2228_v55 = vpop.permute.xlu0 %2227 }
 0xff6   :  { %v2341_v56 = vsel %vm819_vm2, %v2230_v46, 0  ;;  %v2294_v57 = vsel %vm819_vm2, %v2228_v55, 0 }
 0xff7   :  { %3824 = vmatpush3.bf16.xpose.msra.mxu1 %v2294_v57  ;;  %3830 = vmatpush3.bf16.xpose.msra.mxu0 %v2341_v56 }
 0xff8   :  { %3835 = vmatprep.subr.bf16.mxu1 %v4507_v49  ;;  %3841 = vmatprep.subr.bf16.mxu0 %v4507_v49 }
 0xff9   :  { %v2221_v58 = vpop.permute.xlu1 %2220  ;;  %v2223_v59 = vpop.permute.xlu0 %2222 }
 0xffd   :  { %v2232_v60 = vpop.permute.xlu1 %2231 }
 0xffe   :  { %v2388_v61 = vsel %vm819_vm2, %v2232_v60, 0  ;;  %3826 = vmatmul.mubr.msk.bf16.vlgmr.msra.gmra.mrb[48].mxu1 %vm819_vm2, %v2221_v58  ;;  %3832 = vmatmul.mubr.msk.bf16.vlgmr.msra.gmra.mrb[28].mxu0 %vm819_vm2, %v2223_v59 }
 0xfff   :  { %3836 = vmatpush3.bf16.xpose.msra.mxu1 %v2388_v61  ;;  %3842 = vmatpush3.bf16.msra.mxu0 %v5068_v54 }
0x1000   :  { %3837 = vmatprep.mubr.msk.bf16.mxu1 %vm4508_vm1, %v4507_v49  ;;  %3843 = vmatprep.mubr.msk.bf16.mxu0 %vm4508_vm1, %v4507_v49 }
0x1001   :  { %3853 = vmatprep.subr.bf16.mxu0 %v4507_v49  ;;  %3847 = vmatprep.subr.bf16.mxu1 %v4507_v49  ;;  %v2225_v62 = vpop.permute.xlu1 %2224 }
0x1006   :  { %3838 = vmatmul.mubr.msk.bf16.vlgmr.msra.gmra.mrb[52].mxu1 %vm819_vm2, %v2225_v62 }
0x1007   :  { %3849 = vmatprep.mubr.msk.bf16.mxu1 %vm4508_vm1, %v4507_v49 }
0x105e   :  { %v2283_v63 = vpop.f32.mrb[24].mxu0 }
0x105f   :  { %v2284_v2 = vadd.f32 %v4211_v1, %v2283_v63  ;;  %v3821_v3 = vpop.f32.mrb[25].mxu0 }
0x1060   :  { %v2286_v4 = vpop.f32.mrb[26].mxu0 }
0x1061   :  { %v2287_v6 = vadd.f32 %v4212_v5, %v2286_v4  ;;  %v3822_v7 = vpop.f32.mrb[27].mxu0  ;;  %v2431_v8 = vsel %vm1008_vm3, %v2284_v2, -inf }
0x1062   :  { %2432 = vmax.xlane.f32.xlu0 %v2431_v8 }
0x1063   :  { %v2434_v9 = vsel %vm1008_vm3, %v2287_v6, -inf }
0x1064   :  { %2435 = vmax.xlane.f32.xlu1 %v2434_v9 }
0x10d1   :  { %v2330_v10 = vpop.f32.mrb[48].mxu1  ;;  %v2377_v11 = vpop.f32.mrb[28].mxu0 }
0x10d2   :  { %v2331_v12 = vadd.f32 %v4211_v1, %v2330_v10  ;;  %v3827_v13 = vpop.f32.mrb[49].mxu1  ;;  %v3833_v14 = vpop.f32.mrb[29].mxu0  ;;  %v2378_v23 = vadd.f32 %v4211_v1, %v2377_v11 }
0x10d3   :  { %v2333_v15 = vpop.f32.mrb[50].mxu1  ;;  %v2380_v16 = vpop.f32.mrb[30].mxu0 }
0x10d4   :  { %v2334_v17 = vadd.f32 %v4212_v5, %v2333_v15  ;;  %v2381_v18 = vadd.f32 %v4212_v5, %v2380_v16  ;;  %v3828_v19 = vpop.f32.mrb[51].mxu1  ;;  %v3834_v20 = vpop.f32.mrb[31].mxu0  ;;  %v2437_v21 = vsel %vm1008_vm3, %v2331_v12, -inf  ;;  %v2443_v33 = vsel %vm1008_vm3, %v2378_v23, -inf }
0x10d5   :  { %2438 = vmax.xlane.f32.xlu0 %v2437_v21 }
0x10d6   :  { %v2446_v22 = vsel %vm1008_vm3, %v2381_v18, -inf  ;;  %v2440_v24 = vsel %vm1008_vm3, %v2334_v17, -inf }
0x10d7   :  { %2447 = vmax.xlane.f32.xlu1 %v2446_v22 }
0x10d9   :  { %2441 = vmax.xlane.f32.xlu0 %v2440_v24  ;;  %v2424_v25 = vpop.f32.mrb[52].mxu1 }
0x10da   :  { %v3839_v26 = vpop.f32.mrb[53].mxu1  ;;  %v2425_v28 = vadd.f32 %v4211_v1, %v2424_v25 }
0x10db   :  { %v2427_v27 = vpop.f32.mrb[54].mxu1 }
0x10dc   :  { %v5098_v29 = vadd.f32 %v4212_v5, %v2427_v27  ;;  %v3840_v30 = vpop.f32.mrb[55].mxu1  ;;  %v2449_v35 = vsel %vm1008_vm3, %v2425_v28, -inf }
0x10dd   :  { %2444 = vmax.xlane.f32.xlu0 %v2443_v33 }
0x10de   :  { %v2452_v34 = vsel %vm1008_vm3, %v5098_v29, -inf }
0x10df   :  { %2453 = vmax.xlane.f32.xlu1 %v2452_v34 }
0x10e1   :  { %2450 = vmax.xlane.f32.xlu0 %v2449_v35 }
0x10ef   :  { %v2433_v36 = vpop.xlane.xlu0 %2432 }
0x10f0   :  { %v2455_v52 = vsub.f32 %v2284_v2, %v2433_v36 }
0x10f1   :  { %v2436_v45 = vpop.xlane.xlu1 %2435 }
0x10f2   :  { %v2463_v37 = vmul.f32 1.442695, %v2455_v52  ;;  %v2456_v38 = vsub.f32 %v2287_v6, %v2436_v45 }
0x10f4   :  { %4159 = vpow2.f32 %v2463_v37  ;;  %v2465_v39 = vmul.f32 1.442695, %v2456_v38 }
0x10f6   :  { %4161 = vpow2.f32 %v2465_v39 }
0x10fe   :  { %v4160_v40 = vpop.eup %4159 }
0x10ff   :  { %v2479_v41 = vsel %vm1008_vm3, %v4160_v40, 0.0 }
0x1100   :  { %v4162_v47 = vpop.eup %4161  ;;  %2480 = vadd.xlane.f32.xlu0 %v2479_v41 }
0x1101   :  { %v2482_v50 = vsel %vm1008_vm3, %v4162_v47, 0.0 }
0x1102   :  { %2483 = vadd.xlane.f32.xlu1 %v2482_v50 }
0x1162   :  { %v2439_v51 = vpop.xlane.xlu0 %2438 }
0x1163   :  { %v2457_v43 = vsub.f32 %v2331_v12, %v2439_v51 }
0x1164   :  { %v2448_v53 = vpop.xlane.xlu1 %2447 }
0x1165   :  { %v2467_v46 = vmul.f32 1.442695, %v2457_v43  ;;  %v2460_v55 = vsub.f32 %v2381_v18, %v2448_v53 }
0x1166   :  { %v2442_v56 = vpop.xlane.xlu0 %2441 }
0x1167   :  { %4163 = vpow2.f32 %v2467_v46  ;;  %v2458_v57 = vsub.f32 %v2334_v17, %v2442_v56  ;;  %v2473_v58 = vmul.f32 1.442695, %v2460_v55 }
0x1169   :  { %v2469_v59 = vmul.f32 1.442695, %v2458_v57 }
0x116a   :  { %v2445_v60 = vpop.xlane.xlu0 %2444 }
0x116b   :  { %4165 = vpow2.f32 %v2469_v59  ;;  %v2459_v61 = vsub.f32 %v2378_v23, %v2445_v60  ;;  %v4047_v59 = vld [vmem:[#allocation16 + $0x40] sm:$0xff]  }
0x116c   :  { %4167 = vpow2.f32 %v2473_v58  ;;  %v2454_v13 = vpop.xlane.xlu1 %2453 }
0x116d   :  { %v2471_v62 = vmul.f32 1.442695, %v2459_v61  ;;  %v2462_v18 = vsub.f32 %v5098_v29, %v2454_v13 }
0x116e   :  { %v2451_v63 = vpop.xlane.xlu0 %2450 }
0x116f   :  { %4169 = vpow2.f32 %v2471_v62  ;;  %v2461_v1 = vsub.f32 %v2425_v28, %v2451_v63  ;;  %v2477_v22 = vmul.f32 1.442695, %v2462_v18  ;;  %v4048_v62 = vld [vmem:[#allocation16 + $0x48] sm:$0xff]  }
0x1171   :  { %v4164_v2 = vpop.eup %4163  ;;  %v2475_v3 = vmul.f32 1.442695, %v2461_v1 }
0x1172   :  { %v2485_v4 = vsel %vm1008_vm3, %v4164_v2, 0.0 }
0x1173   :  { %4171 = vpow2.f32 %v2475_v3  ;;  %2486 = vadd.xlane.f32.xlu0 %v2485_v4  ;;  %v4049_v4 = vld [vmem:[#allocation16 + $0x50] sm:$0xff]  }
0x1175   :  { %v4166_v5 = vpop.eup %4165 }
0x1176   :  { %v2488_v6 = vsel %vm1008_vm3, %v4166_v5, 0.0  ;;  %v4168_v7 = vpop.eup %4167 }
0x1177   :  { %2489 = vadd.xlane.f32.xlu1 %v2488_v6  ;;  %v2494_v10 = vsel %vm1008_vm3, %v4168_v7, 0.0 }
0x1179   :  { %v4170_v8 = vpop.eup %4169 }
0x117a   :  { %v2491_v9 = vsel %vm1008_vm3, %v4170_v8, 0.0 }
0x117b   :  { %2492 = vadd.xlane.f32.xlu0 %v2491_v9  ;;  %2495 = vadd.xlane.f32.xlu1 %v2494_v10  ;;  %v4051_v9 = vld [vmem:[#allocation16 + $0x60] sm:$0xff]   ;;  %v4052_v10 = vld [vmem:[#allocation16 + $0x68] sm:$0xff]  }
0x117d   :  { %v4172_v11 = vpop.eup %4171 }
0x117e   :  { %v2497_v12 = vsel %vm1008_vm3, %v4172_v11, 0.0 }
0x117f   :  { %2498 = vadd.xlane.f32.xlu0 %v2497_v12  ;;  %v4054_v12 = vld [vmem:[#allocation16 + $0x78] sm:$0xff]  }
0x118c   :  { %2237 = vrot.lane.b32.xlu1 %v5068_v54, %s4492_s25 }
0x118d   :  { %v2481_v14 = vpop.xlane.xlu0 %2480 }
0x118e   :  { %4173 = vrcp.f32 %v2481_v14 }
0x118f   :  { %v2484_v15 = vpop.xlane.xlu1 %2483 }
0x1190   :  { %4175 = vrcp.f32 %v2484_v15 }
0x1191   :  { %4177 = vpow2.f32 %v2477_v22 }
0x1195   :  { %2234 = vrot.lane.b32.xlu0 %v5068_v54, %s4509_s27 }
0x1198   :  { %v4174_v16 = vpop.eup %4173 }
0x1199   :  { %v2511_v19 = vmul.f32 %v4174_v16, %v4160_v40 }
0x119a   :  { %v4176_v17 = vpop.eup %4175 }
0x119b   :  { %v2512_v20 = vmul.f32 %v4176_v17, %v4162_v47  ;;  %v4178_v23 = vpop.eup %4177 }
0x119c   :  { %v2500_v24 = vsel %vm1008_vm3, %v4178_v23, 0.0 }
0x119d   :  { %v2519_v21 = vpack.c.bf16 %v2512_v20, %v2511_v19 }
0x119f   :  { %3844 = vmatmul.mubr.msk.bf16.vlgmr.msra.gmra.mrb[32].mxu0 %vm1008_vm3, %v2519_v21 }
0x11a0   :  { %3855 = vmatprep.mubr.msk.bf16.mxu0 %vm4508_vm1, %v4507_v49 }
0x11b0   :  { %2501 = vadd.xlane.f32.xlu1 %v2500_v24 }
0x11c1   :  { %2240 = vrot.lane.b32.xlu1 %v5068_v54, %s4510_s0 }
0x1200   :  { %v2487_v25 = vpop.xlane.xlu0 %2486 }
0x1201   :  { %4179 = vrcp.f32 %v2487_v25 }
0x1204   :  { %v2490_v26 = vpop.xlane.xlu1 %2489 }
0x1205   :  { %4181 = vrcp.f32 %v2490_v26 }
0x1208   :  { %v2493_v27 = vpop.xlane.xlu0 %2492  ;;  %v2496_v28 = vpop.xlane.xlu1 %2495 }
0x1209   :  { %4183 = vrcp.f32 %v2493_v27 }
0x120a   :  { %4185 = vrcp.f32 %v2496_v28 }
0x120b   :  { %v4180_v33 = vpop.eup %4179 }
0x120c   :  { %v2499_v29 = vpop.xlane.xlu0 %2498  ;;  %v2238_v30 = vpop.permute.xlu1 %2237  ;;  %v2513_v35 = vmul.f32 %v4180_v33, %v4164_v2 }
0x120d   :  { %3854 = vmatpush3.bf16.msra.mxu0 %v2238_v30  ;;  %4187 = vrcp.f32 %v2499_v29 }
0x120e   :  { %3865 = vmatprep.subr.bf16.mxu0 %v4507_v49 }
0x120f   :  { %v4182_v34 = vpop.eup %4181 }
0x1210   :  { %v2514_v36 = vmul.f32 %v4182_v34, %v4166_v5  ;;  %v2235_v52 = vpop.permute.xlu0 %2234 }
0x1211   :  { %3848 = vmatpush3.bf16.msra.mxu1 %v2235_v52 }
0x1212   :  { %v2520_v54 = vpack.c.bf16 %v2514_v36, %v2513_v35  ;;  %3859 = vmatprep.subr.bf16.mxu1 %v4507_v49  ;;  %v3437_v36 = vld [vmem:[%s5207_s13 + $0x1] ss:$0 sm:$0xff] }
0x1213   :  { %v4184_v45 = vpop.eup %4183 }
0x1214   :  { %v4186_v37 = vpop.eup %4185  ;;  %v2515_v38 = vmul.f32 %v4184_v45, %v4170_v8  ;;  %3850 = vmatmul.mubr.msk.bf16.vlgmr.msra.gmra.mrb[56].mxu1 %vm1008_vm3, %v2520_v54  ;;  %v4050_v8 = vld [vmem:[#allocation16 + $0x58] sm:$0xff]  }
0x1215   :  { %v2516_v39 = vmul.f32 %v4186_v37, %v4168_v7  ;;  %3861 = vmatprep.mubr.msk.bf16.mxu1 %vm4508_vm1, %v4507_v49 }
0x1217   :  { %v2521_v40 = vpack.c.bf16 %v2516_v39, %v2515_v38  ;;  %v4188_v50 = vpop.eup %4187 }
0x1218   :  { %v2517_v43 = vmul.f32 %v4188_v50, %v4172_v11  ;;  %v4053_v11 = vld [vmem:[#allocation16 + $0x70] sm:$0xff]  }
0x1219   :  { %3856 = vmatmul.mubr.msk.bf16.vlgmr.msra.gmra.mrb[36].mxu0 %vm1008_vm3, %v2521_v40  ;;  %v4060_v50 = vld [vmem:[#allocation17 + $0x94] ss:$8 sps:$4 sm:$0xff]  }
0x121a   :  { %3881 = vmatprep.mubr.msk.bf16.mxu0 %vm4508_vm1, %v4507_v49  ;;  %3866 = vmatpush3.bf16.msra.mxu0 %v4047_v59  ;;  %v4061_v59 = vld [vmem:[#allocation17 + $0xa0] ss:$8 sps:$4 sm:$0xff]  }
0x121b   :  { %3867 = vmatprep.subr.bf16.mxu0 %v4507_v49 }
0x121e   :  { %3868 = vmatpush3.bf16.msra.mxu0 %v4048_v62  ;;  %v4069_v62 = vld [vmem:[#allocation17 + $0xc4] ss:$8 sps:$4 sm:$0xff]  }
0x121f   :  { %3869 = vmatprep.subr.bf16.mxu0 %v4507_v49 }
0x1222   :  { %3870 = vmatpush3.bf16.msra.mxu0 %v4049_v4  ;;  %v4073_v4 = vld [vmem:[#allocation17 + $0xe0] ss:$8 sps:$4 sm:$0xff]  }
0x1223   :  { %3871 = vmatprep.subr.bf16.mxu0 %v4507_v49 }
0x1226   :  { %3872 = vmatpush3.bf16.msra.mxu0 %v4050_v8 }
0x1227   :  { %3873 = vmatprep.subr.bf16.mxu0 %v4507_v49 }
0x122a   :  { %3874 = vmatpush3.bf16.msra.mxu0 %v4051_v9 }
0x122b   :  { %3875 = vmatprep.subr.bf16.mxu0 %v4507_v49 }
0x122e   :  { %3876 = vmatpush3.bf16.msra.mxu0 %v4052_v10 }
0x122f   :  { %3877 = vmatprep.subr.bf16.mxu0 %v4507_v49 }
0x1232   :  { %3878 = vmatpush3.bf16.msra.mxu0 %v4053_v11 }
0x1233   :  { %3879 = vmatprep.subr.bf16.mxu0 %v4507_v49 }
0x1236   :  { %3880 = vmatpush3.bf16.msra.mxu0 %v4054_v12 }
0x123d   :  { %v2502_v41 = vpop.xlane.xlu1 %2501 }
0x123e   :  { %4189 = vrcp.f32 %v2502_v41  ;;  %v4055_v41 = vld [vmem:[#allocation17 + $0x80] ss:$8 sps:$4 sm:$0xff]  }
0x1241   :  { %v2241_v47 = vpop.permute.xlu1 %2240 }
0x1242   :  { %3860 = vmatpush3.bf16.msra.mxu1 %v2241_v47  ;;  %v4057_v47 = vld [vmem:[#allocation17 + $0x84] ss:$8 sps:$4 sm:$0xff]  }
0x1243   :  { %3001 = vmatprep.subr.bf16.mxu1 %v4057_v47 }
0x1248   :  { %v4190_v51 = vpop.eup %4189 }
0x1249   :  { %v2518_v53 = vmul.f32 %v4190_v51, %v4178_v23  ;;  %v4058_v51 = vld [vmem:[#allocation17 + $0x90] ss:$8 sps:$4 sm:$0xff]  }
0x124b   :  { %v2522_v46 = vpack.c.bf16 %v2518_v53, %v2517_v43 }
0x124d   :  { %3862 = vmatmul.mubr.msk.bf16.vlgmr.msra.gmra.mrb[60].mxu1 %vm1008_vm3, %v2522_v46 }
0x124e   :  { %3033 = vmatprep.mubr.bf16.mxu1 %v4506_v0  ;;  %3002 = vmatpush1.bf16.msra.mxu1 %v4055_v41 }
0x124f   :  { %3003 = vmatprep.subr.bf16.mxu1 %v4060_v50 }
0x1252   :  { %3004 = vmatpush1.bf16.msra.mxu1 %v4058_v51 }
0x1272   :  { %v2560_v55 = vpop.f32.mrb[32].mxu0 }
0x1273   :  { %v3845_v56 = vpop.f32.mrb[33].mxu0 }
0x1274   :  { %v2563_v57 = vpop.f32.mrb[34].mxu0 }
0x1275   :  { %v3846_v58 = vpop.f32.mrb[35].mxu0 }
0x1276   :  { %v4063_v58 = vld [vmem:[#allocation17 + $0xa4] ss:$8 sps:$4 sm:$0xff]  }
0x1277   :  { %3005 = vmatprep.subr.bf16.mxu1 %v4063_v58 }
0x1278   :  { %3006 = vmatpush1.bf16.msra.mxu1 %v4061_v59 }
0x12e7   :  { %v2604_v60 = vpop.f32.mrb[56].mxu1 }
0x12e8   :  { %v3851_v61 = vpop.f32.mrb[57].mxu1 }
0x12e9   :  { %v2607_v63 = vpop.f32.mrb[58].mxu1  ;;  %v4064_v61 = vld [vmem:[#allocation17 + $0xb0] ss:$8 sps:$4 sm:$0xff]  }
0x12ea   :  { %v3921_v1 = vpack.i.bf16 %v2607_v63, %v2604_v60  ;;  %v3852_v2 = vpop.f32.mrb[59].mxu1  ;;  %v4066_v60 = vld [vmem:[#allocation17 + $0xb4] ss:$8 sps:$4 sm:$0xff]   ;;  %v4067_v63 = vld [vmem:[#allocation17 + $0xc0] ss:$8 sps:$4 sm:$0xff]  }
0x12eb   :  { %3007 = vmatprep.subr.bf16.mxu1 %v4066_v60  ;;  %v4070_v2 = vld [vmem:[#allocation17 + $0xd0] ss:$8 sps:$4 sm:$0xff]  }
0x12ec   :  { %v2648_v3 = vpop.f32.mrb[36].mxu0  ;;  %3922 = vrot.lane.b32.xlu1 %v3921_v1, %s4510_s0  ;;  %3008 = vmatpush1.bf16.msra.mxu1 %v4064_v61  ;;  %v4072_v1 = vld [vmem:[#allocation17 + $0xd4] ss:$8 sps:$4 sm:$0xff]  }
0x12ed   :  { %v3857_v0 = vpop.f32.mrb[37].mxu0  ;;  %3009 = vmatprep.subr.bf16.mxu1 %v4069_v62 }
0x12ee   :  { %v2651_v5 = vpop.f32.mrb[38].mxu0  ;;  %v4078_v0 = vld [vmem:[#allocation17 + $0xf4] ss:$8 sps:$4 sm:$0xff]  }
0x12ef   :  { %v3926_v6 = vpack.i.bf16 %v2651_v5, %v2648_v3  ;;  %v3858_v7 = vpop.f32.mrb[39].mxu0  ;;  %v4075_v3 = vld [vmem:[#allocation17 + $0xe4] ss:$8 sps:$4 sm:$0xff]   ;;  %v4076_v5 = vld [vmem:[#allocation17 + $0xf0] ss:$8 sps:$4 sm:$0xff]  }
0x12f0   :  { %3010 = vmatpush1.bf16.msra.mxu1 %v4067_v63 }
0x12f1   :  { %3927 = vrot.lane.b32.xlu0 %v3926_v6, %s4492_s25  ;;  %3011 = vmatprep.subr.bf16.mxu1 %v4072_v1 }
0x12f4   :  { %3012 = vmatpush1.bf16.msra.mxu1 %v4070_v2 }
0x12f5   :  { %3013 = vmatprep.subr.bf16.mxu1 %v4075_v3 }
0x12f8   :  { %3014 = vmatpush1.bf16.msra.mxu1 %v4073_v4 }
0x12f9   :  { %3015 = vmatprep.subr.bf16.mxu1 %v4078_v0 }
0x12fc   :  { %3016 = vmatpush1.bf16.msra.mxu1 %v4076_v5 }
0x1320   :  { %v2692_v13 = vpop.f32.mrb[60].mxu1 }
0x1321   :  { %v3863_v14 = vpop.f32.mrb[61].mxu1 }
0x1322   :  { %v2695_v15 = vpop.f32.mrb[62].mxu1  ;;  %v3440_v14 = vld [vmem:[%s5210_s16 + $0x1] ss:$0 sm:$0xff] }
0x1323   :  { %v3931_v16 = vpack.i.bf16 %v2695_v15, %v2692_v13  ;;  %v3864_v17 = vpop.f32.mrb[63].mxu1 }
0x1325   :  { %3932 = vrot.lane.b32.xlu1 %v3931_v16, %s4509_s27 }
0x135e   :  { %v3923_v18 = vpop.permute.xlu1 %3922 }
0x135f   :  { %v3925_v20 = vunpack.i.h.bf16 %v3923_v18  ;;  %v3924_v21 = vunpack.i.l.bf16 %v3923_v18  ;;  %v3441_v18 = vld [vmem:[%s5211_s17 + $0x1] ss:$0 sm:$0xff] }
0x1361   :  { %v2724_v25 = vsel %vm819_vm2, %v2563_v57, %v3925_v20  ;;  %v2723_v49 = vsel %vm819_vm2, %v2560_v55, %v3924_v21 }
0x1363   :  { %v3928_v19 = vpop.permute.xlu0 %3927 }
0x1364   :  { %v3930_v22 = vunpack.i.h.bf16 %v3928_v19  ;;  %v3929_v23 = vunpack.i.l.bf16 %v3928_v19 }
0x1366   :  { %v2725_v28 = vsel %vm327_vm0, %v2723_v49, %v3929_v23  ;;  %v2726_v29 = vsel %vm327_vm0, %v2724_v25, %v3930_v22  ;;  %v4079_v23 = vld [vmem:[#allocation19 + $0xc0] sm:$0xff]   ;;  %v4081_v25 = vld [vmem:[#allocation19 + $0xc8] sm:$0xff]  }
0x1367   :  { %3607 = vmatprep.subr.bf16.mxu0 %v4079_v23  ;;  %v4082_v49 = vld [vmem:[#allocation19 + $0x88] sm:$0xff]  }
0x1397   :  { %v3933_v24 = vpop.permute.xlu1 %3932 }
0x1398   :  { %v3935_v26 = vunpack.i.h.bf16 %v3933_v24  ;;  %v3934_v27 = vunpack.i.l.bf16 %v3933_v24  ;;  %v4080_v24 = vld [vmem:[#allocation19 + $0x80] sm:$0xff]  }
0x139a   :  { %v2728_v30 = vsel %vm1305_vm4, %v2726_v29, %v3935_v26  ;;  %v2727_v33 = vsel %vm1305_vm4, %v2725_v28, %v3934_v27  ;;  %v4083_v26 = vld [vmem:[#allocation19 + $0xd0] sm:$0xff]   ;;  %v4085_v28 = vld [vmem:[#allocation19 + $0xd8] sm:$0xff]  }
0x139b   :  { %v2729_v34 = vpack.c.bf16 %v2728_v30, %v2727_v33  ;;  %v4084_v27 = vld [vmem:[#allocation19 + $0x90] sm:$0xff]   ;;  %v4086_v29 = vld [vmem:[#allocation19 + $0x98] sm:$0xff]   ;;  %v4087_v30 = vld [vmem:[#allocation19 + $0xe0] sm:$0xff]  }
0x139c   :  { %v4088_v33 = vld [vmem:[#allocation19 + $0xa0] sm:$0xff]  }
0x139d   :  { %3882 = vmatmul.mubr.bf16.vlgmr.msra.gmra.mrb[40].mxu0 %v2729_v34  ;;  %v4089_v34 = vld [vmem:[#allocation19 + $0xe8] sm:$0xff]  }
0x139e   :  { %3608 = vmatpush3.bf16.msra.mxu0 %v4080_v24 }
0x139f   :  { %3609 = vmatprep.subr.bf16.mxu0 %v4081_v25 }
0x13a2   :  { %3610 = vmatpush3.bf16.msra.mxu0 %v4082_v49 }
0x13a3   :  { %3611 = vmatprep.subr.bf16.mxu0 %v4083_v26 }
0x13a6   :  { %3612 = vmatpush3.bf16.msra.mxu0 %v4084_v27 }
0x13a7   :  { %3613 = vmatprep.subr.bf16.mxu0 %v4085_v28 }
0x13aa   :  { %3614 = vmatpush3.bf16.msra.mxu0 %v4086_v29 }
0x13ab   :  { %3615 = vmatprep.subr.bf16.mxu0 %v4087_v30 }
0x13ae   :  { %3616 = vmatpush3.bf16.msra.mxu0 %v4088_v33 }
0x13af   :  { %3617 = vmatprep.subr.bf16.mxu0 %v4089_v34 }
0x1470   :  { %v2829_v35 = vpop.f32.mrb[40].mxu0 }
0x1471   :  { %v2836_v52 = vadd.f32 %v2829_v35, %v5004_v31  ;;  %v3883_v54 = vpop.f32.mrb[41].mxu0  ;;  %v4090_v35 = vld [vmem:[#allocation19 + $0xa8] sm:$0xff]  }
0x1472   :  { %v2832_v45 = vpop.f32.mrb[42].mxu0  ;;  %3618 = vmatpush3.bf16.msra.mxu0 %v4090_v35  ;;  %v4093_v54 = vld [vmem:[#allocation19 + $0xf8] sm:$0xff]  }
0x1473   :  { %v5152_v37 = vadd.f32 %v3437_v36, %v2836_v52  ;;  %v2837_v38 = vadd.f32 %v2832_v45, %v5007_v32  ;;  %v3884_v39 = vpop.f32.mrb[43].mxu0  ;;  %v4092_v52 = vld [vmem:[#allocation19 + $0xb0] sm:$0xff]   ;;  %v4094_v45 = vld [vmem:[#allocation19 + $0xb8] sm:$0xff]  }
0x1475   :  { %v5155_v40 = vadd.f32 %v3437_v36, %v2837_v38  ;;  %2852 = vadd.xlane.f32.xlu0 %v5152_v37  ;;  %v4091_v36 = vld [vmem:[#allocation19 + $0xf0] sm:$0xff]   ;;  %v3442_v38 = vld [vmem:[%s5244_s2 + $0x2] sm:$0x3]  ;;  %s3267_s2 = sshll.u32 %s4511_s24, 4  ;;  %s3268_s2 = int_to_ptr.vmem [resolvable:$true] %s3267_s2 }
0x1476   :  { %3619 = vmatprep.subr.bf16.mxu0 %v4091_v36  ;;  %v2914_v39 = vrot.slane %v3442_v38, %v1486_v44  ;;  %v2918_v41 = vrot.slane %v3442_v38, %v1490_v48  ;;  %s4455_s8 = scalar_lea.vmem %s3268_s2, 256  ;;  %p4460_p5 = scmp.lt.s32.totalorder %s3268_s2, %s3268_s2 }
0x1477   :  { %2854 = vadd.xlane.f32.xlu1 %v5155_v40  ;;  %3620 = vmatpush3.bf16.msra.mxu0 %v4092_v52  ;;  %p4456_p4 = scmp.ne.s32.totalorder %s3268_s2, %s4455_s8  ;;  %p4461_p6 = scmp.lt.s32.totalorder %s4455_s8, %s4455_s8 }
0x1478   :  { %3621 = vmatprep.subr.bf16.mxu0 %v4093_v54 }
0x1479   :  { %p4462_p7 = por %p4461_p6, %p4460_p5 }
0x147b   :  { %3622 = vmatpush3.bf16.msra.mxu0 %v4094_v45  ;;  %p4463_p8 = pnand %p4462_p7, %p4456_p4 }
0x1502   :  { %v2853_v31 = vpop.xlane.xlu0 %2852 }
0x1503   :  { %v2856_v43 = vmul.f32 0.0078125, %v2853_v31 }
0x1504   :  { %v2855_v53 = vpop.xlane.xlu1 %2854 }
0x1505   :  { %v2858_v32 = vsub.f32 %v5152_v37, %v2856_v43  ;;  %v2857_v46 = vmul.f32 0.0078125, %v2855_v53 }
0x1507   :  { %v2859_v55 = vsub.f32 %v5155_v40, %v2857_v46  ;;  %v2860_v56 = vmul.f32 %v2858_v32, %v2858_v32 }
0x1509   :  { %2862 = vadd.xlane.f32.xlu0 %v2860_v56  ;;  %v2861_v57 = vmul.f32 %v2859_v55, %v2859_v55 }
0x150d   :  { %2864 = vadd.xlane.f32.xlu0 %v2861_v57 }
0x1596   :  { %v2863_v6 = vpop.xlane.xlu0 %2862 }
0x1597   :  { %v2866_v7 = vmul.f32 0.0078125, %v2863_v6 }
0x1599   :  { %v2868_v8 = vadd.f32 1e-05, %v2866_v7 }
0x159a   :  { %v2865_v9 = vpop.xlane.xlu0 %2864 }
0x159b   :  { %4191 = vrsqrt.f32 %v2868_v8  ;;  %v2867_v10 = vmul.f32 0.0078125, %v2865_v9 }
0x159d   :  { %v2869_v11 = vadd.f32 1e-05, %v2867_v10 }
0x159f   :  { %4193 = vrsqrt.f32 %v2869_v11 }
0x15a5   :  { %v4192_v12 = vpop.eup %4191 }
0x15a6   :  { %v2872_v13 = vmul.f32 %v4192_v12, %v2858_v32 }
0x15a8   :  { %v2880_v17 = vmul.f32 %v3440_v14, %v2872_v13 }
0x15a9   :  { %v4194_v15 = vpop.eup %4193 }
0x15aa   :  { %v2873_v16 = vmul.f32 %v4194_v15, %v2859_v55  ;;  %v2888_v20 = vadd.f32 %v3441_v18, %v2880_v17 }
0x15ac   :  { %v2881_v19 = vmul.f32 %v3440_v14, %v2873_v16 }
0x15ae   :  { %v2889_v21 = vadd.f32 %v3441_v18, %v2881_v19  ;;  %v3480_v18 = vld [vmem:[%s5245_s22 + $0x1] ss:$0 sm:$0xff] }
0x15b0   :  { %v2890_v22 = vpack.c.bf16 %v2889_v21, %v2888_v20 }
0x15b2   :  { %3034 = vmatmul.mubr.bf16.vlgmr.msra.gmra.mrb[64].mxu1 %v2890_v22 }
0x1685   :  { %v3035_v47 = vpop.f32.mrb[64].mxu1 }
0x1686   :  { %v3036_v50 = vadd.f32 %v3035_v47, %v2914_v39  ;;  %v3037_v51 = vpop.f32.mrb[65].mxu1 }
0x1687   :  { %v3038_v31 = vadd.f32 %v3037_v51, %v2918_v41  ;;  %v3039_v43 = vpop.f32.mrb[66].mxu1 }
0x1688   :  { %v3459_v53 = vmul.f32 -1.702, %v3036_v50  ;;  %v3040_v32 = vadd.f32 %v3039_v43, %v2914_v39  ;;  %v3041_v46 = vpop.f32.mrb[67].mxu1 }
0x1689   :  { %v3460_v55 = vmul.f32 -1.702, %v3038_v31  ;;  %v3042_v56 = vadd.f32 %v3041_v46, %v2918_v41 }
0x168a   :  { %v3052_v57 = vmul.f32 1.442695, %v3459_v53  ;;  %v3461_v58 = vmul.f32 -1.702, %v3040_v32 }
0x168b   :  { %v3054_v59 = vmul.f32 1.442695, %v3460_v55  ;;  %v3462_v60 = vmul.f32 -1.702, %v3042_v56 }
0x168c   :  { %4195 = vpow2.f32 %v3052_v57  ;;  %v3056_v61 = vmul.f32 1.442695, %v3461_v58 }
0x168d   :  { %4197 = vpow2.f32 %v3054_v59  ;;  %v3058_v44 = vmul.f32 1.442695, %v3462_v60 }
0x168e   :  { %4199 = vpow2.f32 %v3056_v61 }
0x168f   :  { %4201 = vpow2.f32 %v3058_v44 }
0x1696   :  { %v4196_v42 = vpop.eup %4195 }
0x1697   :  { %v4198_v48 = vpop.eup %4197  ;;  %v3060_v62 = vadd.f32 1.0, %v4196_v42 }
0x1698   :  { %v4200_v63 = vpop.eup %4199  ;;  %v3061_v1 = vadd.f32 1.0, %v4198_v48 }
0x1699   :  { %v4202_v2 = vpop.eup %4201  ;;  %4203 = vrcp.f32 %v3060_v62  ;;  %v3062_v3 = vadd.f32 1.0, %v4200_v63 }
0x169a   :  { %4205 = vrcp.f32 %v3061_v1  ;;  %v3063_v4 = vadd.f32 1.0, %v4202_v2 }
0x169b   :  { %4207 = vrcp.f32 %v3062_v3 }
0x169c   :  { %4209 = vrcp.f32 %v3063_v4 }
0x16a3   :  { %v4204_v0 = vpop.eup %4203 }
0x16a4   :  { %v4206_v5 = vpop.eup %4205  ;;  %v3072_v8 = vmul.f32 %v4204_v0, %v3036_v50 }
0x16a5   :  { %v4208_v6 = vpop.eup %4207  ;;  %v3073_v10 = vmul.f32 %v4206_v5, %v3038_v31 }
0x16a6   :  { %v4210_v7 = vpop.eup %4209  ;;  %v3074_v9 = vmul.f32 %v4208_v6, %v3040_v32 }
0x16a7   :  { %v3075_v11 = vmul.f32 %v4210_v7, %v3042_v56 }
0x16a8   :  { %v3076_v12 = vpack.c.bf16 %v3074_v9, %v3072_v8 }
0x16a9   :  { %v3077_v13 = vpack.c.bf16 %v3075_v11, %v3073_v10 }
0x16ab   :  { %3239 = vmatprep.mubr.bf16.mxu0 %v3077_v13 }
0x16ac   :  { %3240 = vmatmul.mubr.bf16.vlgmr.msra.gmra.mrb[44].mxu0 %v3076_v12 }
0x177f   :  { %v3623_v14 = vpop.f32.mrb[44].mxu0 }
0x1780   :  { %v3624_v15 = vpop.f32.mrb[45].mxu0 }
0x1781   :  { %v3625_v16 = vadd.f32 %v3624_v15, %v3623_v14  ;;  %v3626_v17 = vpop.f32.mrb[46].mxu0 }
0x1782   :  { %v3627_v19 = vpop.f32.mrb[47].mxu0 }
0x1783   :  { %v3248_v20 = vadd.f32 %v3625_v16, %v5152_v37  ;;  %v3628_v21 = vadd.f32 %v3627_v19, %v3626_v17 }
0x1785   :  { %v3258_v22 = vadd.f32 %v3480_v18, %v3248_v20  ;;  %v3249_v23 = vadd.f32 %v3628_v21, %v5155_v40 }
0x1787   :  { %3260 = vst [vmem:[#allocation20] sm:$0xff] %v3258_v22  ;;  %v3259_v24 = vadd.f32 %v3480_v18, %v3249_v23 }
0x1789   :  { %3261 = vst [vmem:[#allocation20 + $0x8] sm:$0xff] %v3259_v24 }
0x178a   :  { %4466 = shalt.err (!%p4463_p8)
}
0x178b   :  { %s5246_s3 = sld [smem:[#allocation37_spill]] }
0x1791   :  { %s4467_s1 = scalar_lea.hbm %s5246_s3, 256 }
0x1792   :  { %p4468_p9 = scmp.ne.s32.totalorder %s5246_s3, %s4467_s1  ;;  %p4471_p10 = scmp.lt.u32.totalorder %s4467_s1, %s5246_s3 }
0x1794   :  { %p4473_p11 = pnand %p4471_p10, %p4468_p9 }
0x1796   :  { %4476 = shalt.err (!%p4473_p11)
}
0x1797   :  { %3273 = dma.vmem_to_hbm [thread:$0]  %s3268_s2, 256, %s5246_s3, [#allocation4], %s4499_s4, %s4499_s4, %s4500_s23  }
0x1798   :  { %4489 = dma.done.wait [#allocation4], 256  }
0x1799   :  { %4490 = vsyncadd [#allocation4], 4294967040 }
0x179a   :  { %3277 = vsyncpa [#allocation3], 1 }
0x179b   :  { %3278 = vsyncpa [#allocation6], 1 }
0x179c   :  { %3279 = vsyncpa [#allocation9], 1 }
0x179d   :  { %3280 = vsyncpa [#allocation12], 1 }
0x179e   :  { %3281 = vsyncpa [#allocation15], 1 }
0x179f   :  { %3282 = vsyncpa [#allocation18], 1 }
0x17a0   :  { %3283 = vsyncpa [#allocation4], 1 }

</bundles_post_ra>
